<compile_context>
chip_gen: v6e
topology: v6e:2x2x1
jax: 0.10.0
libtpu: 0.0.40
codegen_flags: <defaults>
</compile_context>

<pallas_src>
import functools

import jax
import jax.numpy as jnp
from jax.experimental import pallas as pl
from jax.experimental.pallas import tpu as pltpu

_EPS = 1e-5
_LANE = 128


# ---------------------------------------------------------------------------
# small helpers
# ---------------------------------------------------------------------------
def _round_up(x, m):
    return (x + m - 1) // m * m


def _choose_tile(m, target):
    # multiple of 256 (MXU friendly), never much bigger than M itself.
    return int(min(target, _round_up(m, 256)))


def _pad2d(a, m_p, c_p):
    m, c = a.shape
    return jnp.pad(a, ((0, m_p - m), (0, c_p - c)))


def _pad_vec(v, c_p):
    v = v.astype(jnp.float32).reshape(1, -1)
    return jnp.pad(v, ((0, 0), (0, c_p - v.shape[1])))


def _compiler_params(block_bytes):
    # double-buffered blocks + headroom; capped so it is valid on v7x (64 MiB).
    limit = int(min(max(2 * block_bytes + (4 << 20), 32 << 20), 64 << 20))
    return pltpu.CompilerParams(dimension_semantics=("parallel",),
                                vmem_limit_bytes=limit)


# ---------------------------------------------------------------------------
# kernels
# ---------------------------------------------------------------------------
def _write_stats(stats_ref, z):
    # rows: 0 = per-channel sum, 1 = per-channel sum of squares, rest 0.
    c = z.shape[-1]
    s = jnp.sum(z, axis=0, keepdims=True)
    ss = jnp.sum(z * z, axis=0, keepdims=True)
    rows = jax.lax.broadcasted_iota(jnp.int32, (8, c), 0)
    stats_ref[...] = jnp.where(rows == 0, s, jnp.where(rows == 1, ss, 0.0))


def _mm_stats_kernel(x_ref, w_ref, z_ref, *rest, with_stats):
    # bf16 x bf16 matmul, f32 accumulation; optional per-tile BN partials.
    z = jnp.dot(x_ref[...], w_ref[...], preferred_element_type=jnp.float32)
    z_ref[...] = z
    if with_stats:
        _write_stats(rest[0], z)


def _affine_relu_kernel(z_ref, s_ref, b_ref, y_ref):
    # y = relu(z * scale + shift)  (scale/shift already fold mean/var/gamma/beta
    # or, in the no-BN case, scale = 1 and shift = conv bias).
    y = jnp.maximum(z_ref[...] * s_ref[...] + b_ref[...], 0.0)
    y_ref[...] = y.astype(y_ref.dtype)


def _affine_relu_mm_stats_kernel(z_ref, s_ref, b_ref, w_ref, o_ref, *rest,
                                 tile_m, m_true, with_stats):
    # fused: (BN2 affine + ReLU2) -> conv3 matmul -> BN3 partial stats.
    a = jnp.maximum(z_ref[...] * s_ref[...] + b_ref[...], 0.0)
    # mask padded rows so downstream BN statistics stay exact.
    row = (jax.lax.broadcasted_iota(jnp.int32, (tile_m, 1), 0)
           + pl.program_id(0) * tile_m)
    a = jnp.where(row < m_true, a, 0.0)
    z = jnp.dot(a.astype(jnp.bfloat16), w_ref[...],
                preferred_element_type=jnp.float32)
    o_ref[...] = z
    if with_stats:
        _write_stats(rest[0], z)


def _residual_relu_kernel(z_ref, s_ref, b_ref, r_ref, sr_ref, br_ref, o_ref):
    # out = relu( BN3(z3) + residual-branch )
    main = z_ref[...] * s_ref[...] + b_ref[...]
    res = r_ref[...] * sr_ref[...] + br_ref[...]
    o_ref[...] = jnp.maximum(main + res, 0.0)


# ---------------------------------------------------------------------------
# pallas_call wrappers (grid over M row tiles, "parallel")
# ---------------------------------------------------------------------------
def _matmul_pass(x, w, *, tile_m, with_stats):
    m_pad, k = x.shape
    c = w.shape[1]
    nt = m_pad // tile_m
    kernel = functools.partial(_mm_stats_kernel, with_stats=with_stats)
    out_shape = [jax.ShapeDtypeStruct((m_pad, c), jnp.float32)]
    out_specs = [pl.BlockSpec((tile_m, c), lambda i: (i, 0))]
    if with_stats:
        out_shape.append(jax.ShapeDtypeStruct((nt * 8, c), jnp.float32))
        out_specs.append(pl.BlockSpec((8, c), lambda i: (i, 0)))
    block_bytes = tile_m * k * 2 + k * c * 2 + tile_m * c * 4 + 8 * c * 4
    outs = pl.pallas_call(
        kernel,
        grid=(nt,),
        in_specs=[pl.BlockSpec((tile_m, k), lambda i: (i, 0)),
                  pl.BlockSpec((k, c), lambda i: (0, 0))],
        out_specs=tuple(out_specs),
        out_shape=tuple(out_shape),
        compiler_params=_compiler_params(block_bytes),
    )(x, w)
    return (outs[0], outs[1]) if with_stats else (outs[0], None)


def _affine_relu(z, scale, shift, *, tile_m, out_dtype=jnp.bfloat16):
    m_pad, c = z.shape
    nt = m_pad // tile_m
    block_bytes = tile_m * c * 4 + 2 * c * 4 + tile_m * c * 2
    return pl.pallas_call(
        _affine_relu_kernel,
        grid=(nt,),
        in_specs=[pl.BlockSpec((tile_m, c), lambda i: (i, 0)),
                  pl.BlockSpec((1, c), lambda i: (0, 0)),
                  pl.BlockSpec((1, c), lambda i: (0, 0))],
        out_specs=pl.BlockSpec((tile_m, c), lambda i: (i, 0)),
        out_shape=jax.ShapeDtypeStruct((m_pad, c), out_dtype),
        compiler_params=_compiler_params(block_bytes),
    )(z, scale, shift)


def _affine_matmul_pass(z_in, scale, shift, w, *, tile_m, m_true, with_stats):
    m_pad, k = z_in.shape
    c = w.shape[1]
    nt = m_pad // tile_m
    kernel = functools.partial(_affine_relu_mm_stats_kernel,
                               tile_m=tile_m, m_true=m_true,
                               with_stats=with_stats)
    out_shape = [jax.ShapeDtypeStruct((m_pad, c), jnp.float32)]
    out_specs = [pl.BlockSpec((tile_m, c), lambda i: (i, 0))]
    if with_stats:
        out_shape.append(jax.ShapeDtypeStruct((nt * 8, c), jnp.float32))
        out_specs.append(pl.BlockSpec((8, c), lambda i: (i, 0)))
    block_bytes = (tile_m * k * 4 + 2 * k * 4 + k * c * 2
                   + tile_m * c * 4 + 8 * c * 4)
    outs = pl.pallas_call(
        kernel,
        grid=(nt,),
        in_specs=[pl.BlockSpec((tile_m, k), lambda i: (i, 0)),
                  pl.BlockSpec((1, k), lambda i: (0, 0)),
                  pl.BlockSpec((1, k), lambda i: (0, 0)),
                  pl.BlockSpec((k, c), lambda i: (0, 0))],
        out_specs=tuple(out_specs),
        out_shape=tuple(out_shape),
        compiler_params=_compiler_params(block_bytes),
    )(z_in, scale, shift, w)
    return (outs[0], outs[1]) if with_stats else (outs[0], None)


def _residual_relu(z3, s3, b3, res, sr, br, *, tile_m):
    m_pad, c = z3.shape
    nt = m_pad // tile_m
    block_bytes = 3 * tile_m * c * 4 + 4 * c * 4
    return pl.pallas_call(
        _residual_relu_kernel,
        grid=(nt,),
        in_specs=[pl.BlockSpec((tile_m, c), lambda i: (i, 0)),
                  pl.BlockSpec((1, c), lambda i: (0, 0)),
                  pl.BlockSpec((1, c), lambda i: (0, 0)),
                  pl.BlockSpec((tile_m, c), lambda i: (i, 0)),
                  pl.BlockSpec((1, c), lambda i: (0, 0)),
                  pl.BlockSpec((1, c), lambda i: (0, 0))],
        out_specs=pl.BlockSpec((tile_m, c), lambda i: (i, 0)),
        out_shape=jax.ShapeDtypeStruct((m_pad, c), jnp.float32),
        compiler_params=_compiler_params(block_bytes),
    )(z3, s3, b3, res, sr, br)


# ---------------------------------------------------------------------------
# parameter preparation + BN scale/shift
# ---------------------------------------------------------------------------
def _prep_w_1x1(w, cin_p, cout_p):
    cout, cin = w.shape[0], w.shape[1]
    w2d = jnp.transpose(w.reshape(cout, cin), (1, 0))
    w2d = jnp.pad(w2d, ((0, cin_p - cin), (0, cout_p - cout)))
    return w2d.astype(jnp.bfloat16)


def _prep_w_3x3(w, cb_p):
    cb = w.shape[0]
    wt = jnp.transpose(w, (2, 3, 1, 0))                       # (3, 3, Cin, Cout)
    wt = jnp.pad(wt, ((0, 0), (0, 0), (0, cb_p - cb), (0, cb_p - cb)))
    return wt.reshape(9 * cb_p, cb_p).astype(jnp.bfloat16)


def _scale_shift(use_bn, stats, m_true, gamma, beta_or_bias, c_p):
    """Fold BN (or conv bias) into one per-channel (scale, shift) pair."""
    b = _pad_vec(beta_or_bias, c_p)
    if use_bn:
        g = _pad_vec(gamma, c_p)                   # padded gammas are 0
        st = stats.reshape(-1, 8, c_p)
        total_sum = jnp.sum(st[:, 0, :], axis=0, keepdims=True)
        total_sq = jnp.sum(st[:, 1, :], axis=0, keepdims=True)
        mean = total_sum / float(m_true)
        var = jnp.maximum(total_sq / float(m_true) - mean * mean, 0.0)
        scale = g * jax.lax.rsqrt(var + _EPS)
        shift = b - mean * scale
    else:
        c = beta_or_bias.shape[-1]
        scale = jnp.pad(jnp.ones((1, c), jnp.float32), ((0, 0), (0, c_p - c)))
        shift = b
    return scale, shift


# ---------------------------------------------------------------------------
# Forward pass
# ---------------------------------------------------------------------------
def resnet_bottleneck_block(x_nchw, params, *, downsample_rate, use_bn,
                            tile_m=512):
    n, cin, h, w = x_nchw.shape
    s = int(downsample_rate)
    cb = params["w1"].shape[0]
    cout = params["w3"].shape[0]
    has_proj = (s > 1) or (cin != cout)
    ho = (h + 2 - 3) // s + 1
    wo = (w + 2 - 3) // s + 1

    cin_p = _round_up(cin, _LANE)
    cb_p = _round_up(cb, _LANE)
    cout_p = _round_up(cout, _LANE)

    m1 = n * h * w
    m2 = n * ho * wo
    target = max(256, _round_up(int(tile_m), 256))
    tm1 = _choose_tile(m1, target)
    tm2 = _choose_tile(m2, target)
    m1_p = _round_up(m1, tm1)
    m2_p = _round_up(m2, tm2)

    x_nhwc = jnp.transpose(x_nchw, (0, 2, 3, 1)).astype(jnp.float32)
    x_flat = x_nhwc.reshape(m1, cin)

    # ---- stage 1: conv1 (1x1) [+ BN1 stats], then affine + ReLU1 ----
    x1 = _pad2d(x_flat.astype(jnp.bfloat16), m1_p, cin_p)
    w1p = _prep_w_1x1(params["w1"], cin_p, cb_p)
    z1, stats1 = _matmul_pass(x1, w1p, tile_m=tm1, with_stats=use_bn)
    scale1, shift1 = _scale_shift(use_bn, stats1, m1, params["g1"],
                                  params["b1"], cb_p)
    y1_flat = _affine_relu(z1, scale1, shift1, tile_m=tm1)          # bf16
    y1 = y1_flat[:m1].reshape(n, h, w, cb_p)

    # ---- stage 2: conv2 (3x3, stride s, pad 1) [+ BN2 stats] ----
    # TODO(synk): replace the XLA-side im2col (9x activation bytes in HBM) with
    # an in-kernel halo gather (pl.ANY input + manual strided make_async_copy).
    y1p = jnp.pad(y1, ((0, 0), (1, 1), (1, 1), (0, 0)))
    cols = []
    for kh in range(3):
        for kw in range(3):
            cols.append(jax.lax.slice(
                y1p,
                (0, kh, kw, 0),
                (n, kh + s * (ho - 1) + 1, kw + s * (wo - 1) + 1, cb_p),
                (1, s, s, 1)))
    patches = jnp.concatenate(cols, axis=-1).reshape(m2, 9 * cb_p)
    patches = jnp.pad(patches, ((0, m2_p - m2), (0, 0)))
    w2p = _prep_w_3x3(params["w2"], cb_p)
    z2, stats2 = _matmul_pass(patches, w2p, tile_m=tm2, with_stats=use_bn)
    scale2, shift2 = _scale_shift(use_bn, stats2, m2, params["g2"],
                                  params["b2"], cb_p)

    # ---- stage 3: fused (BN2 affine + ReLU2) -> conv3 (1x1) [+ BN3 stats] ----
    w3p = _prep_w_1x1(params["w3"], cb_p, cout_p)
    z3, stats3 = _affine_matmul_pass(z2, scale2, shift2, w3p, tile_m=tm2,
                                     m_true=m2, with_stats=use_bn)
    scale3, shift3 = _scale_shift(use_bn, stats3, m2, params["g3"],
                                  params["b3"], cout_p)

    # ---- residual branch ----
    if has_proj:
        xs = x_nhwc[:, ::s, ::s, :].reshape(m2, cin)
        xs_p = _pad2d(xs.astype(jnp.bfloat16), m2_p, cin_p)
        wpp = _prep_w_1x1(params["wp"], cin_p, cout_p)
        zp, statsp = _matmul_pass(xs_p, wpp, tile_m=tm2, with_stats=use_bn)
        scale_r, shift_r = _scale_shift(use_bn, statsp, m2, params["gp"],
                                        params["bp"], cout_p)
        res = zp
    else:
        res = _pad2d(x_flat, m2_p, cout_p)
        scale_r = jnp.ones((1, cout_p), jnp.float32)
        shift_r = jnp.zeros((1, cout_p), jnp.float32)

    # ---- final: BN3 affine + residual (+ its affine) + ReLU3 ----
    out_flat = _residual_relu(z3, scale3, shift3, res, scale_r, shift_r,
                              tile_m=tm2)
    out = out_flat[:m2, :cout].reshape(n, ho, wo, cout)
    return jnp.transpose(out, (0, 3, 1, 2))                         # NCHW


# ---------------------------------------------------------------------------
# Pure-JAX reference (mirrors the PyTorch module in train mode)
# ---------------------------------------------------------------------------
def _reference(x, params, *, downsample_rate, use_bn):
    s = int(downsample_rate)
    cin = x.shape[1]
    cout = params["w3"].shape[0]
    has_proj = (s > 1) or (cin != cout)

    def conv(z, w, stride, padding):
        return jax.lax.conv_general_dilated(
            z, w, (stride, stride), padding,
            dimension_numbers=("NCHW", "OIHW", "NCHW"))

    def bn(z, gamma, beta):
        mean = jnp.mean(z, axis=(0, 2, 3), keepdims=True)
        var = jnp.mean((z - mean) ** 2, axis=(0, 2, 3), keepdims=True)
        g = gamma.reshape(1, -1, 1, 1)
        b = beta.reshape(1, -1, 1, 1)
        return (z - mean) * jax.lax.rsqrt(var + _EPS) * g + b

    def bias(z, b):
        return z + b.reshape(1, -1, 1, 1)

    y = conv(x, params["w1"], 1, [(0, 0), (0, 0)])
    y = bn(y, params["g1"], params["b1"]) if use_bn else bias(y, params["b1"])
    y = jnp.maximum(y, 0.0)
    y = conv(y, params["w2"], s, [(1, 1), (1, 1)])
    y = bn(y, params["g2"], params["b2"]) if use_bn else bias(y, params["b2"])
    y = jnp.maximum(y, 0.0)
    y = conv(y, params["w3"], 1, [(0, 0), (0, 0)])
    y = bn(y, params["g3"], params["b3"]) if use_bn else bias(y, params["b3"])
    if has_proj:
        r = conv(x, params["wp"], s, [(0, 0), (0, 0)])
        r = bn(r, params["gp"], params["bp"]) if use_bn else bias(r, params["bp"])
    else:
        r = x
    return jnp.maximum(y + r, 0.0)


# ---------------------------------------------------------------------------
# Deterministic parameter init (synthetic; shapes follow the nn.Module)
# ---------------------------------------------------------------------------
def init_params(key, cin, cb, cout, downsample_rate, use_bn):
    ks = jax.random.split(key, 12)
    has_proj = (downsample_rate > 1) or (cin != cout)

    def gb(kg, kb, c):
        if use_bn:
            gamma = 1.0 + 0.1 * jax.random.normal(kg, (1, c), jnp.float32)
            beta = 0.1 * jax.random.normal(kb, (1, c), jnp.float32)
        else:
            gamma = jnp.ones((1, c), jnp.float32)                   # unused
            beta = 0.1 * jax.random.normal(kb, (1, c), jnp.float32)  # conv bias
        return gamma, beta

    params = {}
    params["w1"] = 0.2 * jax.random.normal(ks[0], (cb, cin, 1, 1), jnp.float32)
    params["g1"], params["b1"] = gb(ks[1], ks[2], cb)
    params["w2"] = 0.2 * jax.random.normal(ks[3], (cb, cb, 3, 3), jnp.float32)
    params["g2"], params["b2"] = gb(ks[4], ks[5], cb)
    params["w3"] = 0.2 * jax.random.normal(ks[6], (cout, cb, 1, 1), jnp.float32)
    params["g3"], params["b3"] = gb(ks[7], ks[8], cout)
    if has_proj:
        params["wp"] = 0.2 * jax.random.normal(ks[9], (cout, cin, 1, 1),
                                               jnp.float32)
        params["gp"], params["bp"] = gb(ks[10], ks[11], cout)
    return params


if __name__ == "__main__":
    # Mirrors ResnetBottleneckBlock(4, 2, 4, 8, use_bn=True)
    N, CIN, H, W = 2, 4, 16, 16
    CB, COUT, STRIDE = 4, 8, 2
    USE_BN = True

    key = jax.random.PRNGKey(0)
    kx, kp = jax.random.split(key)
    x = jax.random.normal(kx, (N, CIN, H, W), jnp.float32)
    params = init_params(kp, CIN, CB, COUT, STRIDE, USE_BN)

    fwd = jax.jit(functools.partial(resnet_bottleneck_block,
                                    downsample_rate=STRIDE, use_bn=USE_BN))
    out = jax.block_until_ready(fwd(x, params))

    assert out.shape == (N, COUT, H // STRIDE, W // STRIDE), out.shape
    assert out.dtype == jnp.float32
    assert bool(jnp.all(out >= 0.0))                       # final ReLU

    # sanity-check against a pure-JAX reference (bf16 matmuls -> loose tol)
    ref = _reference(x, params, downsample_rate=STRIDE, use_bn=USE_BN)
    max_err = float(jnp.max(jnp.abs(out - ref)))
    assert max_err < 0.2, max_err

    print("KERNEL_OK")
</pallas_src>

<mosaic_0001>
module attributes {stable_mosaic.version = 11 : i64} {
  func.func @_mm_stats_kernel(%arg0: i32, %arg1: memref<512x128xbf16, #tpu.memory_space<vmem>>, %arg2: memref<128x128xbf16, #tpu.memory_space<vmem>>, %arg3: memref<512x128xf32, #tpu.memory_space<vmem>>, %arg4: memref<8x128xf32, #tpu.memory_space<vmem>>) attributes {dimension_semantics = [#tpu.dimension_semantics<parallel>], iteration_bounds = array<i64: 1>, scalar_prefetch = 0 : i64, scratch_operands = 0 : i64, tpu.core_type = #tpu.core_type<tc>, window_params = [{transform_indices = @transform_0, window_bounds = array<i64: 512, 128>}, {pipeline_mode = #tpu.pipeline_mode<synchronous>, transform_indices = @transform_1, window_bounds = array<i64: 128, 128>}, {transform_indices = @transform_2, window_bounds = array<i64: 512, 128>}, {transform_indices = @transform_3, window_bounds = array<i64: 8, 128>}]} {
    %c0 = arith.constant 0 : index
    %c0_0 = arith.constant 0 : index
    %0 = vector.load %arg1[%c0, %c0_0] : memref<512x128xbf16, #tpu.memory_space<vmem>>, vector<512x128xbf16>
    %c0_1 = arith.constant 0 : index
    %c0_2 = arith.constant 0 : index
    %1 = vector.load %arg2[%c0_1, %c0_2] : memref<128x128xbf16, #tpu.memory_space<vmem>>, vector<128x128xbf16>
    %cst = arith.constant dense<0.000000e+00> : vector<512x128xf32>
    %2 = tpu.matmul %0, %1, %cst {dimension_numbers = #tpu.dot_dimension_numbers<[1], [0], [0], [1], [0, 0, 1, 1], [], []>} : vector<512x128xbf16>, vector<128x128xbf16>, vector<512x128xf32> -> vector<512x128xf32>
    %c0_3 = arith.constant 0 : index
    %c0_4 = arith.constant 0 : index
    %3 = vector.load %arg3[%c0_3, %c0_4] : memref<512x128xf32, #tpu.memory_space<vmem>>, vector<512x128xf32>
    tpu.vector_store %arg3[%c0_3, %c0_4], %2 {strides = array<i32>} : memref<512x128xf32, #tpu.memory_space<vmem>>, vector<512x128xf32>,
    %cst_5 = arith.constant dense<0.000000e+00> : vector<128xf32>
    %4 = vector.multi_reduction <add>, %2, %cst_5 [0] : vector<512x128xf32> to vector<128xf32>
    %5 = vector.shape_cast %4 : vector<128xf32> to vector<1x128xf32>
    %6 = arith.mulf %2, %2 : vector<512x128xf32>
    %cst_6 = arith.constant dense<0.000000e+00> : vector<128xf32>
    %7 = vector.multi_reduction <add>, %6, %cst_6 [0] : vector<512x128xf32> to vector<128xf32>
    %8 = vector.shape_cast %7 : vector<128xf32> to vector<1x128xf32>
    %9 = tpu.iota {dimensions = array<i32: 0>} : vector<8x128xi32>
    %c0_i32 = arith.constant 0 : i32
    %10 = vector.broadcast %c0_i32 : i32 to vector<8x128xi32>
    %11 = arith.cmpi eq, %9, %10 : vector<8x128xi32>
    %c1_i32 = arith.constant 1 : i32
    %12 = vector.broadcast %c1_i32 : i32 to vector<8x128xi32>
    %13 = arith.cmpi eq, %9, %12 : vector<8x128xi32>
    %cst_7 = arith.constant 0.000000e+00 : f32
    %14 = vector.shape_cast %8 : vector<1x128xf32> to vector<1x128xf32>
    %15 = vector.broadcast %14 : vector<1x128xf32> to vector<8x128xf32>
    %16 = vector.broadcast %cst_7 : f32 to vector<8x128xf32>
    %17 = arith.select %13, %15, %16 : vector<8x128xi1>, vector<8x128xf32>
    %18 = vector.shape_cast %5 : vector<1x128xf32> to vector<1x128xf32>
    %19 = vector.broadcast %18 : vector<1x128xf32> to vector<8x128xf32>
    %20 = arith.select %11, %19, %17 : vector<8x128xi1>, vector<8x128xf32>
    %c0_8 = arith.constant 0 : index
    %c0_9 = arith.constant 0 : index
    %21 = vector.load %arg4[%c0_8, %c0_9] : memref<8x128xf32, #tpu.memory_space<vmem>>, vector<8x128xf32>
    tpu.vector_store %arg4[%c0_8, %c0_9], %20 {strides = array<i32>} : memref<8x128xf32, #tpu.memory_space<vmem>>, vector<8x128xf32>,
    return
  }
  func.func @transform_0(%arg0: i32) -> (i32, i32) {
    %c0_i32 = arith.constant 0 : i32
    %c0_i32_0 = arith.constant 0 : i32
    return %arg0, %c0_i32 : i32, i32
  }
  func.func @transform_1(%arg0: i32) -> (i32, i32) {
    %c0_i32 = arith.constant 0 : i32
    %c0_i32_0 = arith.constant 0 : i32
    %c0_i32_1 = arith.constant 0 : i32
    return %c0_i32, %c0_i32_0 : i32, i32
  }
  func.func @transform_2(%arg0: i32) -> (i32, i32) {
    %c0_i32 = arith.constant 0 : i32
    %c0_i32_0 = arith.constant 0 : i32
    return %arg0, %c0_i32 : i32, i32
  }
  func.func @transform_3(%arg0: i32) -> (i32, i32) {
    %c0_i32 = arith.constant 0 : i32
    %c0_i32_0 = arith.constant 0 : i32
    return %arg0, %c0_i32 : i32, i32
  }
}

module attributes {stable_mosaic.version = 11 : i64} {
  func.func @_affine_relu_kernel(%arg0: i32, %arg1: memref<512x128xf32, #tpu.memory_space<vmem>>, %arg2: memref<1x128xf32, #tpu.memory_space<vmem>>, %arg3: memref<1x128xf32, #tpu.memory_space<vmem>>, %arg4: memref<512x128xbf16, #tpu.memory_space<vmem>>) attributes {dimension_semantics = [#tpu.dimension_semantics<parallel>], iteration_bounds = array<i64: 1>, scalar_prefetch = 0 : i64, scratch_operands = 0 : i64, tpu.core_type = #tpu.core_type<tc>, window_params = [{transform_indices = @transform_0, window_bounds = array<i64: 512, 128>}, {pipeline_mode = #tpu.pipeline_mode<synchronous>, transform_indices = @transform_1, window_bounds = array<i64: 1, 128>}, {pipeline_mode = #tpu.pipeline_mode<synchronous>, transform_indices = @transform_2, window_bounds = array<i64: 1, 128>}, {transform_indices = @transform_3, window_bounds = array<i64: 512, 128>}]} {
    %c0 = arith.constant 0 : index
    %c0_0 = arith.constant 0 : index
    %0 = vector.load %arg1[%c0, %c0_0] : memref<512x128xf32, #tpu.memory_space<vmem>>, vector<512x128xf32>
    %c0_1 = arith.constant 0 : index
    %c0_2 = arith.constant 0 : index
    %1 = vector.load %arg2[%c0_1, %c0_2] : memref<1x128xf32, #tpu.memory_space<vmem>>, vector<1x128xf32>
    %2 = vector.broadcast %1 : vector<1x128xf32> to vector<512x128xf32>
    %3 = arith.mulf %0, %2 : vector<512x128xf32>
    %c0_3 = arith.constant 0 : index
    %c0_4 = arith.constant 0 : index
    %4 = vector.load %arg3[%c0_3, %c0_4] : memref<1x128xf32, #tpu.memory_space<vmem>>, vector<1x128xf32>
    %5 = vector.broadcast %4 : vector<1x128xf32> to vector<512x128xf32>
    %6 = arith.addf %3, %5 : vector<512x128xf32>
    %cst = arith.constant 0.000000e+00 : f32
    %7 = vector.broadcast %cst : f32 to vector<512x128xf32>
    %8 = arith.maximumf %6, %7 : vector<512x128xf32>
    %9 = arith.truncf %8 : vector<512x128xf32> to vector<512x128xbf16>
    %c0_5 = arith.constant 0 : index
    %c0_6 = arith.constant 0 : index
    %10 = vector.load %arg4[%c0_5, %c0_6] : memref<512x128xbf16, #tpu.memory_space<vmem>>, vector<512x128xbf16>
    tpu.vector_store %arg4[%c0_5, %c0_6], %9 {strides = array<i32>} : memref<512x128xbf16, #tpu.memory_space<vmem>>, vector<512x128xbf16>,
    return
  }
  func.func @transform_0(%arg0: i32) -> (i32, i32) {
    %c0_i32 = arith.constant 0 : i32
    %c0_i32_0 = arith.constant 0 : i32
    return %arg0, %c0_i32 : i32, i32
  }
  func.func @transform_1(%arg0: i32) -> (i32, i32) {
    %c0_i32 = arith.constant 0 : i32
    %c0_i32_0 = arith.constant 0 : i32
    %c0_i32_1 = arith.constant 0 : i32
    return %c0_i32, %c0_i32_0 : i32, i32
  }
  func.func @transform_2(%arg0: i32) -> (i32, i32) {
    %c0_i32 = arith.constant 0 : i32
    %c0_i32_0 = arith.constant 0 : i32
    %c0_i32_1 = arith.constant 0 : i32
    return %c0_i32, %c0_i32_0 : i32, i32
  }
  func.func @transform_3(%arg0: i32) -> (i32, i32) {
    %c0_i32 = arith.constant 0 : i32
    %c0_i32_0 = arith.constant 0 : i32
    return %arg0, %c0_i32 : i32, i32
  }
}

module attributes {stable_mosaic.version = 11 : i64} {
  func.func @_mm_stats_kernel(%arg0: i32, %arg1: memref<256x1152xbf16, #tpu.memory_space<vmem>>, %arg2: memref<1152x128xbf16, #tpu.memory_space<vmem>>, %arg3: memref<256x128xf32, #tpu.memory_space<vmem>>, %arg4: memref<8x128xf32, #tpu.memory_space<vmem>>) attributes {dimension_semantics = [#tpu.dimension_semantics<parallel>], iteration_bounds = array<i64: 1>, scalar_prefetch = 0 : i64, scratch_operands = 0 : i64, tpu.core_type = #tpu.core_type<tc>, window_params = [{transform_indices = @transform_0, window_bounds = array<i64: 256, 1152>}, {pipeline_mode = #tpu.pipeline_mode<synchronous>, transform_indices = @transform_1, window_bounds = array<i64: 1152, 128>}, {transform_indices = @transform_2, window_bounds = array<i64: 256, 128>}, {transform_indices = @transform_3, window_bounds = array<i64: 8, 128>}]} {
    %c0 = arith.constant 0 : index
    %c0_0 = arith.constant 0 : index
    %0 = vector.load %arg1[%c0, %c0_0] : memref<256x1152xbf16, #tpu.memory_space<vmem>>, vector<256x1152xbf16>
    %c0_1 = arith.constant 0 : index
    %c0_2 = arith.constant 0 : index
    %1 = vector.load %arg2[%c0_1, %c0_2] : memref<1152x128xbf16, #tpu.memory_space<vmem>>, vector<1152x128xbf16>
    %cst = arith.constant dense<0.000000e+00> : vector<256x128xf32>
    %2 = tpu.matmul %0, %1, %cst {dimension_numbers = #tpu.dot_dimension_numbers<[1], [0], [0], [1], [0, 0, 1, 1], [], []>} : vector<256x1152xbf16>, vector<1152x128xbf16>, vector<256x128xf32> -> vector<256x128xf32>
    %c0_3 = arith.constant 0 : index
    %c0_4 = arith.constant 0 : index
    %3 = vector.load %arg3[%c0_3, %c0_4] : memref<256x128xf32, #tpu.memory_space<vmem>>, vector<256x128xf32>
    tpu.vector_store %arg3[%c0_3, %c0_4], %2 {strides = array<i32>} : memref<256x128xf32, #tpu.memory_space<vmem>>, vector<256x128xf32>,
    %cst_5 = arith.constant dense<0.000000e+00> : vector<128xf32>
    %4 = vector.multi_reduction <add>, %2, %cst_5 [0] : vector<256x128xf32> to vector<128xf32>
    %5 = vector.shape_cast %4 : vector<128xf32> to vector<1x128xf32>
    %6 = arith.mulf %2, %2 : vector<256x128xf32>
    %cst_6 = arith.constant dense<0.000000e+00> : vector<128xf32>
    %7 = vector.multi_reduction <add>, %6, %cst_6 [0] : vector<256x128xf32> to vector<128xf32>
    %8 = vector.shape_cast %7 : vector<128xf32> to vector<1x128xf32>
    %9 = tpu.iota {dimensions = array<i32: 0>} : vector<8x128xi32>
    %c0_i32 = arith.constant 0 : i32
    %10 = vector.broadcast %c0_i32 : i32 to vector<8x128xi32>
    %11 = arith.cmpi eq, %9, %10 : vector<8x128xi32>
    %c1_i32 = arith.constant 1 : i32
    %12 = vector.broadcast %c1_i32 : i32 to vector<8x128xi32>
    %13 = arith.cmpi eq, %9, %12 : vector<8x128xi32>
    %cst_7 = arith.constant 0.000000e+00 : f32
    %14 = vector.shape_cast %8 : vector<1x128xf32> to vector<1x128xf32>
    %15 = vector.broadcast %14 : vector<1x128xf32> to vector<8x128xf32>
    %16 = vector.broadcast %cst_7 : f32 to vector<8x128xf32>
    %17 = arith.select %13, %15, %16 : vector<8x128xi1>, vector<8x128xf32>
    %18 = vector.shape_cast %5 : vector<1x128xf32> to vector<1x128xf32>
    %19 = vector.broadcast %18 : vector<1x128xf32> to vector<8x128xf32>
    %20 = arith.select %11, %19, %17 : vector<8x128xi1>, vector<8x128xf32>
    %c0_8 = arith.constant 0 : index
    %c0_9 = arith.constant 0 : index
    %21 = vector.load %arg4[%c0_8, %c0_9] : memref<8x128xf32, #tpu.memory_space<vmem>>, vector<8x128xf32>
    tpu.vector_store %arg4[%c0_8, %c0_9], %20 {strides = array<i32>} : memref<8x128xf32, #tpu.memory_space<vmem>>, vector<8x128xf32>,
    return
  }
  func.func @transform_0(%arg0: i32) -> (i32, i32) {
    %c0_i32 = arith.constant 0 : i32
    %c0_i32_0 = arith.constant 0 : i32
    return %arg0, %c0_i32 : i32, i32
  }
  func.func @transform_1(%arg0: i32) -> (i32, i32) {
    %c0_i32 = arith.constant 0 : i32
    %c0_i32_0 = arith.constant 0 : i32
    %c0_i32_1 = arith.constant 0 : i32
    return %c0_i32, %c0_i32_0 : i32, i32
  }
  func.func @transform_2(%arg0: i32) -> (i32, i32) {
    %c0_i32 = arith.constant 0 : i32
    %c0_i32_0 = arith.constant 0 : i32
    return %arg0, %c0_i32 : i32, i32
  }
  func.func @transform_3(%arg0: i32) -> (i32, i32) {
    %c0_i32 = arith.constant 0 : i32
    %c0_i32_0 = arith.constant 0 : i32
    return %arg0, %c0_i32 : i32, i32
  }
}

module attributes {stable_mosaic.version = 11 : i64} {
  func.func @_affine_relu_mm_stats_kernel(%arg0: i32, %arg1: memref<256x128xf32, #tpu.memory_space<vmem>>, %arg2: memref<1x128xf32, #tpu.memory_space<vmem>>, %arg3: memref<1x128xf32, #tpu.memory_space<vmem>>, %arg4: memref<128x128xbf16, #tpu.memory_space<vmem>>, %arg5: memref<256x128xf32, #tpu.memory_space<vmem>>, %arg6: memref<8x128xf32, #tpu.memory_space<vmem>>) attributes {dimension_semantics = [#tpu.dimension_semantics<parallel>], iteration_bounds = array<i64: 1>, scalar_prefetch = 0 : i64, scratch_operands = 0 : i64, tpu.core_type = #tpu.core_type<tc>, window_params = [{transform_indices = @transform_0, window_bounds = array<i64: 256, 128>}, {pipeline_mode = #tpu.pipeline_mode<synchronous>, transform_indices = @transform_1, window_bounds = array<i64: 1, 128>}, {pipeline_mode = #tpu.pipeline_mode<synchronous>, transform_indices = @transform_2, window_bounds = array<i64: 1, 128>}, {pipeline_mode = #tpu.pipeline_mode<synchronous>, transform_indices = @transform_3, window_bounds = array<i64: 128, 128>}, {transform_indices = @transform_4, window_bounds = array<i64: 256, 128>}, {transform_indices = @transform_5, window_bounds = array<i64: 8, 128>}]} {
    %c0 = arith.constant 0 : index
    %c0_0 = arith.constant 0 : index
    %0 = vector.load %arg1[%c0, %c0_0] : memref<256x128xf32, #tpu.memory_space<vmem>>, vector<256x128xf32>
    %c0_1 = arith.constant 0 : index
    %c0_2 = arith.constant 0 : index
    %1 = vector.load %arg2[%c0_1, %c0_2] : memref<1x128xf32, #tpu.memory_space<vmem>>, vector<1x128xf32>
    %2 = vector.broadcast %1 : vector<1x128xf32> to vector<256x128xf32>
    %3 = arith.mulf %0, %2 : vector<256x128xf32>
    %c0_3 = arith.constant 0 : index
    %c0_4 = arith.constant 0 : index
    %4 = vector.load %arg3[%c0_3, %c0_4] : memref<1x128xf32, #tpu.memory_space<vmem>>, vector<1x128xf32>
    %5 = vector.broadcast %4 : vector<1x128xf32> to vector<256x128xf32>
    %6 = arith.addf %3, %5 : vector<256x128xf32>
    %cst = arith.constant 0.000000e+00 : f32
    %7 = vector.broadcast %cst : f32 to vector<256x128xf32>
    %8 = arith.maximumf %6, %7 : vector<256x128xf32>
    %9 = tpu.iota {dimensions = array<i32: 0>} : vector<256x1xi32>
    %c256_i32 = arith.constant 256 : i32
    %10 = arith.muli %arg0, %c256_i32 : i32
    %11 = vector.broadcast %10 : i32 to vector<256x1xi32>
    %12 = arith.addi %9, %11 : vector<256x1xi32>
    %c128_i32 = arith.constant 128 : i32
    %13 = vector.broadcast %c128_i32 : i32 to vector<256x1xi32>
    %14 = arith.cmpi slt, %12, %13 : vector<256x1xi32>
    %cst_5 = arith.constant 0.000000e+00 : f32
    %15 = vector.shape_cast %14 : vector<256x1xi1> to vector<256x1xi1>
    %16 = vector.broadcast %15 : vector<256x1xi1> to vector<256x128xi1>
    %17 = vector.broadcast %cst_5 : f32 to vector<256x128xf32>
    %18 = arith.select %16, %8, %17 : vector<256x128xi1>, vector<256x128xf32>
    %19 = arith.truncf %18 : vector<256x128xf32> to vector<256x128xbf16>
    %c0_6 = arith.constant 0 : index
    %c0_7 = arith.constant 0 : index
    %20 = vector.load %arg4[%c0_6, %c0_7] : memref<128x128xbf16, #tpu.memory_space<vmem>>, vector<128x128xbf16>
    %cst_8 = arith.constant dense<0.000000e+00> : vector<256x128xf32>
    %21 = tpu.matmul %19, %20, %cst_8 {dimension_numbers = #tpu.dot_dimension_numbers<[1], [0], [0], [1], [0, 0, 1, 1], [], []>} : vector<256x128xbf16>, vector<128x128xbf16>, vector<256x128xf32> -> vector<256x128xf32>
    %c0_9 = arith.constant 0 : index
    %c0_10 = arith.constant 0 : index
    %22 = vector.load %arg5[%c0_9, %c0_10] : memref<256x128xf32, #tpu.memory_space<vmem>>, vector<256x128xf32>
    tpu.vector_store %arg5[%c0_9, %c0_10], %21 {strides = array<i32>} : memref<256x128xf32, #tpu.memory_space<vmem>>, vector<256x128xf32>,
    %cst_11 = arith.constant dense<0.000000e+00> : vector<128xf32>
    %23 = vector.multi_reduction <add>, %21, %cst_11 [0] : vector<256x128xf32> to vector<128xf32>
    %24 = vector.shape_cast %23 : vector<128xf32> to vector<1x128xf32>
    %25 = arith.mulf %21, %21 : vector<256x128xf32>
    %cst_12 = arith.constant dense<0.000000e+00> : vector<128xf32>
    %26 = vector.multi_reduction <add>, %25, %cst_12 [0] : vector<256x128xf32> to vector<128xf32>
    %27 = vector.shape_cast %26 : vector<128xf32> to vector<1x128xf32>
    %28 = tpu.iota {dimensions = array<i32: 0>} : vector<8x128xi32>
    %c0_i32 = arith.constant 0 : i32
    %29 = vector.broadcast %c0_i32 : i32 to vector<8x128xi32>
    %30 = arith.cmpi eq, %28, %29 : vector<8x128xi32>
    %c1_i32 = arith.constant 1 : i32
    %31 = vector.broadcast %c1_i32 : i32 to vector<8x128xi32>
    %32 = arith.cmpi eq, %28, %31 : vector<8x128xi32>
    %cst_13 = arith.constant 0.000000e+00 : f32
    %33 = vector.shape_cast %27 : vector<1x128xf32> to vector<1x128xf32>
    %34 = vector.broadcast %33 : vector<1x128xf32> to vector<8x128xf32>
    %35 = vector.broadcast %cst_13 : f32 to vector<8x128xf32>
    %36 = arith.select %32, %34, %35 : vector<8x128xi1>, vector<8x128xf32>
    %37 = vector.shape_cast %24 : vector<1x128xf32> to vector<1x128xf32>
    %38 = vector.broadcast %37 : vector<1x128xf32> to vector<8x128xf32>
    %39 = arith.select %30, %38, %36 : vector<8x128xi1>, vector<8x128xf32>
    %c0_14 = arith.constant 0 : index
    %c0_15 = arith.constant 0 : index
    %40 = vector.load %arg6[%c0_14, %c0_15] : memref<8x128xf32, #tpu.memory_space<vmem>>, vector<8x128xf32>
    tpu.vector_store %arg6[%c0_14, %c0_15], %39 {strides = array<i32>} : memref<8x128xf32, #tpu.memory_space<vmem>>, vector<8x128xf32>,
    return
  }
  func.func @transform_0(%arg0: i32) -> (i32, i32) {
    %c0_i32 = arith.constant 0 : i32
    %c0_i32_0 = arith.constant 0 : i32
    return %arg0, %c0_i32 : i32, i32
  }
  func.func @transform_1(%arg0: i32) -> (i32, i32) {
    %c0_i32 = arith.constant 0 : i32
    %c0_i32_0 = arith.constant 0 : i32
    %c0_i32_1 = arith.constant 0 : i32
    return %c0_i32, %c0_i32_0 : i32, i32
  }
  func.func @transform_2(%arg0: i32) -> (i32, i32) {
    %c0_i32 = arith.constant 0 : i32
    %c0_i32_0 = arith.constant 0 : i32
    %c0_i32_1 = arith.constant 0 : i32
    return %c0_i32, %c0_i32_0 : i32, i32
  }
  func.func @transform_3(%arg0: i32) -> (i32, i32) {
    %c0_i32 = arith.constant 0 : i32
    %c0_i32_0 = arith.constant 0 : i32
    %c0_i32_1 = arith.constant 0 : i32
    return %c0_i32, %c0_i32_0 : i32, i32
  }
  func.func @transform_4(%arg0: i32) -> (i32, i32) {
    %c0_i32 = arith.constant 0 : i32
    %c0_i32_0 = arith.constant 0 : i32
    return %arg0, %c0_i32 : i32, i32
  }
  func.func @transform_5(%arg0: i32) -> (i32, i32) {
    %c0_i32 = arith.constant 0 : i32
    %c0_i32_0 = arith.constant 0 : i32
    return %arg0, %c0_i32 : i32, i32
  }
}

module attributes {stable_mosaic.version = 11 : i64} {
  func.func @_mm_stats_kernel(%arg0: i32, %arg1: memref<256x128xbf16, #tpu.memory_space<vmem>>, %arg2: memref<128x128xbf16, #tpu.memory_space<vmem>>, %arg3: memref<256x128xf32, #tpu.memory_space<vmem>>, %arg4: memref<8x128xf32, #tpu.memory_space<vmem>>) attributes {dimension_semantics = [#tpu.dimension_semantics<parallel>], iteration_bounds = array<i64: 1>, scalar_prefetch = 0 : i64, scratch_operands = 0 : i64, tpu.core_type = #tpu.core_type<tc>, window_params = [{transform_indices = @transform_0, window_bounds = array<i64: 256, 128>}, {pipeline_mode = #tpu.pipeline_mode<synchronous>, transform_indices = @transform_1, window_bounds = array<i64: 128, 128>}, {transform_indices = @transform_2, window_bounds = array<i64: 256, 128>}, {transform_indices = @transform_3, window_bounds = array<i64: 8, 128>}]} {
    %c0 = arith.constant 0 : index
    %c0_0 = arith.constant 0 : index
    %0 = vector.load %arg1[%c0, %c0_0] : memref<256x128xbf16, #tpu.memory_space<vmem>>, vector<256x128xbf16>
    %c0_1 = arith.constant 0 : index
    %c0_2 = arith.constant 0 : index
    %1 = vector.load %arg2[%c0_1, %c0_2] : memref<128x128xbf16, #tpu.memory_space<vmem>>, vector<128x128xbf16>
    %cst = arith.constant dense<0.000000e+00> : vector<256x128xf32>
    %2 = tpu.matmul %0, %1, %cst {dimension_numbers = #tpu.dot_dimension_numbers<[1], [0], [0], [1], [0, 0, 1, 1], [], []>} : vector<256x128xbf16>, vector<128x128xbf16>, vector<256x128xf32> -> vector<256x128xf32>
    %c0_3 = arith.constant 0 : index
    %c0_4 = arith.constant 0 : index
    %3 = vector.load %arg3[%c0_3, %c0_4] : memref<256x128xf32, #tpu.memory_space<vmem>>, vector<256x128xf32>
    tpu.vector_store %arg3[%c0_3, %c0_4], %2 {strides = array<i32>} : memref<256x128xf32, #tpu.memory_space<vmem>>, vector<256x128xf32>,
    %cst_5 = arith.constant dense<0.000000e+00> : vector<128xf32>
    %4 = vector.multi_reduction <add>, %2, %cst_5 [0] : vector<256x128xf32> to vector<128xf32>
    %5 = vector.shape_cast %4 : vector<128xf32> to vector<1x128xf32>
    %6 = arith.mulf %2, %2 : vector<256x128xf32>
    %cst_6 = arith.constant dense<0.000000e+00> : vector<128xf32>
    %7 = vector.multi_reduction <add>, %6, %cst_6 [0] : vector<256x128xf32> to vector<128xf32>
    %8 = vector.shape_cast %7 : vector<128xf32> to vector<1x128xf32>
    %9 = tpu.iota {dimensions = array<i32: 0>} : vector<8x128xi32>
    %c0_i32 = arith.constant 0 : i32
    %10 = vector.broadcast %c0_i32 : i32 to vector<8x128xi32>
    %11 = arith.cmpi eq, %9, %10 : vector<8x128xi32>
    %c1_i32 = arith.constant 1 : i32
    %12 = vector.broadcast %c1_i32 : i32 to vector<8x128xi32>
    %13 = arith.cmpi eq, %9, %12 : vector<8x128xi32>
    %cst_7 = arith.constant 0.000000e+00 : f32
    %14 = vector.shape_cast %8 : vector<1x128xf32> to vector<1x128xf32>
    %15 = vector.broadcast %14 : vector<1x128xf32> to vector<8x128xf32>
    %16 = vector.broadcast %cst_7 : f32 to vector<8x128xf32>
    %17 = arith.select %13, %15, %16 : vector<8x128xi1>, vector<8x128xf32>
    %18 = vector.shape_cast %5 : vector<1x128xf32> to vector<1x128xf32>
    %19 = vector.broadcast %18 : vector<1x128xf32> to vector<8x128xf32>
    %20 = arith.select %11, %19, %17 : vector<8x128xi1>, vector<8x128xf32>
    %c0_8 = arith.constant 0 : index
    %c0_9 = arith.constant 0 : index
    %21 = vector.load %arg4[%c0_8, %c0_9] : memref<8x128xf32, #tpu.memory_space<vmem>>, vector<8x128xf32>
    tpu.vector_store %arg4[%c0_8, %c0_9], %20 {strides = array<i32>} : memref<8x128xf32, #tpu.memory_space<vmem>>, vector<8x128xf32>,
    return
  }
  func.func @transform_0(%arg0: i32) -> (i32, i32) {
    %c0_i32 = arith.constant 0 : i32
    %c0_i32_0 = arith.constant 0 : i32
    return %arg0, %c0_i32 : i32, i32
  }
  func.func @transform_1(%arg0: i32) -> (i32, i32) {
    %c0_i32 = arith.constant 0 : i32
    %c0_i32_0 = arith.constant 0 : i32
    %c0_i32_1 = arith.constant 0 : i32
    return %c0_i32, %c0_i32_0 : i32, i32
  }
  func.func @transform_2(%arg0: i32) -> (i32, i32) {
    %c0_i32 = arith.constant 0 : i32
    %c0_i32_0 = arith.constant 0 : i32
    return %arg0, %c0_i32 : i32, i32
  }
  func.func @transform_3(%arg0: i32) -> (i32, i32) {
    %c0_i32 = arith.constant 0 : i32
    %c0_i32_0 = arith.constant 0 : i32
    return %arg0, %c0_i32 : i32, i32
  }
}

module attributes {stable_mosaic.version = 11 : i64} {
  func.func @_residual_relu_kernel(%arg0: i32, %arg1: memref<256x128xf32, #tpu.memory_space<vmem>>, %arg2: memref<1x128xf32, #tpu.memory_space<vmem>>, %arg3: memref<1x128xf32, #tpu.memory_space<vmem>>, %arg4: memref<256x128xf32, #tpu.memory_space<vmem>>, %arg5: memref<1x128xf32, #tpu.memory_space<vmem>>, %arg6: memref<1x128xf32, #tpu.memory_space<vmem>>, %arg7: memref<256x128xf32, #tpu.memory_space<vmem>>) attributes {dimension_semantics = [#tpu.dimension_semantics<parallel>], iteration_bounds = array<i64: 1>, scalar_prefetch = 0 : i64, scratch_operands = 0 : i64, tpu.core_type = #tpu.core_type<tc>, window_params = [{transform_indices = @transform_0, window_bounds = array<i64: 256, 128>}, {pipeline_mode = #tpu.pipeline_mode<synchronous>, transform_indices = @transform_1, window_bounds = array<i64: 1, 128>}, {pipeline_mode = #tpu.pipeline_mode<synchronous>, transform_indices = @transform_2, window_bounds = array<i64: 1, 128>}, {transform_indices = @transform_3, window_bounds = array<i64: 256, 128>}, {pipeline_mode = #tpu.pipeline_mode<synchronous>, transform_indices = @transform_4, window_bounds = array<i64: 1, 128>}, {pipeline_mode = #tpu.pipeline_mode<synchronous>, transform_indices = @transform_5, window_bounds = array<i64: 1, 128>}, {transform_indices = @transform_6, window_bounds = array<i64: 256, 128>}]} {
    %c0 = arith.constant 0 : index
    %c0_0 = arith.constant 0 : index
    %0 = vector.load %arg1[%c0, %c0_0] : memref<256x128xf32, #tpu.memory_space<vmem>>, vector<256x128xf32>
    %c0_1 = arith.constant 0 : index
    %c0_2 = arith.constant 0 : index
    %1 = vector.load %arg2[%c0_1, %c0_2] : memref<1x128xf32, #tpu.memory_space<vmem>>, vector<1x128xf32>
    %2 = vector.broadcast %1 : vector<1x128xf32> to vector<256x128xf32>
    %3 = arith.mulf %0, %2 : vector<256x128xf32>
    %c0_3 = arith.constant 0 : index
    %c0_4 = arith.constant 0 : index
    %4 = vector.load %arg3[%c0_3, %c0_4] : memref<1x128xf32, #tpu.memory_space<vmem>>, vector<1x128xf32>
    %5 = vector.broadcast %4 : vector<1x128xf32> to vector<256x128xf32>
    %6 = arith.addf %3, %5 : vector<256x128xf32>
    %c0_5 = arith.constant 0 : index
    %c0_6 = arith.constant 0 : index
    %7 = vector.load %arg4[%c0_5, %c0_6] : memref<256x128xf32, #tpu.memory_space<vmem>>, vector<256x128xf32>
    %c0_7 = arith.constant 0 : index
    %c0_8 = arith.constant 0 : index
    %8 = vector.load %arg5[%c0_7, %c0_8] : memref<1x128xf32, #tpu.memory_space<vmem>>, vector<1x128xf32>
    %9 = vector.broadcast %8 : vector<1x128xf32> to vector<256x128xf32>
    %10 = arith.mulf %7, %9 : vector<256x128xf32>
    %c0_9 = arith.constant 0 : index
    %c0_10 = arith.constant 0 : index
    %11 = vector.load %arg6[%c0_9, %c0_10] : memref<1x128xf32, #tpu.memory_space<vmem>>, vector<1x128xf32>
    %12 = vector.broadcast %11 : vector<1x128xf32> to vector<256x128xf32>
    %13 = arith.addf %10, %12 : vector<256x128xf32>
    %14 = arith.addf %6, %13 : vector<256x128xf32>
    %cst = arith.constant 0.000000e+00 : f32
    %15 = vector.broadcast %cst : f32 to vector<256x128xf32>
    %16 = arith.maximumf %14, %15 : vector<256x128xf32>
    %c0_11 = arith.constant 0 : index
    %c0_12 = arith.constant 0 : index
    %17 = vector.load %arg7[%c0_11, %c0_12] : memref<256x128xf32, #tpu.memory_space<vmem>>, vector<256x128xf32>
    tpu.vector_store %arg7[%c0_11, %c0_12], %16 {strides = array<i32>} : memref<256x128xf32, #tpu.memory_space<vmem>>, vector<256x128xf32>,
    return
  }
  func.func @transform_0(%arg0: i32) -> (i32, i32) {
    %c0_i32 = arith.constant 0 : i32
    %c0_i32_0 = arith.constant 0 : i32
    return %arg0, %c0_i32 : i32, i32
  }
  func.func @transform_1(%arg0: i32) -> (i32, i32) {
    %c0_i32 = arith.constant 0 : i32
    %c0_i32_0 = arith.constant 0 : i32
    %c0_i32_1 = arith.constant 0 : i32
    return %c0_i32, %c0_i32_0 : i32, i32
  }
  func.func @transform_2(%arg0: i32) -> (i32, i32) {
    %c0_i32 = arith.constant 0 : i32
    %c0_i32_0 = arith.constant 0 : i32
    %c0_i32_1 = arith.constant 0 : i32
    return %c0_i32, %c0_i32_0 : i32, i32
  }
  func.func @transform_3(%arg0: i32) -> (i32, i32) {
    %c0_i32 = arith.constant 0 : i32
    %c0_i32_0 = arith.constant 0 : i32
    return %arg0, %c0_i32 : i32, i32
  }
  func.func @transform_4(%arg0: i32) -> (i32, i32) {
    %c0_i32 = arith.constant 0 : i32
    %c0_i32_0 = arith.constant 0 : i32
    %c0_i32_1 = arith.constant 0 : i32
    return %c0_i32, %c0_i32_0 : i32, i32
  }
  func.func @transform_5(%arg0: i32) -> (i32, i32) {
    %c0_i32 = arith.constant 0 : i32
    %c0_i32_0 = arith.constant 0 : i32
    %c0_i32_1 = arith.constant 0 : i32
    return %c0_i32, %c0_i32_0 : i32, i32
  }
  func.func @transform_6(%arg0: i32) -> (i32, i32) {
    %c0_i32 = arith.constant 0 : i32
    %c0_i32_0 = arith.constant 0 : i32
    return %arg0, %c0_i32 : i32, i32
  }
}

</mosaic_0001>

<bundles_post_ra>
// kernel: resnet_bottleneck_block.7
= control target key start
LH: loop header
LB: loop body
LE: loop exit
PB: predicated region body
PF: predicated region fallthrough
CT: control target
= control target key end

     0   :  { %s1375_s0 = inlined_call_operand.vmem [shape: f32[512,128], index: 0, kind: input, shape index: {}]   ;;  %s1376_s1 = inlined_call_operand.vmem [shape: f32[1,128], index: 1, kind: input, shape index: {}]   ;;  %s1377_s2 = inlined_call_operand.vmem [shape: f32[1,128], index: 2, kind: input, shape index: {}]   ;;  %s1378_s3 = inlined_call_operand.vmem [shape: bf16[512,128], index: 3, kind: output, shape index: {}]  }
   0x1   :  { %v14_v0 = vld [vmem:[%s1375_s0] sm:$0xff]  ;;  %v15_v1 = vld [vmem:[%s1375_s0 + $0x8] sm:$0xff]  ;;  %v16_v6 = vld [vmem:[%s1375_s0 + $0x10] sm:$0xff] }
   0x2   :  { %v958_v2 = vld [vmem:[%s1376_s1] ss:$0 sm:$0xff]  ;;  %v17_v7 = vld [vmem:[%s1375_s0 + $0x18] sm:$0xff]  ;;  %v19_v11 = vld [vmem:[%s1375_s0 + $0x28] sm:$0xff] }
   0x3   :  { %v85_v3 = vmul.f32 %v958_v2, %v14_v0  ;;  %v86_v4 = vmul.f32 %v958_v2, %v15_v1  ;;  %v965_v5 = vld [vmem:[%s1377_s2] ss:$0 sm:$0xff]  ;;  %v87_v8 = vmul.f32 %v958_v2, %v16_v6  ;;  %v88_v9 = vmul.f32 %v958_v2, %v17_v7  ;;  %v20_v12 = vld [vmem:[%s1375_s0 + $0x30] sm:$0xff]  ;;  %v21_v17 = vld [vmem:[%s1375_s0 + $0x38] sm:$0xff] }
   0x4   :  { %v18_v10 = vld [vmem:[%s1375_s0 + $0x20] sm:$0xff]  ;;  %v90_v16 = vmul.f32 %v958_v2, %v19_v11  ;;  %v91_v20 = vmul.f32 %v958_v2, %v20_v12  ;;  %v92_v21 = vmul.f32 %v958_v2, %v21_v17  ;;  %v23_v27 = vld [vmem:[%s1375_s0 + $0x48] sm:$0xff]  ;;  %v24_v32 = vld [vmem:[%s1375_s0 + $0x50] sm:$0xff] }
   0x5   :  { %v156_v13 = vadd.f32 %v965_v5, %v85_v3  ;;  %v157_v14 = vadd.f32 %v965_v5, %v86_v4  ;;  %v89_v15 = vmul.f32 %v958_v2, %v18_v10  ;;  %v158_v18 = vadd.f32 %v965_v5, %v87_v8  ;;  %v22_v22 = vld [vmem:[%s1375_s0 + $0x40] sm:$0xff]  ;;  %v25_v33 = vld [vmem:[%s1375_s0 + $0x58] sm:$0xff]  ;;  %v27_v39 = vld [vmem:[%s1375_s0 + $0x68] sm:$0xff] }
   0x6   :  { %v159_v19 = vadd.f32 %v965_v5, %v88_v9  ;;  %v161_v26 = vadd.f32 %v965_v5, %v90_v16  ;;  %v162_v30 = vadd.f32 %v965_v5, %v91_v20  ;;  %v163_v31 = vadd.f32 %v965_v5, %v92_v21  ;;  %v26_v38 = vld [vmem:[%s1375_s0 + $0x60] sm:$0xff]  ;;  %v28_v44 = vld [vmem:[%s1375_s0 + $0x70] sm:$0xff]  ;;  %v29_v49 = vld [vmem:[%s1375_s0 + $0x78] sm:$0xff] }
   0x7   :  { %v220_v23 = vmax.f32 %v156_v13, 0.0  ;;  %v221_v24 = vmax.f32 %v157_v14, 0.0  ;;  %v160_v25 = vadd.f32 %v965_v5, %v89_v15  ;;  %v222_v28 = vmax.f32 %v158_v18, 0.0  ;;  %v30_v54 = vld [vmem:[%s1375_s0 + $0x80] sm:$0xff]  ;;  %v31_v63 = vld [vmem:[%s1375_s0 + $0x88] sm:$0xff]  ;;  %v32_v6 = vld [vmem:[%s1375_s0 + $0x90] sm:$0xff] }
   0x8   :  { %v223_v29 = vmax.f32 %v159_v19, 0.0  ;;  %v225_v36 = vmax.f32 %v161_v26, 0.0  ;;  %v93_v37 = vmul.f32 %v958_v2, %v22_v22  ;;  %v226_v41 = vmax.f32 %v162_v30, 0.0  ;;  %v33_v7 = vld [vmem:[%s1375_s0 + $0x98] sm:$0xff]  ;;  %v34_v12 = vld [vmem:[%s1375_s0 + $0xa0] sm:$0xff]  ;;  %v35_v13 = vld [vmem:[%s1375_s0 + $0xa8] sm:$0xff] }
   0x9   :  { %v741_v34 = vpack.c.bf16 %v221_v24, %v220_v23  ;;  %v224_v35 = vmax.f32 %v160_v25, 0.0  ;;  %v227_v42 = vmax.f32 %v163_v31, 0.0  ;;  %v94_v43 = vmul.f32 %v958_v2, %v23_v27  ;;  %v36_v18 = vld [vmem:[%s1375_s0 + $0xb0] sm:$0xff]  ;;  %v37_v23 = vld [vmem:[%s1375_s0 + $0xb8] sm:$0xff] }
   0xa   :  { %v746_v40 = vpack.c.bf16 %v223_v29, %v222_v28  ;;  %v164_v46 = vadd.f32 %v965_v5, %v93_v37  ;;  %v95_v47 = vmul.f32 %v958_v2, %v24_v32  ;;  %v96_v48 = vmul.f32 %v958_v2, %v25_v33  ;;  %v38_v28 = vld [vmem:[%s1375_s0 + $0xc0] sm:$0xff]  ;;  %v39_v37 = vld [vmem:[%s1375_s0 + $0xc8] sm:$0xff] }
   0xb   :  { %742 = vst [vmem:[%s1378_s3] sm:$0xff] %v741_v34   ;;  %v751_v45 = vpack.c.bf16 %v225_v36, %v224_v35  ;;  %v756_v50 = vpack.c.bf16 %v227_v42, %v226_v41  ;;  %v165_v51 = vadd.f32 %v965_v5, %v94_v43  ;;  %v97_v52 = vmul.f32 %v958_v2, %v26_v38  ;;  %v40_v42 = vld [vmem:[%s1375_s0 + $0xd0] sm:$0xff]  ;;  %v41_v43 = vld [vmem:[%s1375_s0 + $0xd8] sm:$0xff] }
   0xc   :  { %898 = vst [vmem:[%s1378_s3 + $0x8] sm:$0xff] %v746_v40   ;;  %v98_v53 = vmul.f32 %v958_v2, %v27_v39  ;;  %v228_v55 = vmax.f32 %v164_v46, 0.0  ;;  %v166_v56 = vadd.f32 %v965_v5, %v95_v47  ;;  %v167_v57 = vadd.f32 %v965_v5, %v96_v48  ;;  %v42_v48 = vld [vmem:[%s1375_s0 + $0xe0] sm:$0xff] }
   0xd   :  { %899 = vst [vmem:[%s1378_s3 + $0x10] sm:$0xff] %v751_v45   ;;  %v99_v58 = vmul.f32 %v958_v2, %v28_v44  ;;  %900 = vst [vmem:[%s1378_s3 + $0x18] sm:$0xff] %v756_v50   ;;  %v229_v59 = vmax.f32 %v165_v51, 0.0  ;;  %v168_v60 = vadd.f32 %v965_v5, %v97_v52  ;;  %v100_v62 = vmul.f32 %v958_v2, %v29_v49  ;;  %v43_v49 = vld [vmem:[%s1375_s0 + $0xe8] sm:$0xff] }
   0xe   :  { %v169_v61 = vadd.f32 %v965_v5, %v98_v53  ;;  %v230_v0 = vmax.f32 %v166_v56, 0.0  ;;  %v231_v1 = vmax.f32 %v167_v57, 0.0  ;;  %v101_v4 = vmul.f32 %v958_v2, %v30_v54  ;;  %v44_v54 = vld [vmem:[%s1375_s0 + $0xf0] sm:$0xff] }
   0xf   :  { %v170_v3 = vadd.f32 %v965_v5, %v99_v58  ;;  %v761_v8 = vpack.c.bf16 %v229_v59, %v228_v55  ;;  %v232_v9 = vmax.f32 %v168_v60, 0.0  ;;  %v171_v11 = vadd.f32 %v965_v5, %v100_v62  ;;  %v45_v59 = vld [vmem:[%s1375_s0 + $0xf8] sm:$0xff] }
  0x10   :  { %v233_v10 = vmax.f32 %v169_v61, 0.0  ;;  %v766_v14 = vpack.c.bf16 %v231_v1, %v230_v0  ;;  %v102_v16 = vmul.f32 %v958_v2, %v31_v63  ;;  %v172_v17 = vadd.f32 %v965_v5, %v101_v4  ;;  %v46_v0 = vld [vmem:[%s1375_s0 + $0x100] sm:$0xff] }
  0x11   :  { %v234_v15 = vmax.f32 %v170_v3, 0.0  ;;  %901 = vst [vmem:[%s1378_s3 + $0x20] sm:$0xff] %v761_v8   ;;  %v235_v20 = vmax.f32 %v171_v11, 0.0  ;;  %v103_v21 = vmul.f32 %v958_v2, %v32_v6  ;;  %v104_v22 = vmul.f32 %v958_v2, %v33_v7  ;;  %v47_v11 = vld [vmem:[%s1375_s0 + $0x108] sm:$0xff] }
  0x12   :  { %v771_v19 = vpack.c.bf16 %v233_v10, %v232_v9  ;;  %902 = vst [vmem:[%s1378_s3 + $0x28] sm:$0xff] %v766_v14   ;;  %v173_v24 = vadd.f32 %v965_v5, %v102_v16  ;;  %v236_v25 = vmax.f32 %v172_v17, 0.0  ;;  %v105_v26 = vmul.f32 %v958_v2, %v34_v12  ;;  %v48_v16 = vld [vmem:[%s1375_s0 + $0x110] sm:$0xff]  ;;  %v49_v17 = vld [vmem:[%s1375_s0 + $0x118] sm:$0xff] }
  0x13   :  { %v106_v27 = vmul.f32 %v958_v2, %v35_v13  ;;  %v776_v29 = vpack.c.bf16 %v235_v20, %v234_v15  ;;  %v174_v30 = vadd.f32 %v965_v5, %v103_v21  ;;  %v175_v31 = vadd.f32 %v965_v5, %v104_v22  ;;  %v50_v22 = vld [vmem:[%s1375_s0 + $0x120] sm:$0xff] }
  0x14   :  { %903 = vst [vmem:[%s1378_s3 + $0x30] sm:$0xff] %v771_v19   ;;  %v107_v32 = vmul.f32 %v958_v2, %v36_v18  ;;  %v237_v33 = vmax.f32 %v173_v24, 0.0  ;;  %v176_v34 = vadd.f32 %v965_v5, %v105_v26  ;;  %v108_v36 = vmul.f32 %v958_v2, %v37_v23  ;;  %v51_v23 = vld [vmem:[%s1375_s0 + $0x128] sm:$0xff] }
  0x15   :  { %v177_v35 = vadd.f32 %v965_v5, %v106_v27  ;;  %904 = vst [vmem:[%s1378_s3 + $0x38] sm:$0xff] %v776_v29   ;;  %v238_v38 = vmax.f32 %v174_v30, 0.0  ;;  %v239_v39 = vmax.f32 %v175_v31, 0.0  ;;  %v109_v41 = vmul.f32 %v958_v2, %v38_v28  ;;  %v52_v28 = vld [vmem:[%s1375_s0 + $0x130] sm:$0xff] }
  0x16   :  { %v178_v40 = vadd.f32 %v965_v5, %v107_v32  ;;  %v781_v44 = vpack.c.bf16 %v237_v33, %v236_v25  ;;  %v240_v45 = vmax.f32 %v176_v34, 0.0  ;;  %v179_v47 = vadd.f32 %v965_v5, %v108_v36  ;;  %v53_v33 = vld [vmem:[%s1375_s0 + $0x138] sm:$0xff] }
  0x17   :  { %v241_v46 = vmax.f32 %v177_v35, 0.0  ;;  %v786_v50 = vpack.c.bf16 %v239_v39, %v238_v38  ;;  %v110_v52 = vmul.f32 %v958_v2, %v39_v37  ;;  %v180_v53 = vadd.f32 %v965_v5, %v109_v41  ;;  %v54_v38 = vld [vmem:[%s1375_s0 + $0x140] sm:$0xff] }
  0x18   :  { %v242_v51 = vmax.f32 %v178_v40, 0.0  ;;  %905 = vst [vmem:[%s1378_s3 + $0x40] sm:$0xff] %v781_v44   ;;  %v243_v56 = vmax.f32 %v179_v47, 0.0  ;;  %v111_v57 = vmul.f32 %v958_v2, %v40_v42  ;;  %v112_v58 = vmul.f32 %v958_v2, %v41_v43  ;;  %v55_v47 = vld [vmem:[%s1375_s0 + $0x148] sm:$0xff] }
  0x19   :  { %v791_v55 = vpack.c.bf16 %v241_v46, %v240_v45  ;;  %906 = vst [vmem:[%s1378_s3 + $0x48] sm:$0xff] %v786_v50   ;;  %v181_v60 = vadd.f32 %v965_v5, %v110_v52  ;;  %v244_v61 = vmax.f32 %v180_v53, 0.0  ;;  %v113_v62 = vmul.f32 %v958_v2, %v42_v48  ;;  %v56_v52 = vld [vmem:[%s1375_s0 + $0x150] sm:$0xff]  ;;  %v57_v53 = vld [vmem:[%s1375_s0 + $0x158] sm:$0xff] }
  0x1a   :  { %v114_v63 = vmul.f32 %v958_v2, %v43_v49  ;;  %v796_v1 = vpack.c.bf16 %v243_v56, %v242_v51  ;;  %v182_v3 = vadd.f32 %v965_v5, %v111_v57  ;;  %v183_v4 = vadd.f32 %v965_v5, %v112_v58  ;;  %v58_v58 = vld [vmem:[%s1375_s0 + $0x160] sm:$0xff] }
  0x1b   :  { %907 = vst [vmem:[%s1378_s3 + $0x50] sm:$0xff] %v791_v55   ;;  %v115_v6 = vmul.f32 %v958_v2, %v44_v54  ;;  %v245_v7 = vmax.f32 %v181_v60, 0.0  ;;  %v184_v8 = vadd.f32 %v965_v5, %v113_v62  ;;  %v116_v10 = vmul.f32 %v958_v2, %v45_v59  ;;  %v59_v59 = vld [vmem:[%s1375_s0 + $0x168] sm:$0xff] }
  0x1c   :  { %v185_v9 = vadd.f32 %v965_v5, %v114_v63  ;;  %908 = vst [vmem:[%s1378_s3 + $0x58] sm:$0xff] %v796_v1   ;;  %v246_v12 = vmax.f32 %v182_v3, 0.0  ;;  %v247_v13 = vmax.f32 %v183_v4, 0.0  ;;  %v117_v15 = vmul.f32 %v958_v2, %v46_v0  ;;  %v60_v0 = vld [vmem:[%s1375_s0 + $0x170] sm:$0xff] }
  0x1d   :  { %v186_v14 = vadd.f32 %v965_v5, %v115_v6  ;;  %v801_v18 = vpack.c.bf16 %v245_v7, %v244_v61  ;;  %v248_v19 = vmax.f32 %v184_v8, 0.0  ;;  %v187_v21 = vadd.f32 %v965_v5, %v116_v10  ;;  %v61_v7 = vld [vmem:[%s1375_s0 + $0x178] sm:$0xff] }
  0x1e   :  { %v249_v20 = vmax.f32 %v185_v9, 0.0  ;;  %v806_v24 = vpack.c.bf16 %v247_v13, %v246_v12  ;;  %v118_v26 = vmul.f32 %v958_v2, %v47_v11  ;;  %v188_v27 = vadd.f32 %v965_v5, %v117_v15  ;;  %v62_v12 = vld [vmem:[%s1375_s0 + $0x180] sm:$0xff] }
  0x1f   :  { %v250_v25 = vmax.f32 %v186_v14, 0.0  ;;  %909 = vst [vmem:[%s1378_s3 + $0x60] sm:$0xff] %v801_v18   ;;  %v251_v30 = vmax.f32 %v187_v21, 0.0  ;;  %v119_v31 = vmul.f32 %v958_v2, %v48_v16  ;;  %v120_v32 = vmul.f32 %v958_v2, %v49_v17  ;;  %v63_v21 = vld [vmem:[%s1375_s0 + $0x188] sm:$0xff] }
  0x20   :  { %v811_v29 = vpack.c.bf16 %v249_v20, %v248_v19  ;;  %910 = vst [vmem:[%s1378_s3 + $0x68] sm:$0xff] %v806_v24   ;;  %v189_v34 = vadd.f32 %v965_v5, %v118_v26  ;;  %v252_v35 = vmax.f32 %v188_v27, 0.0  ;;  %v121_v36 = vmul.f32 %v958_v2, %v50_v22  ;;  %v64_v26 = vld [vmem:[%s1375_s0 + $0x190] sm:$0xff]  ;;  %v65_v27 = vld [vmem:[%s1375_s0 + $0x198] sm:$0xff] }
  0x21   :  { %v122_v37 = vmul.f32 %v958_v2, %v51_v23  ;;  %v816_v39 = vpack.c.bf16 %v251_v30, %v250_v25  ;;  %v190_v40 = vadd.f32 %v965_v5, %v119_v31  ;;  %v191_v41 = vadd.f32 %v965_v5, %v120_v32  ;;  %v66_v32 = vld [vmem:[%s1375_s0 + $0x1a0] sm:$0xff] }
  0x22   :  { %911 = vst [vmem:[%s1378_s3 + $0x70] sm:$0xff] %v811_v29   ;;  %v123_v42 = vmul.f32 %v958_v2, %v52_v28  ;;  %v253_v43 = vmax.f32 %v189_v34, 0.0  ;;  %v192_v44 = vadd.f32 %v965_v5, %v121_v36  ;;  %v124_v46 = vmul.f32 %v958_v2, %v53_v33  ;;  %v67_v33 = vld [vmem:[%s1375_s0 + $0x1a8] sm:$0xff] }
  0x23   :  { %v193_v45 = vadd.f32 %v965_v5, %v122_v37  ;;  %912 = vst [vmem:[%s1378_s3 + $0x78] sm:$0xff] %v816_v39   ;;  %v254_v48 = vmax.f32 %v190_v40, 0.0  ;;  %v255_v49 = vmax.f32 %v191_v41, 0.0  ;;  %v125_v51 = vmul.f32 %v958_v2, %v54_v38  ;;  %v68_v38 = vld [vmem:[%s1375_s0 + $0x1b0] sm:$0xff] }
  0x24   :  { %v194_v50 = vadd.f32 %v965_v5, %v123_v42  ;;  %v821_v54 = vpack.c.bf16 %v253_v43, %v252_v35  ;;  %v256_v55 = vmax.f32 %v192_v44, 0.0  ;;  %v195_v57 = vadd.f32 %v965_v5, %v124_v46  ;;  %v69_v43 = vld [vmem:[%s1375_s0 + $0x1b8] sm:$0xff] }
  0x25   :  { %v257_v56 = vmax.f32 %v193_v45, 0.0  ;;  %v826_v60 = vpack.c.bf16 %v255_v49, %v254_v48  ;;  %v126_v62 = vmul.f32 %v958_v2, %v55_v47  ;;  %v196_v63 = vadd.f32 %v965_v5, %v125_v51  ;;  %v70_v48 = vld [vmem:[%s1375_s0 + $0x1c0] sm:$0xff] }
  0x26   :  { %v258_v61 = vmax.f32 %v194_v50, 0.0  ;;  %913 = vst [vmem:[%s1378_s3 + $0x80] sm:$0xff] %v821_v54   ;;  %v259_v3 = vmax.f32 %v195_v57, 0.0  ;;  %v127_v4 = vmul.f32 %v958_v2, %v56_v52  ;;  %v128_v6 = vmul.f32 %v958_v2, %v57_v53  ;;  %v71_v57 = vld [vmem:[%s1375_s0 + $0x1c8] sm:$0xff] }
  0x27   :  { %v831_v1 = vpack.c.bf16 %v257_v56, %v256_v55  ;;  %914 = vst [vmem:[%s1378_s3 + $0x88] sm:$0xff] %v826_v60   ;;  %v197_v8 = vadd.f32 %v965_v5, %v126_v62  ;;  %v260_v9 = vmax.f32 %v196_v63, 0.0  ;;  %v129_v10 = vmul.f32 %v958_v2, %v58_v58  ;;  %v72_v62 = vld [vmem:[%s1375_s0 + $0x1d0] sm:$0xff]  ;;  %v73_v63 = vld [vmem:[%s1375_s0 + $0x1d8] sm:$0xff] }
  0x28   :  { %v130_v11 = vmul.f32 %v958_v2, %v59_v59  ;;  %v836_v13 = vpack.c.bf16 %v259_v3, %v258_v61  ;;  %v198_v14 = vadd.f32 %v965_v5, %v127_v4  ;;  %v199_v15 = vadd.f32 %v965_v5, %v128_v6  ;;  %v74_v6 = vld [vmem:[%s1375_s0 + $0x1e0] sm:$0xff] }
  0x29   :  { %915 = vst [vmem:[%s1378_s3 + $0x90] sm:$0xff] %v831_v1   ;;  %v131_v16 = vmul.f32 %v958_v2, %v60_v0  ;;  %v261_v17 = vmax.f32 %v197_v8, 0.0  ;;  %v200_v18 = vadd.f32 %v965_v5, %v129_v10  ;;  %v132_v20 = vmul.f32 %v958_v2, %v61_v7  ;;  %v75_v7 = vld [vmem:[%s1375_s0 + $0x1e8] sm:$0xff] }
  0x2a   :  { %v201_v19 = vadd.f32 %v965_v5, %v130_v11  ;;  %916 = vst [vmem:[%s1378_s3 + $0x98] sm:$0xff] %v836_v13   ;;  %v262_v22 = vmax.f32 %v198_v14, 0.0  ;;  %v263_v23 = vmax.f32 %v199_v15, 0.0  ;;  %v133_v25 = vmul.f32 %v958_v2, %v62_v12  ;;  %v76_v12 = vld [vmem:[%s1375_s0 + $0x1f0] sm:$0xff] }
  0x2b   :  { %v202_v24 = vadd.f32 %v965_v5, %v131_v16  ;;  %v841_v28 = vpack.c.bf16 %v261_v17, %v260_v9  ;;  %v264_v29 = vmax.f32 %v200_v18, 0.0  ;;  %v203_v31 = vadd.f32 %v965_v5, %v132_v20  ;;  %v77_v17 = vld [vmem:[%s1375_s0 + $0x1f8] sm:$0xff] }
  0x2c   :  { %v265_v30 = vmax.f32 %v201_v19, 0.0  ;;  %v846_v34 = vpack.c.bf16 %v263_v23, %v262_v22  ;;  %v134_v36 = vmul.f32 %v958_v2, %v63_v21  ;;  %v204_v37 = vadd.f32 %v965_v5, %v133_v25 }
  0x2d   :  { %v266_v35 = vmax.f32 %v202_v24, 0.0  ;;  %917 = vst [vmem:[%s1378_s3 + $0xa0] sm:$0xff] %v841_v28   ;;  %v267_v40 = vmax.f32 %v203_v31, 0.0  ;;  %v135_v41 = vmul.f32 %v958_v2, %v64_v26  ;;  %v136_v42 = vmul.f32 %v958_v2, %v65_v27 }
  0x2e   :  { %v851_v39 = vpack.c.bf16 %v265_v30, %v264_v29  ;;  %918 = vst [vmem:[%s1378_s3 + $0xa8] sm:$0xff] %v846_v34   ;;  %v205_v44 = vadd.f32 %v965_v5, %v134_v36  ;;  %v268_v45 = vmax.f32 %v204_v37, 0.0  ;;  %v137_v46 = vmul.f32 %v958_v2, %v66_v32 }
  0x2f   :  { %v138_v47 = vmul.f32 %v958_v2, %v67_v33  ;;  %v856_v49 = vpack.c.bf16 %v267_v40, %v266_v35  ;;  %v206_v50 = vadd.f32 %v965_v5, %v135_v41  ;;  %v207_v51 = vadd.f32 %v965_v5, %v136_v42 }
  0x30   :  { %919 = vst [vmem:[%s1378_s3 + $0xb0] sm:$0xff] %v851_v39   ;;  %v139_v52 = vmul.f32 %v958_v2, %v68_v38  ;;  %v269_v53 = vmax.f32 %v205_v44, 0.0  ;;  %v208_v54 = vadd.f32 %v965_v5, %v137_v46  ;;  %v140_v56 = vmul.f32 %v958_v2, %v69_v43 }
  0x31   :  { %v209_v55 = vadd.f32 %v965_v5, %v138_v47  ;;  %920 = vst [vmem:[%s1378_s3 + $0xb8] sm:$0xff] %v856_v49   ;;  %v270_v58 = vmax.f32 %v206_v50, 0.0  ;;  %v271_v59 = vmax.f32 %v207_v51, 0.0  ;;  %v141_v61 = vmul.f32 %v958_v2, %v70_v48 }
  0x32   :  { %v210_v60 = vadd.f32 %v965_v5, %v139_v52  ;;  %v861_v0 = vpack.c.bf16 %v269_v53, %v268_v45  ;;  %v272_v1 = vmax.f32 %v208_v54, 0.0  ;;  %v211_v4 = vadd.f32 %v965_v5, %v140_v56 }
  0x33   :  { %v273_v3 = vmax.f32 %v209_v55, 0.0  ;;  %v866_v8 = vpack.c.bf16 %v271_v59, %v270_v58  ;;  %v142_v10 = vmul.f32 %v958_v2, %v71_v57  ;;  %v212_v11 = vadd.f32 %v965_v5, %v141_v61 }
  0x34   :  { %v274_v9 = vmax.f32 %v210_v60, 0.0  ;;  %921 = vst [vmem:[%s1378_s3 + $0xc0] sm:$0xff] %v861_v0   ;;  %v275_v14 = vmax.f32 %v211_v4, 0.0  ;;  %v143_v15 = vmul.f32 %v958_v2, %v72_v62  ;;  %v144_v16 = vmul.f32 %v958_v2, %v73_v63 }
  0x35   :  { %v871_v13 = vpack.c.bf16 %v273_v3, %v272_v1  ;;  %922 = vst [vmem:[%s1378_s3 + $0xc8] sm:$0xff] %v866_v8   ;;  %v213_v18 = vadd.f32 %v965_v5, %v142_v10  ;;  %v276_v19 = vmax.f32 %v212_v11, 0.0  ;;  %v145_v20 = vmul.f32 %v958_v2, %v74_v6 }
  0x36   :  { %v146_v21 = vmul.f32 %v958_v2, %v75_v7  ;;  %v876_v22 = vpack.c.bf16 %v275_v14, %v274_v9  ;;  %v214_v23 = vadd.f32 %v965_v5, %v143_v15  ;;  %v215_v24 = vadd.f32 %v965_v5, %v144_v16 }
  0x37   :  { %923 = vst [vmem:[%s1378_s3 + $0xd0] sm:$0xff] %v871_v13   ;;  %v147_v25 = vmul.f32 %v958_v2, %v76_v12  ;;  %v277_v26 = vmax.f32 %v213_v18, 0.0  ;;  %v216_v27 = vadd.f32 %v965_v5, %v145_v20  ;;  %v148_v29 = vmul.f32 %v958_v2, %v77_v17 }
  0x38   :  { %v217_v28 = vadd.f32 %v965_v5, %v146_v21  ;;  %924 = vst [vmem:[%s1378_s3 + $0xd8] sm:$0xff] %v876_v22   ;;  %v278_v30 = vmax.f32 %v214_v23, 0.0  ;;  %v279_v31 = vmax.f32 %v215_v24, 0.0 }
  0x39   :  { %v218_v32 = vadd.f32 %v965_v5, %v147_v25  ;;  %v881_v33 = vpack.c.bf16 %v277_v26, %v276_v19  ;;  %v280_v34 = vmax.f32 %v216_v27, 0.0  ;;  %v219_v36 = vadd.f32 %v965_v5, %v148_v29 }
  0x3a   :  { %v281_v35 = vmax.f32 %v217_v28, 0.0  ;;  %v886_v37 = vpack.c.bf16 %v279_v31, %v278_v30 }
  0x3b   :  { %v282_v38 = vmax.f32 %v218_v32, 0.0  ;;  %925 = vst [vmem:[%s1378_s3 + $0xe0] sm:$0xff] %v881_v33   ;;  %v283_v39 = vmax.f32 %v219_v36, 0.0 }
  0x3c   :  { %v891_v2 = vpack.c.bf16 %v281_v35, %v280_v34  ;;  %926 = vst [vmem:[%s1378_s3 + $0xe8] sm:$0xff] %v886_v37  }
  0x3d   :  { %v896_v40 = vpack.c.bf16 %v283_v39, %v282_v38 }
  0x3e   :  { %927 = vst [vmem:[%s1378_s3 + $0xf0] sm:$0xff] %v891_v2  }
  0x3f   :  { %928 = vst [vmem:[%s1378_s3 + $0xf8] sm:$0xff] %v896_v40  }

// kernel: resnet_bottleneck_block.6
= control target key start
LH: loop header
LB: loop body
LE: loop exit
PB: predicated region body
PF: predicated region fallthrough
CT: control target
= control target key end

     0   :  { %s1647_s1 = inlined_call_operand.vmem [shape: bf16[128,128], index: 1, kind: input, shape index: {}]   ;;  %s1648_s0 = inlined_call_operand.vmem [shape: bf16[512,128], index: 0, kind: input, shape index: {}]   ;;  %s1649_s2 = inlined_call_operand.vmem [shape: f32[512,128], index: 2, kind: output, shape index: {0}]   ;;  %s1650_s3 = inlined_call_operand.vmem [shape: f32[8,128], index: 3, kind: output, shape index: {1}]  }
   0x1   :  { %v1080_v0 = vld [vmem:[%s1647_s1 + $0x38] sm:$0xff]   ;;  %v1081_v1 = vld [vmem:[%s1647_s1 + $0x30] sm:$0xff]   ;;  %v1082_v2 = vld [vmem:[%s1647_s1 + $0x28] sm:$0xff]  }
   0x2   :  { %984 = vmatprep.subr.bf16.mxu0 %v1080_v0  ;;  %1064 = vmatprep.subr.bf16.mxu1 %v1080_v0  ;;  %v1083_v3 = vld [vmem:[%s1647_s1 + $0x20] sm:$0xff]   ;;  %v1084_v5 = vld [vmem:[%s1647_s1 + $0x18] sm:$0xff]   ;;  %v1085_v6 = vld [vmem:[%s1647_s1 + $0x10] sm:$0xff]  }
   0x3   :  { %985 = vmatpush3.bf16.msra.mxu0 %v1080_v0  ;;  %1072 = vmatpush3.bf16.msra.mxu1 %v1080_v0  ;;  %v1088_v4 = vld [vmem:[%s1648_s0] sm:$0xff]   ;;  %v1086_v7 = vld [vmem:[%s1647_s1 + $0x8] sm:$0xff]   ;;  %v1090_v11 = vld [vmem:[%s1648_s0 + $0x10] sm:$0xff]  }
   0x4   :  { %986 = vmatprep.subr.bf16.mxu0 %v1081_v1  ;;  %1065 = vmatprep.subr.bf16.mxu1 %v1081_v1  ;;  %v1087_v8 = vld [vmem:[%s1647_s1] sm:$0xff]   ;;  %v1089_v10 = vld [vmem:[%s1648_s0 + $0x8] sm:$0xff]   ;;  %v1106_v13 = vld [vmem:[%s1648_s0 + $0x90] sm:$0xff]  }
   0x5   :  { %1000 = vmatprep.mubr.bf16.mxu0 %v1088_v4  ;;  %v1104_v9 = vld [vmem:[%s1648_s0 + $0x80] sm:$0xff]   ;;  %v1105_v12 = vld [vmem:[%s1648_s0 + $0x88] sm:$0xff]   ;;  %v1091_v14 = vld [vmem:[%s1648_s0 + $0x18] sm:$0xff]  }
   0x6   :  { %1032 = vmatprep.mubr.bf16.mxu1 %v1104_v9  ;;  %v1092_v15 = vld [vmem:[%s1648_s0 + $0x20] sm:$0xff]   ;;  %v1107_v16 = vld [vmem:[%s1648_s0 + $0x98] sm:$0xff]   ;;  %v1093_v18 = vld [vmem:[%s1648_s0 + $0x28] sm:$0xff]  }
   0x7   :  { %987 = vmatpush3.bf16.msra.mxu0 %v1081_v1  ;;  %1073 = vmatpush3.bf16.msra.mxu1 %v1081_v1  ;;  %v1108_v17 = vld [vmem:[%s1648_s0 + $0xa0] sm:$0xff]   ;;  %v1109_v19 = vld [vmem:[%s1648_s0 + $0xa8] sm:$0xff]   ;;  %v1094_v20 = vld [vmem:[%s1648_s0 + $0x30] sm:$0xff]  }
   0x8   :  { %988 = vmatprep.subr.bf16.mxu0 %v1082_v2  ;;  %1066 = vmatprep.subr.bf16.mxu1 %v1082_v2  ;;  %v1110_v21 = vld [vmem:[%s1648_s0 + $0xb0] sm:$0xff]   ;;  %v1095_v22 = vld [vmem:[%s1648_s0 + $0x38] sm:$0xff]   ;;  %v1096_v24 = vld [vmem:[%s1648_s0 + $0x40] sm:$0xff]  }
   0x9   :  { %v1111_v23 = vld [vmem:[%s1648_s0 + $0xb8] sm:$0xff]   ;;  %v1112_v25 = vld [vmem:[%s1648_s0 + $0xc0] sm:$0xff]   ;;  %v1097_v26 = vld [vmem:[%s1648_s0 + $0x48] sm:$0xff]  }
   0xa   :  { %v1113_v27 = vld [vmem:[%s1648_s0 + $0xc8] sm:$0xff]   ;;  %v1098_v28 = vld [vmem:[%s1648_s0 + $0x50] sm:$0xff]   ;;  %v1099_v30 = vld [vmem:[%s1648_s0 + $0x58] sm:$0xff]  }
   0xb   :  { %989 = vmatpush3.bf16.msra.mxu0 %v1082_v2  ;;  %1074 = vmatpush3.bf16.msra.mxu1 %v1082_v2  ;;  %v1114_v29 = vld [vmem:[%s1648_s0 + $0xd0] sm:$0xff]   ;;  %v1115_v31 = vld [vmem:[%s1648_s0 + $0xd8] sm:$0xff]   ;;  %v1100_v32 = vld [vmem:[%s1648_s0 + $0x60] sm:$0xff]  }
   0xc   :  { %990 = vmatprep.subr.bf16.mxu0 %v1083_v3  ;;  %1067 = vmatprep.subr.bf16.mxu1 %v1083_v3  ;;  %v1116_v33 = vld [vmem:[%s1648_s0 + $0xe0] sm:$0xff]   ;;  %v1101_v34 = vld [vmem:[%s1648_s0 + $0x68] sm:$0xff]   ;;  %v1102_v36 = vld [vmem:[%s1648_s0 + $0x70] sm:$0xff]  }
   0xd   :  { %v1117_v35 = vld [vmem:[%s1648_s0 + $0xe8] sm:$0xff]   ;;  %v1118_v37 = vld [vmem:[%s1648_s0 + $0xf0] sm:$0xff]   ;;  %v1103_v38 = vld [vmem:[%s1648_s0 + $0x78] sm:$0xff]  }
   0xe   :  { %v1119_v39 = vld [vmem:[%s1648_s0 + $0xf8] sm:$0xff]  }
   0xf   :  { %991 = vmatpush3.bf16.msra.mxu0 %v1083_v3  ;;  %1075 = vmatpush3.bf16.msra.mxu1 %v1083_v3 }
  0x10   :  { %992 = vmatprep.subr.bf16.mxu0 %v1084_v5  ;;  %1068 = vmatprep.subr.bf16.mxu1 %v1084_v5 }
  0x13   :  { %993 = vmatpush3.bf16.msra.mxu0 %v1084_v5  ;;  %1076 = vmatpush3.bf16.msra.mxu1 %v1084_v5 }
  0x14   :  { %994 = vmatprep.subr.bf16.mxu0 %v1085_v6  ;;  %1069 = vmatprep.subr.bf16.mxu1 %v1085_v6 }
  0x17   :  { %995 = vmatpush3.bf16.msra.mxu0 %v1085_v6  ;;  %1077 = vmatpush3.bf16.msra.mxu1 %v1085_v6 }
  0x18   :  { %996 = vmatprep.subr.bf16.mxu0 %v1086_v7  ;;  %1070 = vmatprep.subr.bf16.mxu1 %v1086_v7 }
  0x1b   :  { %997 = vmatpush3.bf16.msra.mxu0 %v1086_v7  ;;  %1078 = vmatpush3.bf16.msra.mxu1 %v1086_v7 }
  0x1c   :  { %998 = vmatprep.subr.bf16.mxu0 %v1087_v8  ;;  %1071 = vmatprep.subr.bf16.mxu1 %v1087_v8 }
  0x1f   :  { %999 = vmatpush3.bf16.msra.mxu0 %v1087_v8  ;;  %1079 = vmatpush3.bf16.msra.mxu1 %v1087_v8 }
  0x22   :  { %1001 = vmatmul.mubr.bf16.vlgmr.msra.gmra.mxu0 %v1089_v10  ;;  %1033 = vmatmul.mubr.bf16.vlgmr.msra.gmra.mxu1 %v1105_v12 }
  0x23   :  { %1004 = vmatprep.mubr.bf16.mxu0 %v1090_v11  ;;  %1036 = vmatprep.mubr.bf16.mxu1 %v1106_v13 }
  0x2a   :  { %1005 = vmatmul.mubr.bf16.gmra.mxu0 %v1091_v14  ;;  %1037 = vmatmul.mubr.bf16.gmra.mxu1 %v1107_v16 }
  0x2b   :  { %1008 = vmatprep.mubr.bf16.mxu0 %v1092_v15  ;;  %1040 = vmatprep.mubr.bf16.mxu1 %v1108_v17 }
  0x32   :  { %1009 = vmatmul.mubr.bf16.gmra.mxu0 %v1093_v18  ;;  %1041 = vmatmul.mubr.bf16.gmra.mxu1 %v1109_v19 }
  0x33   :  { %1012 = vmatprep.mubr.bf16.mxu0 %v1094_v20  ;;  %1044 = vmatprep.mubr.bf16.mxu1 %v1110_v21 }
  0x3a   :  { %1013 = vmatmul.mubr.bf16.gmra.mxu0 %v1095_v22  ;;  %1045 = vmatmul.mubr.bf16.gmra.mxu1 %v1111_v23 }
  0x3b   :  { %1016 = vmatprep.mubr.bf16.mxu0 %v1096_v24  ;;  %1048 = vmatprep.mubr.bf16.mxu1 %v1112_v25 }
  0x42   :  { %1017 = vmatmul.mubr.bf16.gmra.mxu0 %v1097_v26  ;;  %1049 = vmatmul.mubr.bf16.gmra.mxu1 %v1113_v27 }
  0x43   :  { %1020 = vmatprep.mubr.bf16.mxu0 %v1098_v28  ;;  %1052 = vmatprep.mubr.bf16.mxu1 %v1114_v29 }
  0x4a   :  { %1021 = vmatmul.mubr.bf16.gmra.mxu0 %v1099_v30  ;;  %1053 = vmatmul.mubr.bf16.gmra.mxu1 %v1115_v31 }
  0x4b   :  { %1024 = vmatprep.mubr.bf16.mxu0 %v1100_v32  ;;  %1056 = vmatprep.mubr.bf16.mxu1 %v1116_v33 }
  0x52   :  { %1025 = vmatmul.mubr.bf16.gmra.mxu0 %v1101_v34  ;;  %1057 = vmatmul.mubr.bf16.gmra.mxu1 %v1117_v35 }
  0x53   :  { %1028 = vmatprep.mubr.bf16.mxu0 %v1102_v36  ;;  %1060 = vmatprep.mubr.bf16.mxu1 %v1118_v37 }
  0x5a   :  { %1029 = vmatmul.mubr.bf16.gmra.mxu0 %v1103_v38  ;;  %1061 = vmatmul.mubr.bf16.gmra.mxu1 %v1119_v39 }
  0xe2   :  { %v1002_v40 = vpop.f32.mrf.mxu0  ;;  %v1260_v41 = vpop.f32.mrf.mxu1 }
  0xe3   :  { %625 = vst [vmem:[%s1649_s2 + $0x10] sm:$0xff] %v1002_v40  ;;  %657 = vst [vmem:[%s1649_s2 + $0x110] sm:$0xff] %v1260_v41  ;;  %v758_v53 = vmul.f32 %v1002_v40, %v1002_v40 }
  0xe4   :  { %v368_v42 = vpop.f32.mrf.mxu0  ;;  %v1269_v43 = vpop.f32.mrf.mxu1 }
  0xe5   :  { %623 = vst [vmem:[%s1649_s2] sm:$0xff] %v368_v42  ;;  %655 = vst [vmem:[%s1649_s2 + $0x100] sm:$0xff] %v1269_v43  ;;  %v756_v48 = vmul.f32 %v368_v42, %v368_v42 }
  0xe6   :  { %v1003_v44 = vpop.f32.mrf.mxu0  ;;  %v1278_v45 = vpop.f32.mrf.mxu1 }
  0xe7   :  { %626 = vst [vmem:[%s1649_s2 + $0x18] sm:$0xff] %v1003_v44  ;;  %658 = vst [vmem:[%s1649_s2 + $0x118] sm:$0xff] %v1278_v45  ;;  %v759_v58 = vmul.f32 %v1003_v44, %v1003_v44 }
  0xe8   :  { %v371_v46 = vpop.f32.mrf.mxu0  ;;  %v1287_v47 = vpop.f32.mrf.mxu1 }
  0xe9   :  { %624 = vst [vmem:[%s1649_s2 + $0x8] sm:$0xff] %v371_v46  ;;  %v687_v49 = vadd.f32 %v371_v46, %v368_v42  ;;  %v757_v50 = vmul.f32 %v371_v46, %v371_v46  ;;  %656 = vst [vmem:[%s1649_s2 + $0x108] sm:$0xff] %v1287_v47 }
  0xea   :  { %v1006_v51 = vpop.f32.mrf.mxu0  ;;  %v1296_v52 = vpop.f32.mrf.mxu1 }
  0xeb   :  { %v688_v54 = vadd.f32 %v1002_v40, %v687_v49  ;;  %v820_v55 = vadd.f32 %v757_v50, %v756_v48  ;;  %629 = vst [vmem:[%s1649_s2 + $0x30] sm:$0xff] %v1006_v51  ;;  %661 = vst [vmem:[%s1649_s2 + $0x130] sm:$0xff] %v1296_v52  ;;  %v762_v9 = vmul.f32 %v1006_v51, %v1006_v51 }
  0xec   :  { %v384_v56 = vpop.f32.mrf.mxu0  ;;  %v1305_v57 = vpop.f32.mrf.mxu1 }
  0xed   :  { %v821_v59 = vadd.f32 %v820_v55, %v758_v53  ;;  %627 = vst [vmem:[%s1649_s2 + $0x20] sm:$0xff] %v384_v56  ;;  %v689_v60 = vadd.f32 %v1003_v44, %v688_v54  ;;  %659 = vst [vmem:[%s1649_s2 + $0x120] sm:$0xff] %v1305_v57  ;;  %v760_v0 = vmul.f32 %v384_v56, %v384_v56 }
  0xee   :  { %v1007_v61 = vpop.f32.mrf.mxu0  ;;  %v1314_v62 = vpop.f32.mrf.mxu1 }
  0xef   :  { %v690_v63 = vadd.f32 %v689_v60, %v384_v56  ;;  %v822_v1 = vadd.f32 %v821_v59, %v759_v58  ;;  %630 = vst [vmem:[%s1649_s2 + $0x38] sm:$0xff] %v1007_v61  ;;  %662 = vst [vmem:[%s1649_s2 + $0x138] sm:$0xff] %v1314_v62  ;;  %v763_v14 = vmul.f32 %v1007_v61, %v1007_v61 }
  0xf0   :  { %v387_v2 = vpop.f32.mrf.mxu0  ;;  %v1323_v3 = vpop.f32.mrf.mxu1 }
  0xf1   :  { %v823_v4 = vadd.f32 %v822_v1, %v760_v0  ;;  %628 = vst [vmem:[%s1649_s2 + $0x28] sm:$0xff] %v387_v2  ;;  %v691_v5 = vadd.f32 %v690_v63, %v387_v2  ;;  %v761_v6 = vmul.f32 %v387_v2, %v387_v2  ;;  %660 = vst [vmem:[%s1649_s2 + $0x128] sm:$0xff] %v1323_v3 }
  0xf2   :  { %v1010_v7 = vpop.f32.mrf.mxu0  ;;  %v1332_v8 = vpop.f32.mrf.mxu1 }
  0xf3   :  { %v692_v10 = vadd.f32 %v1006_v51, %v691_v5  ;;  %v824_v11 = vadd.f32 %v823_v4, %v761_v6  ;;  %633 = vst [vmem:[%s1649_s2 + $0x50] sm:$0xff] %v1010_v7  ;;  %665 = vst [vmem:[%s1649_s2 + $0x150] sm:$0xff] %v1332_v8  ;;  %v766_v29 = vmul.f32 %v1010_v7, %v1010_v7 }
  0xf4   :  { %v400_v12 = vpop.f32.mrf.mxu0  ;;  %v1341_v13 = vpop.f32.mrf.mxu1 }
  0xf5   :  { %v825_v15 = vadd.f32 %v824_v11, %v762_v9  ;;  %631 = vst [vmem:[%s1649_s2 + $0x40] sm:$0xff] %v400_v12  ;;  %v693_v16 = vadd.f32 %v1007_v61, %v692_v10  ;;  %663 = vst [vmem:[%s1649_s2 + $0x140] sm:$0xff] %v1341_v13  ;;  %v764_v20 = vmul.f32 %v400_v12, %v400_v12 }
  0xf6   :  { %v1011_v17 = vpop.f32.mrf.mxu0  ;;  %v1350_v18 = vpop.f32.mrf.mxu1 }
  0xf7   :  { %v694_v19 = vadd.f32 %v693_v16, %v400_v12  ;;  %v826_v21 = vadd.f32 %v825_v15, %v763_v14  ;;  %634 = vst [vmem:[%s1649_s2 + $0x58] sm:$0xff] %v1011_v17  ;;  %666 = vst [vmem:[%s1649_s2 + $0x158] sm:$0xff] %v1350_v18  ;;  %v767_v34 = vmul.f32 %v1011_v17, %v1011_v17 }
  0xf8   :  { %v403_v22 = vpop.f32.mrf.mxu0  ;;  %v1359_v23 = vpop.f32.mrf.mxu1 }
  0xf9   :  { %v827_v24 = vadd.f32 %v826_v21, %v764_v20  ;;  %632 = vst [vmem:[%s1649_s2 + $0x48] sm:$0xff] %v403_v22  ;;  %v695_v25 = vadd.f32 %v694_v19, %v403_v22  ;;  %v765_v26 = vmul.f32 %v403_v22, %v403_v22  ;;  %664 = vst [vmem:[%s1649_s2 + $0x148] sm:$0xff] %v1359_v23 }
  0xfa   :  { %v1014_v27 = vpop.f32.mrf.mxu0  ;;  %v1368_v28 = vpop.f32.mrf.mxu1 }
  0xfb   :  { %v696_v30 = vadd.f32 %v1010_v7, %v695_v25  ;;  %v828_v31 = vadd.f32 %v827_v24, %v765_v26  ;;  %637 = vst [vmem:[%s1649_s2 + $0x70] sm:$0xff] %v1014_v27  ;;  %669 = vst [vmem:[%s1649_s2 + $0x170] sm:$0xff] %v1368_v28  ;;  %v770_v54 = vmul.f32 %v1014_v27, %v1014_v27 }
  0xfc   :  { %v416_v32 = vpop.f32.mrf.mxu0  ;;  %v1377_v33 = vpop.f32.mrf.mxu1 }
  0xfd   :  { %v829_v35 = vadd.f32 %v828_v31, %v766_v29  ;;  %635 = vst [vmem:[%s1649_s2 + $0x60] sm:$0xff] %v416_v32  ;;  %v697_v36 = vadd.f32 %v1011_v17, %v696_v30  ;;  %667 = vst [vmem:[%s1649_s2 + $0x160] sm:$0xff] %v1377_v33  ;;  %v768_v40 = vmul.f32 %v416_v32, %v416_v32 }
  0xfe   :  { %v1015_v37 = vpop.f32.mrf.mxu0  ;;  %v1386_v38 = vpop.f32.mrf.mxu1 }
  0xff   :  { %v698_v39 = vadd.f32 %v697_v36, %v416_v32  ;;  %v830_v42 = vadd.f32 %v829_v35, %v767_v34  ;;  %638 = vst [vmem:[%s1649_s2 + $0x78] sm:$0xff] %v1015_v37  ;;  %670 = vst [vmem:[%s1649_s2 + $0x178] sm:$0xff] %v1386_v38  ;;  %v771_v60 = vmul.f32 %v1015_v37, %v1015_v37 }
 0x100   :  { %v419_v44 = vpop.f32.mrf.mxu0  ;;  %v1395_v46 = vpop.f32.mrf.mxu1 }
 0x101   :  { %v831_v48 = vadd.f32 %v830_v42, %v768_v40  ;;  %636 = vst [vmem:[%s1649_s2 + $0x68] sm:$0xff] %v419_v44  ;;  %v699_v49 = vadd.f32 %v698_v39, %v419_v44  ;;  %v769_v50 = vmul.f32 %v419_v44, %v419_v44  ;;  %668 = vst [vmem:[%s1649_s2 + $0x168] sm:$0xff] %v1395_v46 }
 0x102   :  { %v1018_v51 = vpop.f32.mrf.mxu0  ;;  %v1404_v53 = vpop.f32.mrf.mxu1 }
 0x103   :  { %v700_v55 = vadd.f32 %v1014_v27, %v699_v49  ;;  %v832_v56 = vadd.f32 %v831_v48, %v769_v50  ;;  %641 = vst [vmem:[%s1649_s2 + $0x90] sm:$0xff] %v1018_v51  ;;  %673 = vst [vmem:[%s1649_s2 + $0x190] sm:$0xff] %v1404_v53  ;;  %v774_v15 = vmul.f32 %v1018_v51, %v1018_v51 }
 0x104   :  { %v432_v58 = vpop.f32.mrf.mxu0  ;;  %v1413_v59 = vpop.f32.mrf.mxu1 }
 0x105   :  { %v833_v61 = vadd.f32 %v832_v56, %v770_v54  ;;  %639 = vst [vmem:[%s1649_s2 + $0x80] sm:$0xff] %v432_v58  ;;  %v701_v63 = vadd.f32 %v1015_v37, %v700_v55  ;;  %671 = vst [vmem:[%s1649_s2 + $0x180] sm:$0xff] %v1413_v59  ;;  %v772_v4 = vmul.f32 %v432_v58, %v432_v58 }
 0x106   :  { %v1019_v0 = vpop.f32.mrf.mxu0  ;;  %v1422_v1 = vpop.f32.mrf.mxu1 }
 0x107   :  { %v702_v2 = vadd.f32 %v701_v63, %v432_v58  ;;  %v834_v5 = vadd.f32 %v833_v61, %v771_v60  ;;  %642 = vst [vmem:[%s1649_s2 + $0x98] sm:$0xff] %v1019_v0  ;;  %674 = vst [vmem:[%s1649_s2 + $0x198] sm:$0xff] %v1422_v1  ;;  %v775_v21 = vmul.f32 %v1019_v0, %v1019_v0 }
 0x108   :  { %v435_v6 = vpop.f32.mrf.mxu0  ;;  %v1431_v7 = vpop.f32.mrf.mxu1 }
 0x109   :  { %v835_v9 = vadd.f32 %v834_v5, %v772_v4  ;;  %640 = vst [vmem:[%s1649_s2 + $0x88] sm:$0xff] %v435_v6  ;;  %v703_v10 = vadd.f32 %v702_v2, %v435_v6  ;;  %v773_v11 = vmul.f32 %v435_v6, %v435_v6  ;;  %672 = vst [vmem:[%s1649_s2 + $0x188] sm:$0xff] %v1431_v7 }
 0x10a   :  { %v1022_v12 = vpop.f32.mrf.mxu0  ;;  %v1440_v14 = vpop.f32.mrf.mxu1 }
 0x10b   :  { %v704_v16 = vadd.f32 %v1018_v51, %v703_v10  ;;  %v836_v17 = vadd.f32 %v835_v9, %v773_v11  ;;  %645 = vst [vmem:[%s1649_s2 + $0xb0] sm:$0xff] %v1022_v12  ;;  %677 = vst [vmem:[%s1649_s2 + $0x1b0] sm:$0xff] %v1440_v14  ;;  %v778_v40 = vmul.f32 %v1022_v12, %v1022_v12 }
 0x10c   :  { %v448_v19 = vpop.f32.mrf.mxu0  ;;  %v1449_v20 = vpop.f32.mrf.mxu1 }
 0x10d   :  { %v837_v22 = vadd.f32 %v836_v17, %v774_v15  ;;  %643 = vst [vmem:[%s1649_s2 + $0xa0] sm:$0xff] %v448_v19  ;;  %v705_v24 = vadd.f32 %v1019_v0, %v704_v16  ;;  %675 = vst [vmem:[%s1649_s2 + $0x1a0] sm:$0xff] %v1449_v20  ;;  %v776_v29 = vmul.f32 %v448_v19, %v448_v19 }
 0x10e   :  { %v1023_v25 = vpop.f32.mrf.mxu0  ;;  %v1458_v26 = vpop.f32.mrf.mxu1 }
 0x10f   :  { %v706_v27 = vadd.f32 %v705_v24, %v448_v19  ;;  %v838_v30 = vadd.f32 %v837_v22, %v775_v21  ;;  %646 = vst [vmem:[%s1649_s2 + $0xb8] sm:$0xff] %v1023_v25  ;;  %678 = vst [vmem:[%s1649_s2 + $0x1b8] sm:$0xff] %v1458_v26  ;;  %v779_v50 = vmul.f32 %v1023_v25, %v1023_v25 }
 0x110   :  { %v451_v31 = vpop.f32.mrf.mxu0  ;;  %v1467_v32 = vpop.f32.mrf.mxu1 }
 0x111   :  { %v839_v34 = vadd.f32 %v838_v30, %v776_v29  ;;  %644 = vst [vmem:[%s1649_s2 + $0xa8] sm:$0xff] %v451_v31  ;;  %v707_v35 = vadd.f32 %v706_v27, %v451_v31  ;;  %v777_v36 = vmul.f32 %v451_v31, %v451_v31  ;;  %676 = vst [vmem:[%s1649_s2 + $0x1a8] sm:$0xff] %v1467_v32 }
 0x112   :  { %v1026_v37 = vpop.f32.mrf.mxu0  ;;  %v1476_v39 = vpop.f32.mrf.mxu1 }
 0x113   :  { %v708_v42 = vadd.f32 %v1022_v12, %v707_v35  ;;  %v840_v44 = vadd.f32 %v839_v34, %v777_v36  ;;  %649 = vst [vmem:[%s1649_s2 + $0xd0] sm:$0xff] %v1026_v37  ;;  %681 = vst [vmem:[%s1649_s2 + $0x1d0] sm:$0xff] %v1476_v39  ;;  %v782_v10 = vmul.f32 %v1026_v37, %v1026_v37 }
 0x114   :  { %v464_v48 = vpop.f32.mrf.mxu0  ;;  %v1485_v49 = vpop.f32.mrf.mxu1 }
 0x115   :  { %v841_v51 = vadd.f32 %v840_v44, %v778_v40  ;;  %647 = vst [vmem:[%s1649_s2 + $0xc0] sm:$0xff] %v464_v48  ;;  %v709_v54 = vadd.f32 %v1023_v25, %v708_v42  ;;  %679 = vst [vmem:[%s1649_s2 + $0x1c0] sm:$0xff] %v1485_v49  ;;  %v780_v60 = vmul.f32 %v464_v48, %v464_v48 }
 0x116   :  { %v1027_v55 = vpop.f32.mrf.mxu0  ;;  %v1494_v56 = vpop.f32.mrf.mxu1 }
 0x117   :  { %v710_v58 = vadd.f32 %v709_v54, %v464_v48  ;;  %v842_v61 = vadd.f32 %v841_v51, %v779_v50  ;;  %650 = vst [vmem:[%s1649_s2 + $0xd8] sm:$0xff] %v1027_v55  ;;  %682 = vst [vmem:[%s1649_s2 + $0x1d8] sm:$0xff] %v1494_v56  ;;  %v783_v17 = vmul.f32 %v1027_v55, %v1027_v55 }
 0x118   :  { %v467_v63 = vpop.f32.mrf.mxu0  ;;  %v1503_v0 = vpop.f32.mrf.mxu1  ;;  %v788_v51 = vmul.f32 %v1269_v43, %v1269_v43 }
 0x119   :  { %v843_v2 = vadd.f32 %v842_v61, %v780_v60  ;;  %648 = vst [vmem:[%s1649_s2 + $0xc8] sm:$0xff] %v467_v63  ;;  %v711_v4 = vadd.f32 %v710_v58, %v467_v63  ;;  %v781_v5 = vmul.f32 %v467_v63, %v467_v63  ;;  %680 = vst [vmem:[%s1649_s2 + $0x1c8] sm:$0xff] %v1503_v0 }
 0x11a   :  { %v1030_v6 = vpop.f32.mrf.mxu0  ;;  %v1512_v9 = vpop.f32.mrf.mxu1  ;;  %v789_v60 = vmul.f32 %v1287_v47, %v1287_v47  ;;  %v790_v63 = vmul.f32 %v1260_v41, %v1260_v41 }
 0x11b   :  { %v712_v11 = vadd.f32 %v1026_v37, %v711_v4  ;;  %v844_v12 = vadd.f32 %v843_v2, %v781_v5  ;;  %653 = vst [vmem:[%s1649_s2 + $0xf0] sm:$0xff] %v1030_v6  ;;  %685 = vst [vmem:[%s1649_s2 + $0x1f0] sm:$0xff] %v1512_v9  ;;  %v786_v37 = vmul.f32 %v1030_v6, %v1030_v6 }
 0x11c   :  { %v480_v15 = vpop.f32.mrf.mxu0  ;;  %v1521_v16 = vpop.f32.mrf.mxu1  ;;  %v791_v5 = vmul.f32 %v1278_v45, %v1278_v45 }
 0x11d   :  { %v845_v19 = vadd.f32 %v844_v12, %v782_v10  ;;  %651 = vst [vmem:[%s1649_s2 + $0xe0] sm:$0xff] %v480_v15  ;;  %v713_v21 = vadd.f32 %v1027_v55, %v712_v11  ;;  %683 = vst [vmem:[%s1649_s2 + $0x1e0] sm:$0xff] %v1521_v16  ;;  %v784_v27 = vmul.f32 %v480_v15, %v480_v15 }
 0x11e   :  { %v1031_v22 = vpop.f32.mrf.mxu0  ;;  %v1530_v24 = vpop.f32.mrf.mxu1  ;;  %v792_v11 = vmul.f32 %v1305_v57, %v1305_v57 }
 0x11f   :  { %v714_v25 = vadd.f32 %v713_v21, %v480_v15  ;;  %v846_v29 = vadd.f32 %v845_v19, %v783_v17  ;;  %654 = vst [vmem:[%s1649_s2 + $0xf8] sm:$0xff] %v1031_v22  ;;  %686 = vst [vmem:[%s1649_s2 + $0x1f8] sm:$0xff] %v1530_v24  ;;  %v787_v44 = vmul.f32 %v1031_v22, %v1031_v22 }
 0x120   :  { %v483_v30 = vpop.f32.mrf.mxu0  ;;  %v1539_v31 = vpop.f32.mrf.mxu1  ;;  %v793_v17 = vmul.f32 %v1323_v3, %v1323_v3 }
 0x121   :  { %v847_v34 = vadd.f32 %v846_v29, %v784_v27  ;;  %652 = vst [vmem:[%s1649_s2 + $0xe8] sm:$0xff] %v483_v30  ;;  %v715_v35 = vadd.f32 %v714_v25, %v483_v30  ;;  %v785_v36 = vmul.f32 %v483_v30, %v483_v30  ;;  %684 = vst [vmem:[%s1649_s2 + $0x1e8] sm:$0xff] %v1539_v31 }
 0x122   :  { %v796_v27 = vmul.f32 %v1341_v13, %v1341_v13 }
 0x123   :  { %v716_v40 = vadd.f32 %v1030_v6, %v715_v35  ;;  %v848_v42 = vadd.f32 %v847_v34, %v785_v36  ;;  %v797_v34 = vmul.f32 %v1359_v23, %v1359_v23 }
 0x125   :  { %v717_v48 = vadd.f32 %v1031_v22, %v716_v40  ;;  %v849_v50 = vadd.f32 %v848_v42, %v786_v37  ;;  %v800_v42 = vmul.f32 %v1377_v33, %v1377_v33 }
 0x127   :  { %v850_v54 = vadd.f32 %v849_v50, %v787_v44  ;;  %v718_v55 = vadd.f32 %v717_v48, %v1269_v43  ;;  %v801_v50 = vmul.f32 %v1395_v46, %v1395_v46 }
 0x129   :  { %v719_v58 = vadd.f32 %v718_v55, %v1287_v47  ;;  %v851_v61 = vadd.f32 %v850_v54, %v788_v51 }
 0x12b   :  { %v720_v2 = vadd.f32 %v1260_v41, %v719_v58  ;;  %v852_v4 = vadd.f32 %v851_v61, %v789_v60  ;;  %v794_v41 = vmul.f32 %v1296_v52, %v1296_v52  ;;  %v804_v60 = vmul.f32 %v1413_v59, %v1413_v59 }
 0x12d   :  { %v853_v6 = vadd.f32 %v852_v4, %v790_v63  ;;  %v721_v10 = vadd.f32 %v1278_v45, %v720_v2  ;;  %v795_v45 = vmul.f32 %v1314_v62, %v1314_v62  ;;  %v805_v2 = vmul.f32 %v1431_v7, %v1431_v7 }
 0x12f   :  { %v722_v43 = vadd.f32 %v721_v10, %v1305_v57  ;;  %v854_v12 = vadd.f32 %v853_v6, %v791_v5 }
 0x131   :  { %v855_v47 = vadd.f32 %v854_v12, %v792_v11  ;;  %v723_v15 = vadd.f32 %v722_v43, %v1323_v3  ;;  %v808_v43 = vmul.f32 %v1449_v20, %v1449_v20 }
 0x133   :  { %v724_v19 = vadd.f32 %v1296_v52, %v723_v15  ;;  %v856_v21 = vadd.f32 %v855_v47, %v793_v17  ;;  %v798_v52 = vmul.f32 %v1332_v8, %v1332_v8  ;;  %v809_v47 = vmul.f32 %v1467_v32, %v1467_v32 }
 0x135   :  { %v857_v22 = vadd.f32 %v856_v21, %v794_v41  ;;  %v725_v25 = vadd.f32 %v1314_v62, %v724_v19  ;;  %v799_v62 = vmul.f32 %v1350_v18, %v1350_v18  ;;  %v812_v21 = vmul.f32 %v1485_v49, %v1485_v49 }
 0x137   :  { %v726_v57 = vadd.f32 %v725_v25, %v1341_v13  ;;  %v858_v29 = vadd.f32 %v857_v22, %v795_v45  ;;  %v813_v25 = vmul.f32 %v1503_v0, %v1503_v0 }
 0x139   :  { %v859_v30 = vadd.f32 %v858_v29, %v796_v27  ;;  %v727_v3 = vadd.f32 %v726_v57, %v1359_v23 }
 0x13b   :  { %v728_v35 = vadd.f32 %v1332_v8, %v727_v3  ;;  %v860_v36 = vadd.f32 %v859_v30, %v797_v34  ;;  %v802_v8 = vmul.f32 %v1368_v28, %v1368_v28  ;;  %v816_v3 = vmul.f32 %v1521_v16, %v1521_v16 }
 0x13d   :  { %v861_v37 = vadd.f32 %v860_v36, %v798_v52  ;;  %v729_v40 = vadd.f32 %v1350_v18, %v728_v35  ;;  %v803_v18 = vmul.f32 %v1386_v38, %v1386_v38  ;;  %v817_v35 = vmul.f32 %v1539_v31, %v1539_v31 }
 0x13f   :  { %v730_v13 = vadd.f32 %v729_v40, %v1377_v33  ;;  %v862_v44 = vadd.f32 %v861_v37, %v799_v62 }
 0x141   :  { %v863_v48 = vadd.f32 %v862_v44, %v800_v42  ;;  %v731_v23 = vadd.f32 %v730_v13, %v1395_v46 }
 0x143   :  { %v732_v51 = vadd.f32 %v1368_v28, %v731_v23  ;;  %v864_v54 = vadd.f32 %v863_v48, %v801_v50  ;;  %v806_v28 = vmul.f32 %v1404_v53, %v1404_v53  ;;  %v889_v48 = vlaneseq }
 0x145   :  { %v865_v55 = vadd.f32 %v864_v54, %v802_v8  ;;  %v733_v58 = vadd.f32 %v1386_v38, %v732_v51  ;;  %v807_v38 = vmul.f32 %v1422_v1, %v1422_v1  ;;  %v890_v51 = vshrl.u32 %v889_v48, 7 }
 0x147   :  { %v734_v33 = vadd.f32 %v733_v58, %v1413_v59  ;;  %v866_v61 = vadd.f32 %v865_v55, %v803_v18  ;;  %vm892_vm0 = vcmp.eq.s32.totalorder %v890_v51, 1  ;;  %vm891_vm1 = vcmp.eq.s32.totalorder %v890_v51, 0 }
 0x149   :  { %v867_v63 = vadd.f32 %v866_v61, %v804_v60  ;;  %v735_v46 = vadd.f32 %v734_v33, %v1431_v7 }
 0x14b   :  { %v736_v4 = vadd.f32 %v1404_v53, %v735_v46  ;;  %v868_v5 = vadd.f32 %v867_v63, %v805_v2  ;;  %v810_v53 = vmul.f32 %v1440_v14, %v1440_v14 }
 0x14d   :  { %v869_v6 = vadd.f32 %v868_v5, %v806_v28  ;;  %v737_v10 = vadd.f32 %v1422_v1, %v736_v4  ;;  %v811_v1 = vmul.f32 %v1458_v26, %v1458_v26 }
 0x14f   :  { %v738_v59 = vadd.f32 %v737_v10, %v1449_v20  ;;  %v870_v11 = vadd.f32 %v869_v6, %v807_v38 }
 0x151   :  { %v871_v12 = vadd.f32 %v870_v11, %v808_v43  ;;  %v739_v7 = vadd.f32 %v738_v59, %v1467_v32 }
 0x153   :  { %v740_v15 = vadd.f32 %v1440_v14, %v739_v7  ;;  %v872_v17 = vadd.f32 %v871_v12, %v809_v47  ;;  %v814_v14 = vmul.f32 %v1476_v39, %v1476_v39 }
 0x155   :  { %v873_v41 = vadd.f32 %v872_v17, %v810_v53  ;;  %v741_v19 = vadd.f32 %v1458_v26, %v740_v15  ;;  %v815_v26 = vmul.f32 %v1494_v56, %v1494_v56 }
 0x157   :  { %v742_v20 = vadd.f32 %v741_v19, %v1485_v49  ;;  %v874_v45 = vadd.f32 %v873_v41, %v811_v1 }
 0x159   :  { %v875_v22 = vadd.f32 %v874_v45, %v812_v21  ;;  %v743_v32 = vadd.f32 %v742_v20, %v1503_v0 }
 0x15b   :  { %v744_v57 = vadd.f32 %v1476_v39, %v743_v32  ;;  %v876_v27 = vadd.f32 %v875_v22, %v813_v25  ;;  %v818_v39 = vmul.f32 %v1512_v9, %v1512_v9 }
 0x15d   :  { %v877_v29 = vadd.f32 %v876_v27, %v814_v14  ;;  %v745_v30 = vadd.f32 %v1494_v56, %v744_v57  ;;  %v819_v56 = vmul.f32 %v1530_v24, %v1530_v24 }
 0x15f   :  { %v746_v49 = vadd.f32 %v745_v30, %v1521_v16  ;;  %v878_v34 = vadd.f32 %v877_v29, %v815_v26 }
 0x161   :  { %v879_v52 = vadd.f32 %v878_v34, %v816_v3  ;;  %v747_v0 = vadd.f32 %v746_v49, %v1539_v31 }
 0x163   :  { %v748_v36 = vadd.f32 %v1512_v9, %v747_v0  ;;  %v880_v62 = vadd.f32 %v879_v52, %v817_v35 }
 0x165   :  { %v749_v37 = vadd.f32 %v1530_v24, %v748_v36  ;;  %v881_v40 = vadd.f32 %v880_v62, %v818_v39 }
 0x167   :  { %v750_v16 = vrot.slane %v749_v37, 4  ;;  %v882_v13 = vadd.f32 %v881_v40, %v819_v56 }
 0x169   :  { %v751_v42 = vadd.f32 %v750_v16, %v749_v37  ;;  %v883_v44 = vrot.slane %v882_v13, 4 }
 0x16b   :  { %v752_v23 = vrot.slane %v751_v42, 2  ;;  %v884_v50 = vadd.f32 %v883_v44, %v882_v13 }
 0x16d   :  { %v753_v31 = vadd.f32 %v752_v23, %v751_v42  ;;  %v885_v8 = vrot.slane %v884_v50, 2 }
 0x16f   :  { %v886_v54 = vadd.f32 %v885_v8, %v884_v50  ;;  %v754_v18 = vrot.slane %v753_v31, 1 }
 0x171   :  { %v887_v9 = vrot.slane %v886_v54, 1  ;;  %v755_v58 = vadd.f32 %v754_v18, %v753_v31 }
 0x173   :  { %v888_v55 = vadd.f32 %v887_v9, %v886_v54 }
 0x175   :  { %v893_v33 = vsel %vm892_vm0, %v888_v55, 0.0 }
 0x176   :  { %v894_v24 = vsel %vm891_vm1, %v755_v58, %v893_v33 }
 0x177   :  { %895 = vst [vmem:[%s1650_s3] sm:$0xff] %v894_v24 }

// kernel: resnet_bottleneck_block.9
= control target key start
LH: loop header
LB: loop body
LE: loop exit
PB: predicated region body
PF: predicated region fallthrough
CT: control target
= control target key end

     0   :  { %v856_v1 = vmov 0.0|0.0   ;;  %s1192_s3 = inlined_call_operand.vmem [shape: bf16[128,128], index: 3, kind: input, shape index: {}]   ;;  %s1193_s0 = inlined_call_operand.vmem [shape: f32[256,128], index: 0, kind: input, shape index: {}]   ;;  %s1194_s1 = inlined_call_operand.vmem [shape: f32[1,128], index: 1, kind: input, shape index: {}]   ;;  %s1195_s2 = inlined_call_operand.vmem [shape: f32[1,128], index: 2, kind: input, shape index: {}]   ;;  %s1196_s4 = inlined_call_operand.vmem [shape: f32[256,128], index: 4, kind: output, shape index: {0}]   ;;  %s1197_s5 = inlined_call_operand.vmem [shape: f32[8,128], index: 5, kind: output, shape index: {1}]  }
   0x1   :  { %v848_v0 = vld [vmem:[%s1192_s3 + $0x38] sm:$0xff]   ;;  %815 = vmatprep.mubr.bf16.mxu1 %v856_v1  ;;  %v849_v2 = vld [vmem:[%s1192_s3 + $0x30] sm:$0xff]   ;;  %v850_v3 = vld [vmem:[%s1192_s3 + $0x28] sm:$0xff]  }
   0x2   :  { %783 = vmatprep.subr.bf16.mxu0 %v848_v0  ;;  %831 = vmatprep.subr.bf16.mxu1 %v848_v0  ;;  %v851_v4 = vld [vmem:[%s1192_s3 + $0x20] sm:$0xff]   ;;  %v21_v6 = vld [vmem:[%s1193_s0 + $0x8] sm:$0xff]  ;;  %v852_v13 = vld [vmem:[%s1192_s3 + $0x18] sm:$0xff]  }
   0x3   :  { %784 = vmatpush3.bf16.msra.mxu0 %v848_v0  ;;  %839 = vmatpush3.bf16.msra.mxu1 %v848_v0  ;;  %v20_v5 = vld [vmem:[%s1193_s0] sm:$0xff]  ;;  %v22_v17 = vld [vmem:[%s1193_s0 + $0x10] sm:$0xff]  ;;  %v23_v18 = vld [vmem:[%s1193_s0 + $0x18] sm:$0xff] }
   0x4   :  { %785 = vmatprep.subr.bf16.mxu0 %v849_v2  ;;  %832 = vmatprep.subr.bf16.mxu1 %v849_v2  ;;  %v909_v7 = vld [vmem:[%s1194_s1] ss:$0 sm:$0xff]  ;;  %v853_v19 = vld [vmem:[%s1192_s3 + $0x10] sm:$0xff]   ;;  %v25_v21 = vld [vmem:[%s1193_s0 + $0x28] sm:$0xff] }
   0x5   :  { %v59_v8 = vmul.f32 %v909_v7, %v20_v5  ;;  %v60_v9 = vmul.f32 %v909_v7, %v21_v6  ;;  %v916_v10 = vld [vmem:[%s1195_s2] ss:$0 sm:$0xff]  ;;  %v61_v22 = vmul.f32 %v909_v7, %v22_v17  ;;  %v62_v23 = vmul.f32 %v909_v7, %v23_v18  ;;  %v854_v26 = vld [vmem:[%s1192_s3 + $0x8] sm:$0xff]   ;;  %v26_v31 = vld [vmem:[%s1193_s0 + $0x30] sm:$0xff] }
   0x6   :  { %v24_v20 = vld [vmem:[%s1193_s0 + $0x20] sm:$0xff]  ;;  %v64_v25 = vmul.f32 %v909_v7, %v25_v21  ;;  %v27_v32 = vld [vmem:[%s1193_s0 + $0x38] sm:$0xff]  ;;  %v29_v35 = vld [vmem:[%s1193_s0 + $0x48] sm:$0xff]  ;;  %v65_v38 = vmul.f32 %v909_v7, %v26_v31 }
   0x7   :  { %786 = vmatpush3.bf16.msra.mxu0 %v849_v2  ;;  %840 = vmatpush3.bf16.msra.mxu1 %v849_v2  ;;  %v98_v11 = vadd.f32 %v916_v10, %v59_v8  ;;  %v99_v12 = vadd.f32 %v916_v10, %v60_v9  ;;  %v63_v24 = vmul.f32 %v909_v7, %v24_v20  ;;  %v855_v33 = vld [vmem:[%s1192_s3] sm:$0xff]   ;;  %v30_v50 = vld [vmem:[%s1193_s0 + $0x50] sm:$0xff]  ;;  %v31_v51 = vld [vmem:[%s1193_s0 + $0x58] sm:$0xff] }
   0x8   :  { %787 = vmatprep.subr.bf16.mxu0 %v850_v3  ;;  %833 = vmatprep.subr.bf16.mxu1 %v850_v3  ;;  %v100_v27 = vadd.f32 %v916_v10, %v61_v22  ;;  %v101_v28 = vadd.f32 %v916_v10, %v62_v23  ;;  %v103_v30 = vadd.f32 %v916_v10, %v64_v25  ;;  %v28_v34 = vld [vmem:[%s1193_s0 + $0x40] sm:$0xff]  ;;  %v33_v53 = vld [vmem:[%s1193_s0 + $0x68] sm:$0xff]  ;;  %v34_v5 = vld [vmem:[%s1193_s0 + $0x70] sm:$0xff] }
   0x9   :  { %v130_v14 = vmax.f32 %v98_v11, 0.0  ;;  %v131_v15 = vmax.f32 %v99_v12, 0.0  ;;  %v102_v29 = vadd.f32 %v916_v10, %v63_v24  ;;  %v66_v39 = vmul.f32 %v909_v7, %v27_v32  ;;  %v32_v52 = vld [vmem:[%s1193_s0 + $0x60] sm:$0xff]  ;;  %v35_v6 = vld [vmem:[%s1193_s0 + $0x78] sm:$0xff] }
   0xa   :  { %v132_v36 = vmax.f32 %v100_v27, 0.0  ;;  %v133_v37 = vmax.f32 %v101_v28, 0.0  ;;  %v135_v41 = vmax.f32 %v103_v30, 0.0  ;;  %v67_v42 = vmul.f32 %v909_v7, %v28_v34 }
   0xb   :  { %788 = vmatpush3.bf16.msra.mxu0 %v850_v3  ;;  %841 = vmatpush3.bf16.msra.mxu1 %v850_v3  ;;  %v357_v16 = vpack.c.bf16 %v131_v15, %v130_v14  ;;  %v134_v40 = vmax.f32 %v102_v29, 0.0  ;;  %v68_v43 = vmul.f32 %v909_v7, %v29_v35  ;;  %v104_v45 = vadd.f32 %v916_v10, %v65_v38 }
   0xc   :  { %789 = vmatprep.subr.bf16.mxu0 %v851_v4  ;;  %834 = vmatprep.subr.bf16.mxu1 %v851_v4  ;;  %v358_v44 = vpack.c.bf16 %v133_v37, %v132_v36  ;;  %v105_v46 = vadd.f32 %v916_v10, %v66_v39  ;;  %v106_v48 = vadd.f32 %v916_v10, %v67_v42 }
   0xd   :  { %799 = vmatprep.mubr.bf16.mxu0 %v357_v16  ;;  %v359_v47 = vpack.c.bf16 %v135_v41, %v134_v40  ;;  %v107_v49 = vadd.f32 %v916_v10, %v68_v43  ;;  %v136_v54 = vmax.f32 %v104_v45, 0.0  ;;  %v69_v56 = vmul.f32 %v909_v7, %v30_v50 }
   0xe   :  { %v137_v55 = vmax.f32 %v105_v46, 0.0  ;;  %v70_v57 = vmul.f32 %v909_v7, %v31_v51  ;;  %v138_v58 = vmax.f32 %v106_v48, 0.0  ;;  %v71_v60 = vmul.f32 %v909_v7, %v32_v52 }
   0xf   :  { %790 = vmatpush3.bf16.msra.mxu0 %v851_v4  ;;  %842 = vmatpush3.bf16.msra.mxu1 %v851_v4  ;;  %v139_v59 = vmax.f32 %v107_v49, 0.0  ;;  %v72_v61 = vmul.f32 %v909_v7, %v33_v53  ;;  %v108_v63 = vadd.f32 %v916_v10, %v69_v56  ;;  %v73_v11 = vmul.f32 %v909_v7, %v34_v5 }
  0x10   :  { %791 = vmatprep.subr.bf16.mxu0 %v852_v13  ;;  %835 = vmatprep.subr.bf16.mxu1 %v852_v13  ;;  %v360_v62 = vpack.c.bf16 %v137_v55, %v136_v54  ;;  %v109_v0 = vadd.f32 %v916_v10, %v70_v57  ;;  %v110_v3 = vadd.f32 %v916_v10, %v71_v60 }
  0x11   :  { %v361_v2 = vpack.c.bf16 %v139_v59, %v138_v58  ;;  %v111_v4 = vadd.f32 %v916_v10, %v72_v61  ;;  %v140_v8 = vmax.f32 %v108_v63, 0.0  ;;  %v74_v12 = vmul.f32 %v909_v7, %v35_v6 }
  0x12   :  { %v141_v9 = vmax.f32 %v109_v0, 0.0  ;;  %v112_v16 = vadd.f32 %v916_v10, %v73_v11 }
  0x13   :  { %792 = vmatpush3.bf16.msra.mxu0 %v852_v13  ;;  %843 = vmatpush3.bf16.msra.mxu1 %v852_v13  ;;  %v142_v13 = vmax.f32 %v110_v3, 0.0  ;;  %v143_v14 = vmax.f32 %v111_v4, 0.0  ;;  %v113_v17 = vadd.f32 %v916_v10, %v74_v12 }
  0x14   :  { %793 = vmatprep.subr.bf16.mxu0 %v853_v19  ;;  %836 = vmatprep.subr.bf16.mxu1 %v853_v19  ;;  %v362_v15 = vpack.c.bf16 %v141_v9, %v140_v8 }
  0x15   :  { %v363_v18 = vpack.c.bf16 %v143_v14, %v142_v13  ;;  %v145_v20 = vmax.f32 %v113_v17, 0.0 }
  0x17   :  { %794 = vmatpush3.bf16.msra.mxu0 %v853_v19  ;;  %844 = vmatpush3.bf16.msra.mxu1 %v853_v19  ;;  %v144_v19 = vmax.f32 %v112_v16, 0.0 }
  0x18   :  { %795 = vmatprep.subr.bf16.mxu0 %v854_v26  ;;  %837 = vmatprep.subr.bf16.mxu1 %v854_v26 }
  0x19   :  { %v364_v7 = vpack.c.bf16 %v145_v20, %v144_v19 }
  0x1b   :  { %796 = vmatpush3.bf16.msra.mxu0 %v854_v26  ;;  %845 = vmatpush3.bf16.msra.mxu1 %v854_v26 }
  0x1c   :  { %797 = vmatprep.subr.bf16.mxu0 %v855_v33  ;;  %838 = vmatprep.subr.bf16.mxu1 %v855_v33 }
  0x1f   :  { %798 = vmatpush3.bf16.msra.mxu0 %v855_v33  ;;  %846 = vmatpush3.bf16.msra.mxu1 %v855_v33 }
  0x22   :  { %800 = vmatmul.mubr.bf16.vlgmr.msra.gmra.mxu0 %v358_v44  ;;  %816 = vmatmul.mubr.bf16.vlgmr.msra.gmra.mxu1 %v856_v1 }
  0x23   :  { %803 = vmatprep.mubr.bf16.mxu0 %v359_v47  ;;  %819 = vmatprep.mubr.bf16.mxu1 %v856_v1 }
  0x2a   :  { %804 = vmatmul.mubr.bf16.gmra.mxu0 %v360_v62  ;;  %820 = vmatmul.mubr.bf16.gmra.mxu1 %v856_v1 }
  0x2b   :  { %807 = vmatprep.mubr.bf16.mxu0 %v361_v2  ;;  %823 = vmatprep.mubr.bf16.mxu1 %v856_v1 }
  0x32   :  { %808 = vmatmul.mubr.bf16.gmra.mxu0 %v362_v15  ;;  %824 = vmatmul.mubr.bf16.gmra.mxu1 %v856_v1 }
  0x33   :  { %811 = vmatprep.mubr.bf16.mxu0 %v363_v18  ;;  %827 = vmatprep.mubr.bf16.mxu1 %v856_v1 }
  0x3a   :  { %812 = vmatmul.mubr.bf16.gmra.mxu0 %v364_v7  ;;  %828 = vmatmul.mubr.bf16.gmra.mxu1 %v856_v1 }
  0xe2   :  { %v801_v21 = vpop.f32.mrf.mxu0  ;;  %v1009_v22 = vpop.f32.mrf.mxu1 }
  0xe3   :  { %600 = vst [vmem:[%s1196_s4 + $0x10] sm:$0xff] %v801_v21  ;;  %616 = vst [vmem:[%s1196_s4 + $0x90] sm:$0xff] %v1009_v22  ;;  %v669_v32 = vmul.f32 %v801_v21, %v801_v21 }
  0xe4   :  { %v471_v10 = vpop.f32.mrf.mxu0  ;;  %v1018_v23 = vpop.f32.mrf.mxu1 }
  0xe5   :  { %598 = vst [vmem:[%s1196_s4] sm:$0xff] %v471_v10  ;;  %614 = vst [vmem:[%s1196_s4 + $0x80] sm:$0xff] %v1018_v23  ;;  %v667_v27 = vmul.f32 %v471_v10, %v471_v10 }
  0xe6   :  { %v802_v1 = vpop.f32.mrf.mxu0  ;;  %v1027_v24 = vpop.f32.mrf.mxu1 }
  0xe7   :  { %601 = vst [vmem:[%s1196_s4 + $0x18] sm:$0xff] %v802_v1  ;;  %617 = vst [vmem:[%s1196_s4 + $0x98] sm:$0xff] %v1027_v24  ;;  %v670_v37 = vmul.f32 %v802_v1, %v802_v1 }
  0xe8   :  { %v474_v25 = vpop.f32.mrf.mxu0  ;;  %v1036_v26 = vpop.f32.mrf.mxu1 }
  0xe9   :  { %599 = vst [vmem:[%s1196_s4 + $0x8] sm:$0xff] %v474_v25  ;;  %v630_v28 = vadd.f32 %v474_v25, %v471_v10  ;;  %v668_v29 = vmul.f32 %v474_v25, %v474_v25  ;;  %615 = vst [vmem:[%s1196_s4 + $0x88] sm:$0xff] %v1036_v26 }
  0xea   :  { %v805_v30 = vpop.f32.mrf.mxu0  ;;  %v1045_v31 = vpop.f32.mrf.mxu1 }
  0xeb   :  { %v631_v33 = vadd.f32 %v801_v21, %v630_v28  ;;  %v699_v34 = vadd.f32 %v668_v29, %v667_v27  ;;  %604 = vst [vmem:[%s1196_s4 + $0x30] sm:$0xff] %v805_v30  ;;  %620 = vst [vmem:[%s1196_s4 + $0xb0] sm:$0xff] %v1045_v31  ;;  %v673_v52 = vmul.f32 %v805_v30, %v805_v30 }
  0xec   :  { %v487_v35 = vpop.f32.mrf.mxu0  ;;  %v1054_v36 = vpop.f32.mrf.mxu1 }
  0xed   :  { %v700_v38 = vadd.f32 %v699_v34, %v669_v32  ;;  %602 = vst [vmem:[%s1196_s4 + $0x20] sm:$0xff] %v487_v35  ;;  %v632_v39 = vadd.f32 %v802_v1, %v631_v33  ;;  %618 = vst [vmem:[%s1196_s4 + $0xa0] sm:$0xff] %v1054_v36  ;;  %v671_v43 = vmul.f32 %v487_v35, %v487_v35 }
  0xee   :  { %v806_v40 = vpop.f32.mrf.mxu0  ;;  %v1063_v41 = vpop.f32.mrf.mxu1 }
  0xef   :  { %v633_v42 = vadd.f32 %v632_v39, %v487_v35  ;;  %v701_v44 = vadd.f32 %v700_v38, %v670_v37  ;;  %605 = vst [vmem:[%s1196_s4 + $0x38] sm:$0xff] %v806_v40  ;;  %621 = vst [vmem:[%s1196_s4 + $0xb8] sm:$0xff] %v1063_v41  ;;  %v674_v57 = vmul.f32 %v806_v40, %v806_v40 }
  0xf0   :  { %v490_v45 = vpop.f32.mrf.mxu0  ;;  %v1072_v46 = vpop.f32.mrf.mxu1  ;;  %v683_v38 = vmul.f32 %v1018_v23, %v1018_v23 }
  0xf1   :  { %v702_v47 = vadd.f32 %v701_v44, %v671_v43  ;;  %603 = vst [vmem:[%s1196_s4 + $0x28] sm:$0xff] %v490_v45  ;;  %v634_v48 = vadd.f32 %v633_v42, %v490_v45  ;;  %v672_v49 = vmul.f32 %v490_v45, %v490_v45  ;;  %619 = vst [vmem:[%s1196_s4 + $0xa8] sm:$0xff] %v1072_v46 }
  0xf2   :  { %v809_v50 = vpop.f32.mrf.mxu0  ;;  %v1081_v51 = vpop.f32.mrf.mxu1  ;;  %v684_v43 = vmul.f32 %v1036_v26, %v1036_v26  ;;  %v685_v45 = vmul.f32 %v1009_v22, %v1009_v22 }
  0xf3   :  { %v635_v53 = vadd.f32 %v805_v30, %v634_v48  ;;  %v703_v54 = vadd.f32 %v702_v47, %v672_v49  ;;  %608 = vst [vmem:[%s1196_s4 + $0x50] sm:$0xff] %v809_v50  ;;  %624 = vst [vmem:[%s1196_s4 + $0xd0] sm:$0xff] %v1081_v51  ;;  %v677_v11 = vmul.f32 %v809_v50, %v809_v50 }
  0xf4   :  { %v503_v55 = vpop.f32.mrf.mxu0  ;;  %v1090_v56 = vpop.f32.mrf.mxu1  ;;  %v686_v49 = vmul.f32 %v1027_v24, %v1027_v24 }
  0xf5   :  { %v704_v58 = vadd.f32 %v703_v54, %v673_v52  ;;  %606 = vst [vmem:[%s1196_s4 + $0x40] sm:$0xff] %v503_v55  ;;  %v636_v59 = vadd.f32 %v806_v40, %v635_v53  ;;  %622 = vst [vmem:[%s1196_s4 + $0xc0] sm:$0xff] %v1090_v56  ;;  %v675_v63 = vmul.f32 %v503_v55, %v503_v55 }
  0xf6   :  { %v810_v60 = vpop.f32.mrf.mxu0  ;;  %v1099_v61 = vpop.f32.mrf.mxu1  ;;  %v687_v53 = vmul.f32 %v1054_v36, %v1054_v36 }
  0xf7   :  { %v637_v62 = vadd.f32 %v636_v59, %v503_v55  ;;  %v705_v0 = vadd.f32 %v704_v58, %v674_v57  ;;  %609 = vst [vmem:[%s1196_s4 + $0x58] sm:$0xff] %v810_v60  ;;  %625 = vst [vmem:[%s1196_s4 + $0xd8] sm:$0xff] %v1099_v61  ;;  %v678_v16 = vmul.f32 %v810_v60, %v810_v60 }
  0xf8   :  { %v506_v2 = vpop.f32.mrf.mxu0  ;;  %v1108_v3 = vpop.f32.mrf.mxu1  ;;  %v688_v57 = vmul.f32 %v1072_v46, %v1072_v46 }
  0xf9   :  { %v706_v4 = vadd.f32 %v705_v0, %v675_v63  ;;  %607 = vst [vmem:[%s1196_s4 + $0x48] sm:$0xff] %v506_v2  ;;  %v638_v5 = vadd.f32 %v637_v62, %v506_v2  ;;  %v676_v6 = vmul.f32 %v506_v2, %v506_v2  ;;  %623 = vst [vmem:[%s1196_s4 + $0xc8] sm:$0xff] %v1108_v3 }
  0xfa   :  { %v813_v8 = vpop.f32.mrf.mxu0  ;;  %v1117_v9 = vpop.f32.mrf.mxu1  ;;  %v691_v63 = vmul.f32 %v1090_v56, %v1090_v56 }
  0xfb   :  { %v639_v12 = vadd.f32 %v809_v50, %v638_v5  ;;  %v707_v13 = vadd.f32 %v706_v4, %v676_v6  ;;  %612 = vst [vmem:[%s1196_s4 + $0x70] sm:$0xff] %v813_v8  ;;  %628 = vst [vmem:[%s1196_s4 + $0xf0] sm:$0xff] %v1117_v9  ;;  %v681_v30 = vmul.f32 %v813_v8, %v813_v8 }
  0xfc   :  { %v519_v14 = vpop.f32.mrf.mxu0  ;;  %v583_v15 = vpop.f32.mrf.mxu1  ;;  %v692_v4 = vmul.f32 %v1108_v3, %v1108_v3 }
  0xfd   :  { %v708_v17 = vadd.f32 %v707_v13, %v677_v11  ;;  %610 = vst [vmem:[%s1196_s4 + $0x60] sm:$0xff] %v519_v14  ;;  %v640_v18 = vadd.f32 %v810_v60, %v639_v12  ;;  %626 = vst [vmem:[%s1196_s4 + $0xe0] sm:$0xff] %v583_v15  ;;  %v679_v21 = vmul.f32 %v519_v14, %v519_v14 }
  0xfe   :  { %v814_v19 = vpop.f32.mrf.mxu0  ;;  %v1132_v20 = vpop.f32.mrf.mxu1  ;;  %v695_v12 = vmul.f32 %v583_v15, %v583_v15 }
  0xff   :  { %v641_v7 = vadd.f32 %v640_v18, %v519_v14  ;;  %v709_v10 = vadd.f32 %v708_v17, %v678_v16  ;;  %613 = vst [vmem:[%s1196_s4 + $0x78] sm:$0xff] %v814_v19  ;;  %629 = vst [vmem:[%s1196_s4 + $0xf8] sm:$0xff] %v1132_v20  ;;  %v682_v34 = vmul.f32 %v814_v19, %v814_v19 }
 0x100   :  { %v522_v1 = vpop.f32.mrf.mxu0  ;;  %v586_v25 = vpop.f32.mrf.mxu1 }
 0x101   :  { %v710_v27 = vadd.f32 %v709_v10, %v679_v21  ;;  %611 = vst [vmem:[%s1196_s4 + $0x68] sm:$0xff] %v522_v1  ;;  %v642_v28 = vadd.f32 %v641_v7, %v522_v1  ;;  %v680_v29 = vmul.f32 %v522_v1, %v522_v1  ;;  %627 = vst [vmem:[%s1196_s4 + $0xe8] sm:$0xff] %v586_v25 }
 0x102   :  { %v696_v17 = vmul.f32 %v586_v25, %v586_v25 }
 0x103   :  { %v643_v32 = vadd.f32 %v813_v8, %v642_v28  ;;  %v711_v33 = vadd.f32 %v710_v27, %v680_v29  ;;  %v162_v27 = vlaneseq }
 0x105   :  { %v644_v35 = vadd.f32 %v814_v19, %v643_v32  ;;  %v712_v37 = vadd.f32 %v711_v33, %v681_v30  ;;  %v163_v32 = vshrl.u32 %v162_v27, 7 }
 0x107   :  { %v713_v39 = vadd.f32 %v712_v37, %v682_v34  ;;  %v645_v40 = vadd.f32 %v644_v35, %v1018_v23  ;;  %vm737_vm0 = vcmp.eq.s32.totalorder %v163_v32, 1  ;;  %vm736_vm1 = vcmp.eq.s32.totalorder %v163_v32, 0 }
 0x109   :  { %v646_v42 = vadd.f32 %v645_v40, %v1036_v26  ;;  %v714_v44 = vadd.f32 %v713_v39, %v683_v38 }
 0x10b   :  { %v647_v47 = vadd.f32 %v1009_v22, %v646_v42  ;;  %v715_v48 = vadd.f32 %v714_v44, %v684_v43  ;;  %v689_v22 = vmul.f32 %v1045_v31, %v1045_v31 }
 0x10d   :  { %v716_v50 = vadd.f32 %v715_v48, %v685_v45  ;;  %v648_v52 = vadd.f32 %v1027_v24, %v647_v47  ;;  %v690_v24 = vmul.f32 %v1063_v41, %v1063_v41 }
 0x10f   :  { %v649_v23 = vadd.f32 %v648_v52, %v1054_v36  ;;  %v717_v54 = vadd.f32 %v716_v50, %v686_v49 }
 0x111   :  { %v718_v26 = vadd.f32 %v717_v54, %v687_v53  ;;  %v650_v55 = vadd.f32 %v649_v23, %v1072_v46 }
 0x113   :  { %v651_v58 = vadd.f32 %v1045_v31, %v650_v55  ;;  %v719_v59 = vadd.f32 %v718_v26, %v688_v57  ;;  %v693_v31 = vmul.f32 %v1081_v51, %v1081_v51 }
 0x115   :  { %v720_v60 = vadd.f32 %v719_v59, %v689_v22  ;;  %v652_v62 = vadd.f32 %v1063_v41, %v651_v58  ;;  %v694_v41 = vmul.f32 %v1099_v61, %v1099_v61 }
 0x117   :  { %v653_v36 = vadd.f32 %v652_v62, %v1090_v56  ;;  %v721_v0 = vadd.f32 %v720_v60, %v690_v24 }
 0x119   :  { %v722_v2 = vadd.f32 %v721_v0, %v691_v63  ;;  %v654_v46 = vadd.f32 %v653_v36, %v1108_v3  ;;  %v697_v3 = vmul.f32 %v1117_v9, %v1117_v9 }
 0x11b   :  { %v655_v5 = vadd.f32 %v1081_v51, %v654_v46  ;;  %v723_v6 = vadd.f32 %v722_v2, %v692_v4  ;;  %v698_v51 = vmul.f32 %v1132_v20, %v1132_v20 }
 0x11d   :  { %v724_v8 = vadd.f32 %v723_v6, %v693_v31  ;;  %v656_v11 = vadd.f32 %v1099_v61, %v655_v5 }
 0x11f   :  { %v657_v56 = vadd.f32 %v656_v11, %v583_v15  ;;  %v725_v13 = vadd.f32 %v724_v8, %v694_v41 }
 0x121   :  { %v726_v14 = vadd.f32 %v725_v13, %v695_v12  ;;  %v658_v16 = vadd.f32 %v657_v56, %v586_v25 }
 0x123   :  { %v659_v18 = vadd.f32 %v1117_v9, %v658_v16  ;;  %v727_v19 = vadd.f32 %v726_v14, %v696_v17 }
 0x125   :  { %v660_v7 = vadd.f32 %v1132_v20, %v659_v18  ;;  %v728_v21 = vadd.f32 %v727_v19, %v697_v3 }
 0x127   :  { %v661_v10 = vrot.slane %v660_v7, 4  ;;  %v729_v61 = vadd.f32 %v728_v21, %v698_v51 }
 0x129   :  { %v662_v1 = vadd.f32 %v661_v10, %v660_v7  ;;  %v730_v15 = vrot.slane %v729_v61, 4 }
 0x12b   :  { %v663_v28 = vrot.slane %v662_v1, 2  ;;  %v731_v29 = vadd.f32 %v730_v15, %v729_v61 }
 0x12d   :  { %v664_v25 = vadd.f32 %v663_v28, %v662_v1  ;;  %v732_v30 = vrot.slane %v731_v29, 2 }
 0x12f   :  { %v733_v33 = vadd.f32 %v732_v30, %v731_v29  ;;  %v665_v34 = vrot.slane %v664_v25, 1 }
 0x131   :  { %v734_v9 = vrot.slane %v733_v33, 1  ;;  %v666_v37 = vadd.f32 %v665_v34, %v664_v25 }
 0x133   :  { %v735_v35 = vadd.f32 %v734_v9, %v733_v33 }
 0x135   :  { %v738_v38 = vsel %vm737_vm0, %v735_v35, 0.0 }
 0x136   :  { %v739_v20 = vsel %vm736_vm1, %v666_v37, %v738_v38 }
 0x137   :  { %740 = vst [vmem:[%s1197_s5] sm:$0xff] %v739_v20 }

// kernel: resnet_bottleneck_block.10
= control target key start
LH: loop header
LB: loop body
LE: loop exit
PB: predicated region body
PF: predicated region fallthrough
CT: control target
= control target key end

     0   :  { %s931_s1 = inlined_call_operand.vmem [shape: bf16[128,128], index: 1, kind: input, shape index: {}]   ;;  %s932_s0 = inlined_call_operand.vmem [shape: bf16[256,128], index: 0, kind: input, shape index: {}]   ;;  %s933_s2 = inlined_call_operand.vmem [shape: f32[256,128], index: 2, kind: output, shape index: {0}]   ;;  %s934_s3 = inlined_call_operand.vmem [shape: f32[8,128], index: 3, kind: output, shape index: {1}]  }
   0x1   :  { %v632_v0 = vld [vmem:[%s931_s1 + $0x38] sm:$0xff]   ;;  %v633_v1 = vld [vmem:[%s931_s1 + $0x30] sm:$0xff]   ;;  %v634_v2 = vld [vmem:[%s931_s1 + $0x28] sm:$0xff]  }
   0x2   :  { %568 = vmatprep.subr.bf16.mxu0 %v632_v0  ;;  %616 = vmatprep.subr.bf16.mxu1 %v632_v0  ;;  %v635_v3 = vld [vmem:[%s931_s1 + $0x20] sm:$0xff]   ;;  %v636_v5 = vld [vmem:[%s931_s1 + $0x18] sm:$0xff]   ;;  %v637_v6 = vld [vmem:[%s931_s1 + $0x10] sm:$0xff]  }
   0x3   :  { %569 = vmatpush3.bf16.msra.mxu0 %v632_v0  ;;  %624 = vmatpush3.bf16.msra.mxu1 %v632_v0  ;;  %v640_v4 = vld [vmem:[%s932_s0] sm:$0xff]   ;;  %v638_v8 = vld [vmem:[%s931_s1 + $0x8] sm:$0xff]   ;;  %v642_v12 = vld [vmem:[%s932_s0 + $0x10] sm:$0xff]  }
   0x4   :  { %570 = vmatprep.subr.bf16.mxu0 %v633_v1  ;;  %617 = vmatprep.subr.bf16.mxu1 %v633_v1  ;;  %v648_v7 = vld [vmem:[%s932_s0 + $0x40] sm:$0xff]   ;;  %v641_v10 = vld [vmem:[%s932_s0 + $0x8] sm:$0xff]   ;;  %v650_v13 = vld [vmem:[%s932_s0 + $0x50] sm:$0xff]  }
   0x5   :  { %584 = vmatprep.mubr.bf16.mxu0 %v640_v4  ;;  %600 = vmatprep.mubr.bf16.mxu1 %v648_v7  ;;  %v639_v9 = vld [vmem:[%s931_s1] sm:$0xff]   ;;  %v649_v11 = vld [vmem:[%s932_s0 + $0x48] sm:$0xff]   ;;  %v643_v14 = vld [vmem:[%s932_s0 + $0x18] sm:$0xff]  }
   0x6   :  { %v651_v15 = vld [vmem:[%s932_s0 + $0x58] sm:$0xff]   ;;  %v644_v16 = vld [vmem:[%s932_s0 + $0x20] sm:$0xff]   ;;  %v645_v18 = vld [vmem:[%s932_s0 + $0x28] sm:$0xff]  }
   0x7   :  { %571 = vmatpush3.bf16.msra.mxu0 %v633_v1  ;;  %625 = vmatpush3.bf16.msra.mxu1 %v633_v1  ;;  %v652_v17 = vld [vmem:[%s932_s0 + $0x60] sm:$0xff]   ;;  %v653_v19 = vld [vmem:[%s932_s0 + $0x68] sm:$0xff]   ;;  %v646_v20 = vld [vmem:[%s932_s0 + $0x30] sm:$0xff]  }
   0x8   :  { %572 = vmatprep.subr.bf16.mxu0 %v634_v2  ;;  %618 = vmatprep.subr.bf16.mxu1 %v634_v2  ;;  %v654_v21 = vld [vmem:[%s932_s0 + $0x70] sm:$0xff]   ;;  %v647_v22 = vld [vmem:[%s932_s0 + $0x38] sm:$0xff]  }
   0x9   :  { %v655_v23 = vld [vmem:[%s932_s0 + $0x78] sm:$0xff]  }
   0xb   :  { %573 = vmatpush3.bf16.msra.mxu0 %v634_v2  ;;  %626 = vmatpush3.bf16.msra.mxu1 %v634_v2 }
   0xc   :  { %574 = vmatprep.subr.bf16.mxu0 %v635_v3  ;;  %619 = vmatprep.subr.bf16.mxu1 %v635_v3 }
   0xf   :  { %575 = vmatpush3.bf16.msra.mxu0 %v635_v3  ;;  %627 = vmatpush3.bf16.msra.mxu1 %v635_v3 }
  0x10   :  { %576 = vmatprep.subr.bf16.mxu0 %v636_v5  ;;  %620 = vmatprep.subr.bf16.mxu1 %v636_v5 }
  0x13   :  { %577 = vmatpush3.bf16.msra.mxu0 %v636_v5  ;;  %628 = vmatpush3.bf16.msra.mxu1 %v636_v5 }
  0x14   :  { %578 = vmatprep.subr.bf16.mxu0 %v637_v6  ;;  %621 = vmatprep.subr.bf16.mxu1 %v637_v6 }
  0x17   :  { %579 = vmatpush3.bf16.msra.mxu0 %v637_v6  ;;  %629 = vmatpush3.bf16.msra.mxu1 %v637_v6 }
  0x18   :  { %580 = vmatprep.subr.bf16.mxu0 %v638_v8  ;;  %622 = vmatprep.subr.bf16.mxu1 %v638_v8 }
  0x1b   :  { %581 = vmatpush3.bf16.msra.mxu0 %v638_v8  ;;  %630 = vmatpush3.bf16.msra.mxu1 %v638_v8 }
  0x1c   :  { %582 = vmatprep.subr.bf16.mxu0 %v639_v9  ;;  %623 = vmatprep.subr.bf16.mxu1 %v639_v9 }
  0x1f   :  { %583 = vmatpush3.bf16.msra.mxu0 %v639_v9  ;;  %631 = vmatpush3.bf16.msra.mxu1 %v639_v9 }
  0x22   :  { %585 = vmatmul.mubr.bf16.vlgmr.msra.gmra.mxu0 %v641_v10  ;;  %601 = vmatmul.mubr.bf16.vlgmr.msra.gmra.mxu1 %v649_v11 }
  0x23   :  { %588 = vmatprep.mubr.bf16.mxu0 %v642_v12  ;;  %604 = vmatprep.mubr.bf16.mxu1 %v650_v13 }
  0x2a   :  { %589 = vmatmul.mubr.bf16.gmra.mxu0 %v643_v14  ;;  %605 = vmatmul.mubr.bf16.gmra.mxu1 %v651_v15 }
  0x2b   :  { %592 = vmatprep.mubr.bf16.mxu0 %v644_v16  ;;  %608 = vmatprep.mubr.bf16.mxu1 %v652_v17 }
  0x32   :  { %593 = vmatmul.mubr.bf16.gmra.mxu0 %v645_v18  ;;  %609 = vmatmul.mubr.bf16.gmra.mxu1 %v653_v19 }
  0x33   :  { %596 = vmatprep.mubr.bf16.mxu0 %v646_v20  ;;  %612 = vmatprep.mubr.bf16.mxu1 %v654_v21 }
  0x3a   :  { %597 = vmatmul.mubr.bf16.gmra.mxu0 %v647_v22  ;;  %613 = vmatmul.mubr.bf16.gmra.mxu1 %v655_v23 }
  0xe2   :  { %v586_v24 = vpop.f32.mrf.mxu0  ;;  %v748_v25 = vpop.f32.mrf.mxu1 }
  0xe3   :  { %369 = vst [vmem:[%s933_s2 + $0x10] sm:$0xff] %v586_v24  ;;  %385 = vst [vmem:[%s933_s2 + $0x90] sm:$0xff] %v748_v25  ;;  %v438_v37 = vmul.f32 %v586_v24, %v586_v24 }
  0xe4   :  { %v240_v26 = vpop.f32.mrf.mxu0  ;;  %v757_v27 = vpop.f32.mrf.mxu1 }
  0xe5   :  { %367 = vst [vmem:[%s933_s2] sm:$0xff] %v240_v26  ;;  %383 = vst [vmem:[%s933_s2 + $0x80] sm:$0xff] %v757_v27  ;;  %v436_v32 = vmul.f32 %v240_v26, %v240_v26 }
  0xe6   :  { %v587_v28 = vpop.f32.mrf.mxu0  ;;  %v766_v29 = vpop.f32.mrf.mxu1 }
  0xe7   :  { %370 = vst [vmem:[%s933_s2 + $0x18] sm:$0xff] %v587_v28  ;;  %386 = vst [vmem:[%s933_s2 + $0x98] sm:$0xff] %v766_v29  ;;  %v439_v42 = vmul.f32 %v587_v28, %v587_v28 }
  0xe8   :  { %v243_v30 = vpop.f32.mrf.mxu0  ;;  %v775_v31 = vpop.f32.mrf.mxu1 }
  0xe9   :  { %368 = vst [vmem:[%s933_s2 + $0x8] sm:$0xff] %v243_v30  ;;  %v399_v33 = vadd.f32 %v243_v30, %v240_v26  ;;  %v437_v34 = vmul.f32 %v243_v30, %v243_v30  ;;  %384 = vst [vmem:[%s933_s2 + $0x88] sm:$0xff] %v775_v31 }
  0xea   :  { %v590_v35 = vpop.f32.mrf.mxu0  ;;  %v784_v36 = vpop.f32.mrf.mxu1 }
  0xeb   :  { %v400_v38 = vadd.f32 %v586_v24, %v399_v33  ;;  %v468_v39 = vadd.f32 %v437_v34, %v436_v32  ;;  %373 = vst [vmem:[%s933_s2 + $0x30] sm:$0xff] %v590_v35  ;;  %389 = vst [vmem:[%s933_s2 + $0xb0] sm:$0xff] %v784_v36  ;;  %v442_v57 = vmul.f32 %v590_v35, %v590_v35 }
  0xec   :  { %v256_v40 = vpop.f32.mrf.mxu0  ;;  %v793_v41 = vpop.f32.mrf.mxu1 }
  0xed   :  { %v469_v43 = vadd.f32 %v468_v39, %v438_v37  ;;  %371 = vst [vmem:[%s933_s2 + $0x20] sm:$0xff] %v256_v40  ;;  %v401_v44 = vadd.f32 %v587_v28, %v400_v38  ;;  %387 = vst [vmem:[%s933_s2 + $0xa0] sm:$0xff] %v793_v41  ;;  %v440_v48 = vmul.f32 %v256_v40, %v256_v40 }
  0xee   :  { %v591_v45 = vpop.f32.mrf.mxu0  ;;  %v802_v46 = vpop.f32.mrf.mxu1 }
  0xef   :  { %v402_v47 = vadd.f32 %v401_v44, %v256_v40  ;;  %v470_v49 = vadd.f32 %v469_v43, %v439_v42  ;;  %374 = vst [vmem:[%s933_s2 + $0x38] sm:$0xff] %v591_v45  ;;  %390 = vst [vmem:[%s933_s2 + $0xb8] sm:$0xff] %v802_v46  ;;  %v443_v62 = vmul.f32 %v591_v45, %v591_v45 }
  0xf0   :  { %v259_v50 = vpop.f32.mrf.mxu0  ;;  %v811_v51 = vpop.f32.mrf.mxu1  ;;  %v452_v43 = vmul.f32 %v757_v27, %v757_v27 }
  0xf1   :  { %v471_v52 = vadd.f32 %v470_v49, %v440_v48  ;;  %372 = vst [vmem:[%s933_s2 + $0x28] sm:$0xff] %v259_v50  ;;  %v403_v53 = vadd.f32 %v402_v47, %v259_v50  ;;  %v441_v54 = vmul.f32 %v259_v50, %v259_v50  ;;  %388 = vst [vmem:[%s933_s2 + $0xa8] sm:$0xff] %v811_v51 }
  0xf2   :  { %v594_v55 = vpop.f32.mrf.mxu0  ;;  %v820_v56 = vpop.f32.mrf.mxu1  ;;  %v453_v48 = vmul.f32 %v775_v31, %v775_v31  ;;  %v454_v50 = vmul.f32 %v748_v25, %v748_v25 }
  0xf3   :  { %v404_v58 = vadd.f32 %v590_v35, %v403_v53  ;;  %v472_v59 = vadd.f32 %v471_v52, %v441_v54  ;;  %377 = vst [vmem:[%s933_s2 + $0x50] sm:$0xff] %v594_v55  ;;  %393 = vst [vmem:[%s933_s2 + $0xd0] sm:$0xff] %v820_v56  ;;  %v446_v13 = vmul.f32 %v594_v55, %v594_v55 }
  0xf4   :  { %v272_v60 = vpop.f32.mrf.mxu0  ;;  %v829_v61 = vpop.f32.mrf.mxu1  ;;  %v455_v54 = vmul.f32 %v766_v29, %v766_v29 }
  0xf5   :  { %v473_v63 = vadd.f32 %v472_v59, %v442_v57  ;;  %375 = vst [vmem:[%s933_s2 + $0x40] sm:$0xff] %v272_v60  ;;  %v405_v0 = vadd.f32 %v591_v45, %v404_v58  ;;  %391 = vst [vmem:[%s933_s2 + $0xc0] sm:$0xff] %v829_v61  ;;  %v444_v4 = vmul.f32 %v272_v60, %v272_v60 }
  0xf6   :  { %v595_v1 = vpop.f32.mrf.mxu0  ;;  %v838_v2 = vpop.f32.mrf.mxu1  ;;  %v456_v58 = vmul.f32 %v793_v41, %v793_v41 }
  0xf7   :  { %v406_v3 = vadd.f32 %v405_v0, %v272_v60  ;;  %v474_v5 = vadd.f32 %v473_v63, %v443_v62  ;;  %378 = vst [vmem:[%s933_s2 + $0x58] sm:$0xff] %v595_v1  ;;  %394 = vst [vmem:[%s933_s2 + $0xd8] sm:$0xff] %v838_v2  ;;  %v447_v18 = vmul.f32 %v595_v1, %v595_v1 }
  0xf8   :  { %v275_v6 = vpop.f32.mrf.mxu0  ;;  %v847_v7 = vpop.f32.mrf.mxu1  ;;  %v457_v62 = vmul.f32 %v811_v51, %v811_v51 }
  0xf9   :  { %v475_v8 = vadd.f32 %v474_v5, %v444_v4  ;;  %376 = vst [vmem:[%s933_s2 + $0x48] sm:$0xff] %v275_v6  ;;  %v407_v9 = vadd.f32 %v406_v3, %v275_v6  ;;  %v445_v10 = vmul.f32 %v275_v6, %v275_v6  ;;  %392 = vst [vmem:[%s933_s2 + $0xc8] sm:$0xff] %v847_v7 }
  0xfa   :  { %v598_v11 = vpop.f32.mrf.mxu0  ;;  %v856_v12 = vpop.f32.mrf.mxu1  ;;  %v460_v4 = vmul.f32 %v829_v61, %v829_v61 }
  0xfb   :  { %v408_v14 = vadd.f32 %v594_v55, %v407_v9  ;;  %v476_v15 = vadd.f32 %v475_v8, %v445_v10  ;;  %381 = vst [vmem:[%s933_s2 + $0x70] sm:$0xff] %v598_v11  ;;  %397 = vst [vmem:[%s933_s2 + $0xf0] sm:$0xff] %v856_v12  ;;  %v450_v35 = vmul.f32 %v598_v11, %v598_v11 }
  0xfc   :  { %v288_v16 = vpop.f32.mrf.mxu0  ;;  %v352_v17 = vpop.f32.mrf.mxu1  ;;  %v461_v8 = vmul.f32 %v847_v7, %v847_v7 }
  0xfd   :  { %v477_v19 = vadd.f32 %v476_v15, %v446_v13  ;;  %379 = vst [vmem:[%s933_s2 + $0x60] sm:$0xff] %v288_v16  ;;  %v409_v20 = vadd.f32 %v595_v1, %v408_v14  ;;  %395 = vst [vmem:[%s933_s2 + $0xe0] sm:$0xff] %v352_v17  ;;  %v448_v24 = vmul.f32 %v288_v16, %v288_v16 }
  0xfe   :  { %v599_v21 = vpop.f32.mrf.mxu0  ;;  %v871_v22 = vpop.f32.mrf.mxu1  ;;  %v464_v14 = vmul.f32 %v352_v17, %v352_v17 }
  0xff   :  { %v410_v23 = vadd.f32 %v409_v20, %v288_v16  ;;  %v478_v26 = vadd.f32 %v477_v19, %v447_v18  ;;  %382 = vst [vmem:[%s933_s2 + $0x78] sm:$0xff] %v599_v21  ;;  %398 = vst [vmem:[%s933_s2 + $0xf8] sm:$0xff] %v871_v22  ;;  %v451_v39 = vmul.f32 %v599_v21, %v599_v21 }
 0x100   :  { %v291_v28 = vpop.f32.mrf.mxu0  ;;  %v355_v30 = vpop.f32.mrf.mxu1 }
 0x101   :  { %v479_v32 = vadd.f32 %v478_v26, %v448_v24  ;;  %380 = vst [vmem:[%s933_s2 + $0x68] sm:$0xff] %v291_v28  ;;  %v411_v33 = vadd.f32 %v410_v23, %v291_v28  ;;  %v449_v34 = vmul.f32 %v291_v28, %v291_v28  ;;  %396 = vst [vmem:[%s933_s2 + $0xe8] sm:$0xff] %v355_v30 }
 0x102   :  { %v465_v19 = vmul.f32 %v355_v30, %v355_v30 }
 0x103   :  { %v412_v37 = vadd.f32 %v598_v11, %v411_v33  ;;  %v480_v38 = vadd.f32 %v479_v32, %v449_v34  ;;  %v505_v32 = vlaneseq }
 0x105   :  { %v413_v40 = vadd.f32 %v599_v21, %v412_v37  ;;  %v481_v42 = vadd.f32 %v480_v38, %v450_v35  ;;  %v506_v37 = vshrl.u32 %v505_v32, 7 }
 0x107   :  { %v482_v44 = vadd.f32 %v481_v42, %v451_v39  ;;  %v414_v45 = vadd.f32 %v413_v40, %v757_v27  ;;  %vm508_vm0 = vcmp.eq.s32.totalorder %v506_v37, 1  ;;  %vm507_vm1 = vcmp.eq.s32.totalorder %v506_v37, 0 }
 0x109   :  { %v415_v47 = vadd.f32 %v414_v45, %v775_v31  ;;  %v483_v49 = vadd.f32 %v482_v44, %v452_v43 }
 0x10b   :  { %v416_v52 = vadd.f32 %v748_v25, %v415_v47  ;;  %v484_v53 = vadd.f32 %v483_v49, %v453_v48  ;;  %v458_v25 = vmul.f32 %v784_v36, %v784_v36 }
 0x10d   :  { %v485_v55 = vadd.f32 %v484_v53, %v454_v50  ;;  %v417_v57 = vadd.f32 %v766_v29, %v416_v52  ;;  %v459_v29 = vmul.f32 %v802_v46, %v802_v46 }
 0x10f   :  { %v418_v27 = vadd.f32 %v417_v57, %v793_v41  ;;  %v486_v59 = vadd.f32 %v485_v55, %v455_v54 }
 0x111   :  { %v487_v31 = vadd.f32 %v486_v59, %v456_v58  ;;  %v419_v60 = vadd.f32 %v418_v27, %v811_v51 }
 0x113   :  { %v420_v63 = vadd.f32 %v784_v36, %v419_v60  ;;  %v488_v0 = vadd.f32 %v487_v31, %v457_v62  ;;  %v462_v36 = vmul.f32 %v820_v56, %v820_v56 }
 0x115   :  { %v489_v1 = vadd.f32 %v488_v0, %v458_v25  ;;  %v421_v3 = vadd.f32 %v802_v46, %v420_v63  ;;  %v463_v46 = vmul.f32 %v838_v2, %v838_v2 }
 0x117   :  { %v422_v41 = vadd.f32 %v421_v3, %v829_v61  ;;  %v490_v5 = vadd.f32 %v489_v1, %v459_v29 }
 0x119   :  { %v491_v6 = vadd.f32 %v490_v5, %v460_v4  ;;  %v423_v51 = vadd.f32 %v422_v41, %v847_v7  ;;  %v466_v7 = vmul.f32 %v856_v12, %v856_v12 }
 0x11b   :  { %v424_v9 = vadd.f32 %v820_v56, %v423_v51  ;;  %v492_v10 = vadd.f32 %v491_v6, %v461_v8  ;;  %v467_v56 = vmul.f32 %v871_v22, %v871_v22 }
 0x11d   :  { %v493_v11 = vadd.f32 %v492_v10, %v462_v36  ;;  %v425_v13 = vadd.f32 %v838_v2, %v424_v9 }
 0x11f   :  { %v426_v61 = vadd.f32 %v425_v13, %v352_v17  ;;  %v494_v15 = vadd.f32 %v493_v11, %v463_v46 }
 0x121   :  { %v495_v16 = vadd.f32 %v494_v15, %v464_v14  ;;  %v427_v18 = vadd.f32 %v426_v61, %v355_v30 }
 0x123   :  { %v428_v20 = vadd.f32 %v856_v12, %v427_v18  ;;  %v496_v21 = vadd.f32 %v495_v16, %v465_v19 }
 0x125   :  { %v429_v23 = vadd.f32 %v871_v22, %v428_v20  ;;  %v497_v24 = vadd.f32 %v496_v21, %v466_v7 }
 0x127   :  { %v430_v26 = vrot.slane %v429_v23, 4  ;;  %v498_v2 = vadd.f32 %v497_v24, %v467_v56 }
 0x129   :  { %v431_v28 = vadd.f32 %v430_v26, %v429_v23  ;;  %v499_v17 = vrot.slane %v498_v2, 4 }
 0x12b   :  { %v432_v33 = vrot.slane %v431_v28, 2  ;;  %v500_v34 = vadd.f32 %v499_v17, %v498_v2 }
 0x12d   :  { %v433_v30 = vadd.f32 %v432_v33, %v431_v28  ;;  %v501_v35 = vrot.slane %v500_v34, 2 }
 0x12f   :  { %v502_v38 = vadd.f32 %v501_v35, %v500_v34  ;;  %v434_v39 = vrot.slane %v433_v30, 1 }
 0x131   :  { %v503_v12 = vrot.slane %v502_v38, 1  ;;  %v435_v42 = vadd.f32 %v434_v39, %v433_v30 }
 0x133   :  { %v504_v40 = vadd.f32 %v503_v12, %v502_v38 }
 0x135   :  { %v509_v43 = vsel %vm508_vm0, %v504_v40, 0.0 }
 0x136   :  { %v510_v22 = vsel %vm507_vm1, %v435_v42, %v509_v43 }
 0x137   :  { %511 = vst [vmem:[%s934_s3] sm:$0xff] %v510_v22 }

// kernel: resnet_bottleneck_block.11
= control target key start
LH: loop header
LB: loop body
LE: loop exit
PB: predicated region body
PF: predicated region fallthrough
CT: control target
= control target key end

     0   :  { %s818_s0 = inlined_call_operand.vmem [shape: f32[256,128], index: 0, kind: input, shape index: {}]   ;;  %s819_s1 = inlined_call_operand.vmem [shape: f32[1,128], index: 1, kind: input, shape index: {}]   ;;  %s820_s2 = inlined_call_operand.vmem [shape: f32[1,128], index: 2, kind: input, shape index: {}]   ;;  %s821_s3 = inlined_call_operand.vmem [shape: f32[256,128], index: 3, kind: input, shape index: {}]   ;;  %s822_s4 = inlined_call_operand.vmem [shape: f32[1,128], index: 4, kind: input, shape index: {}]   ;;  %s823_s5 = inlined_call_operand.vmem [shape: f32[1,128], index: 5, kind: input, shape index: {}]   ;;  %s824_s6 = inlined_call_operand.vmem [shape: f32[256,128], index: 6, kind: output, shape index: {}]  }
   0x1   :  { %v23_v0 = vld [vmem:[%s818_s0] sm:$0xff]  ;;  %v24_v8 = vld [vmem:[%s818_s0 + $0x8] sm:$0xff]  ;;  %v25_v10 = vld [vmem:[%s818_s0 + $0x10] sm:$0xff] }
   0x2   :  { %v388_v1 = vld [vmem:[%s819_s1] ss:$0 sm:$0xff]  ;;  %v134_v9 = vld [vmem:[%s821_s3 + $0x8] sm:$0xff]  ;;  %v135_v15 = vld [vmem:[%s821_s3 + $0x10] sm:$0xff] }
   0x3   :  { %v393_v2 = vld [vmem:[%s820_s2] ss:$0 sm:$0xff]  ;;  %v62_v3 = vmul.f32 %v388_v1, %v23_v0  ;;  %v63_v12 = vmul.f32 %v388_v1, %v24_v8  ;;  %v64_v14 = vmul.f32 %v388_v1, %v25_v10  ;;  %v26_v16 = vld [vmem:[%s818_s0 + $0x18] sm:$0xff]  ;;  %v28_v24 = vld [vmem:[%s818_s0 + $0x28] sm:$0xff] }
   0x4   :  { %v133_v4 = vld [vmem:[%s821_s3] sm:$0xff]  ;;  %v136_v17 = vld [vmem:[%s821_s3 + $0x18] sm:$0xff]  ;;  %v65_v20 = vmul.f32 %v388_v1, %v26_v16  ;;  %v138_v29 = vld [vmem:[%s821_s3 + $0x28] sm:$0xff]  ;;  %v67_v38 = vmul.f32 %v388_v1, %v28_v24 }
   0x5   :  { %v402_v5 = vld [vmem:[%s822_s4] ss:$0 sm:$0xff]  ;;  %v101_v11 = vadd.f32 %v393_v2, %v62_v3  ;;  %v102_v25 = vadd.f32 %v393_v2, %v63_v12  ;;  %v103_v27 = vadd.f32 %v393_v2, %v64_v14  ;;  %v29_v34 = vld [vmem:[%s818_s0 + $0x30] sm:$0xff]  ;;  %v30_v44 = vld [vmem:[%s818_s0 + $0x38] sm:$0xff] }
   0x6   :  { %v407_v6 = vld [vmem:[%s823_s5] ss:$0 sm:$0xff]  ;;  %v172_v7 = vmul.f32 %v402_v5, %v133_v4  ;;  %v173_v13 = vmul.f32 %v402_v5, %v134_v9  ;;  %v174_v19 = vmul.f32 %v402_v5, %v135_v15  ;;  %v175_v21 = vmul.f32 %v402_v5, %v136_v17  ;;  %v139_v39 = vld [vmem:[%s821_s3 + $0x30] sm:$0xff]  ;;  %v140_v45 = vld [vmem:[%s821_s3 + $0x38] sm:$0xff] }
   0x7   :  { %v27_v22 = vld [vmem:[%s818_s0 + $0x20] sm:$0xff]  ;;  %v104_v32 = vadd.f32 %v393_v2, %v65_v20  ;;  %v177_v43 = vmul.f32 %v402_v5, %v138_v29  ;;  %v106_v48 = vadd.f32 %v393_v2, %v67_v38  ;;  %v68_v49 = vmul.f32 %v388_v1, %v29_v34  ;;  %v32_v56 = vld [vmem:[%s818_s0 + $0x48] sm:$0xff]  ;;  %v33_v4 = vld [vmem:[%s818_s0 + $0x50] sm:$0xff] }
   0x8   :  { %v211_v18 = vadd.f32 %v407_v6, %v172_v7  ;;  %v137_v23 = vld [vmem:[%s821_s3 + $0x20] sm:$0xff]  ;;  %v212_v26 = vadd.f32 %v407_v6, %v173_v13  ;;  %v66_v28 = vmul.f32 %v388_v1, %v27_v22  ;;  %v213_v31 = vadd.f32 %v407_v6, %v174_v19  ;;  %v142_v3 = vld [vmem:[%s821_s3 + $0x48] sm:$0xff]  ;;  %v34_v12 = vld [vmem:[%s818_s0 + $0x58] sm:$0xff] }
   0x9   :  { %v214_v33 = vadd.f32 %v407_v6, %v175_v21  ;;  %v176_v37 = vmul.f32 %v402_v5, %v137_v23  ;;  %v31_v50 = vld [vmem:[%s818_s0 + $0x40] sm:$0xff]  ;;  %v216_v54 = vadd.f32 %v407_v6, %v177_v43  ;;  %v178_v55 = vmul.f32 %v402_v5, %v139_v39  ;;  %v144_v17 = vld [vmem:[%s821_s3 + $0x58] sm:$0xff]  ;;  %v37_v34 = vld [vmem:[%s818_s0 + $0x70] sm:$0xff] }
   0xa   :  { %v243_v30 = vadd.f32 %v211_v18, %v101_v11  ;;  %v244_v35 = vadd.f32 %v212_v26, %v102_v25  ;;  %v105_v36 = vadd.f32 %v393_v2, %v66_v28  ;;  %v245_v41 = vadd.f32 %v213_v31, %v103_v27  ;;  %v141_v51 = vld [vmem:[%s821_s3 + $0x40] sm:$0xff]  ;;  %v143_v11 = vld [vmem:[%s821_s3 + $0x50] sm:$0xff]  ;;  %v36_v28 = vld [vmem:[%s818_s0 + $0x68] sm:$0xff] }
   0xb   :  { %v246_v42 = vadd.f32 %v214_v33, %v104_v32  ;;  %v215_v47 = vadd.f32 %v407_v6, %v176_v37  ;;  %v107_v58 = vadd.f32 %v393_v2, %v68_v49  ;;  %v69_v59 = vmul.f32 %v388_v1, %v30_v44  ;;  %v35_v22 = vld [vmem:[%s818_s0 + $0x60] sm:$0xff]  ;;  %v146_v33 = vld [vmem:[%s821_s3 + $0x68] sm:$0xff]  ;;  %v147_v43 = vld [vmem:[%s821_s3 + $0x70] sm:$0xff] }
   0xc   :  { %v275_v40 = vmax.f32 %v243_v30, 0.0  ;;  %v276_v46 = vmax.f32 %v244_v35, 0.0  ;;  %v277_v52 = vmax.f32 %v245_v41, 0.0  ;;  %v179_v60 = vmul.f32 %v402_v5, %v140_v45  ;;  %v145_v27 = vld [vmem:[%s821_s3 + $0x60] sm:$0xff]  ;;  %v148_v49 = vld [vmem:[%s821_s3 + $0x78] sm:$0xff] }
   0xd   :  { %v278_v53 = vmax.f32 %v246_v42, 0.0  ;;  %v247_v57 = vadd.f32 %v215_v47, %v105_v36  ;;  %v248_v61 = vadd.f32 %v216_v54, %v106_v48  ;;  %v217_v62 = vadd.f32 %v407_v6, %v178_v55  ;;  %v38_v48 = vld [vmem:[%s818_s0 + $0x78] sm:$0xff]  ;;  %v39_v54 = vld [vmem:[%s818_s0 + $0x80] sm:$0xff] }
   0xe   :  { %307 = vst [vmem:[%s824_s6] sm:$0xff] %v275_v40  ;;  %308 = vst [vmem:[%s824_s6 + $0x8] sm:$0xff] %v276_v46  ;;  %v70_v63 = vmul.f32 %v388_v1, %v31_v50  ;;  %v180_v0 = vmul.f32 %v402_v5, %v141_v51  ;;  %v108_v8 = vadd.f32 %v393_v2, %v69_v59  ;;  %v149_v55 = vld [vmem:[%s821_s3 + $0x80] sm:$0xff] }
   0xf   :  { %309 = vst [vmem:[%s824_s6 + $0x10] sm:$0xff] %v277_v52  ;;  %310 = vst [vmem:[%s824_s6 + $0x18] sm:$0xff] %v278_v53  ;;  %v279_v7 = vmax.f32 %v247_v57, 0.0  ;;  %v218_v9 = vadd.f32 %v407_v6, %v179_v60  ;;  %v71_v10 = vmul.f32 %v388_v1, %v32_v56  ;;  %v280_v13 = vmax.f32 %v248_v61, 0.0  ;;  %v40_v60 = vld [vmem:[%s818_s0 + $0x88] sm:$0xff] }
  0x10   :  { %v249_v14 = vadd.f32 %v217_v62, %v107_v58  ;;  %v109_v15 = vadd.f32 %v393_v2, %v70_v63  ;;  %v219_v16 = vadd.f32 %v407_v6, %v180_v0  ;;  %v181_v20 = vmul.f32 %v402_v5, %v142_v3 }
  0x11   :  { %311 = vst [vmem:[%s824_s6 + $0x20] sm:$0xff] %v279_v7  ;;  %v250_v18 = vadd.f32 %v218_v9, %v108_v8  ;;  %v110_v19 = vadd.f32 %v393_v2, %v71_v10  ;;  %v72_v21 = vmul.f32 %v388_v1, %v33_v4  ;;  %312 = vst [vmem:[%s824_s6 + $0x28] sm:$0xff] %v280_v13  ;;  %v150_v9 = vld [vmem:[%s821_s3 + $0x88] sm:$0xff]  ;;  %v41_v10 = vld [vmem:[%s818_s0 + $0x90] sm:$0xff] }
  0x12   :  { %v281_v23 = vmax.f32 %v249_v14, 0.0  ;;  %v251_v24 = vadd.f32 %v219_v16, %v109_v15  ;;  %v182_v25 = vmul.f32 %v402_v5, %v143_v11  ;;  %v73_v26 = vmul.f32 %v388_v1, %v34_v12  ;;  %v151_v15 = vld [vmem:[%s821_s3 + $0x90] sm:$0xff]  ;;  %v42_v16 = vld [vmem:[%s818_s0 + $0x98] sm:$0xff] }
  0x13   :  { %v282_v29 = vmax.f32 %v250_v18, 0.0  ;;  %v220_v30 = vadd.f32 %v407_v6, %v181_v20  ;;  %v111_v31 = vadd.f32 %v393_v2, %v72_v21  ;;  %v183_v32 = vmul.f32 %v402_v5, %v144_v17  ;;  %v152_v21 = vld [vmem:[%s821_s3 + $0x98] sm:$0xff] }
  0x14   :  { %313 = vst [vmem:[%s824_s6 + $0x30] sm:$0xff] %v281_v23  ;;  %v283_v35 = vmax.f32 %v251_v24, 0.0  ;;  %v221_v36 = vadd.f32 %v407_v6, %v182_v25  ;;  %v112_v37 = vadd.f32 %v393_v2, %v73_v26  ;;  %v74_v38 = vmul.f32 %v388_v1, %v35_v22  ;;  %v43_v26 = vld [vmem:[%s818_s0 + $0xa0] sm:$0xff] }
  0x15   :  { %314 = vst [vmem:[%s824_s6 + $0x38] sm:$0xff] %v282_v29  ;;  %v252_v39 = vadd.f32 %v220_v30, %v110_v19  ;;  %v222_v40 = vadd.f32 %v407_v6, %v183_v32  ;;  %v184_v41 = vmul.f32 %v402_v5, %v145_v27  ;;  %v75_v42 = vmul.f32 %v388_v1, %v36_v28  ;;  %v44_v32 = vld [vmem:[%s818_s0 + $0xa8] sm:$0xff] }
  0x16   :  { %315 = vst [vmem:[%s824_s6 + $0x40] sm:$0xff] %v283_v35  ;;  %v253_v44 = vadd.f32 %v221_v36, %v111_v31  ;;  %v113_v45 = vadd.f32 %v393_v2, %v74_v38  ;;  %v185_v46 = vmul.f32 %v402_v5, %v146_v33  ;;  %v76_v47 = vmul.f32 %v388_v1, %v37_v34  ;;  %v153_v31 = vld [vmem:[%s821_s3 + $0xa0] sm:$0xff]  ;;  %v45_v38 = vld [vmem:[%s818_s0 + $0xb0] sm:$0xff] }
  0x17   :  { %v284_v50 = vmax.f32 %v252_v39, 0.0  ;;  %v254_v51 = vadd.f32 %v222_v40, %v112_v37  ;;  %v223_v52 = vadd.f32 %v407_v6, %v184_v41  ;;  %v114_v53 = vadd.f32 %v393_v2, %v75_v42  ;;  %v154_v37 = vld [vmem:[%s821_s3 + $0xa8] sm:$0xff] }
  0x18   :  { %v285_v56 = vmax.f32 %v253_v44, 0.0  ;;  %v224_v57 = vadd.f32 %v407_v6, %v185_v46  ;;  %v115_v58 = vadd.f32 %v393_v2, %v76_v47  ;;  %v186_v59 = vmul.f32 %v402_v5, %v147_v43  ;;  %v155_v47 = vld [vmem:[%s821_s3 + $0xb0] sm:$0xff] }
  0x19   :  { %316 = vst [vmem:[%s824_s6 + $0x48] sm:$0xff] %v284_v50  ;;  %v286_v61 = vmax.f32 %v254_v51, 0.0  ;;  %v255_v62 = vadd.f32 %v223_v52, %v113_v45  ;;  %v77_v63 = vmul.f32 %v388_v1, %v38_v48  ;;  %v187_v0 = vmul.f32 %v402_v5, %v148_v49  ;;  %v46_v52 = vld [vmem:[%s818_s0 + $0xb8] sm:$0xff] }
  0x1a   :  { %317 = vst [vmem:[%s824_s6 + $0x50] sm:$0xff] %v285_v56  ;;  %v256_v3 = vadd.f32 %v224_v57, %v114_v53  ;;  %v225_v4 = vadd.f32 %v407_v6, %v186_v59  ;;  %v78_v7 = vmul.f32 %v388_v1, %v39_v54  ;;  %v188_v8 = vmul.f32 %v402_v5, %v149_v55  ;;  %v156_v53 = vld [vmem:[%s821_s3 + $0xb8] sm:$0xff]  ;;  %v157_v59 = vld [vmem:[%s821_s3 + $0xc0] sm:$0xff] }
  0x1b   :  { %318 = vst [vmem:[%s824_s6 + $0x58] sm:$0xff] %v286_v61  ;;  %v287_v11 = vmax.f32 %v255_v62, 0.0  ;;  %v116_v12 = vadd.f32 %v393_v2, %v77_v63  ;;  %v226_v13 = vadd.f32 %v407_v6, %v187_v0  ;;  %v79_v14 = vmul.f32 %v388_v1, %v40_v60  ;;  %v48_v0 = vld [vmem:[%s818_s0 + $0xc8] sm:$0xff] }
  0x1c   :  { %v288_v17 = vmax.f32 %v256_v3, 0.0  ;;  %v257_v18 = vadd.f32 %v225_v4, %v115_v58  ;;  %v117_v19 = vadd.f32 %v393_v2, %v78_v7  ;;  %v227_v20 = vadd.f32 %v407_v6, %v188_v8  ;;  %v47_v58 = vld [vmem:[%s818_s0 + $0xc0] sm:$0xff] }
  0x1d   :  { %319 = vst [vmem:[%s824_s6 + $0x60] sm:$0xff] %v287_v11  ;;  %v258_v22 = vadd.f32 %v226_v13, %v116_v12  ;;  %v118_v23 = vadd.f32 %v393_v2, %v79_v14  ;;  %v189_v24 = vmul.f32 %v402_v5, %v150_v9  ;;  %v80_v25 = vmul.f32 %v388_v1, %v41_v10  ;;  %v158_v13 = vld [vmem:[%s821_s3 + $0xc8] sm:$0xff]  ;;  %v49_v14 = vld [vmem:[%s818_s0 + $0xd0] sm:$0xff] }
  0x1e   :  { %320 = vst [vmem:[%s824_s6 + $0x68] sm:$0xff] %v288_v17  ;;  %v289_v27 = vmax.f32 %v257_v18, 0.0  ;;  %v259_v28 = vadd.f32 %v227_v20, %v117_v19  ;;  %v190_v29 = vmul.f32 %v402_v5, %v151_v15  ;;  %v81_v30 = vmul.f32 %v388_v1, %v42_v16  ;;  %v159_v19 = vld [vmem:[%s821_s3 + $0xd0] sm:$0xff]  ;;  %v50_v20 = vld [vmem:[%s818_s0 + $0xd8] sm:$0xff] }
  0x1f   :  { %v290_v33 = vmax.f32 %v258_v22, 0.0  ;;  %v228_v34 = vadd.f32 %v407_v6, %v189_v24  ;;  %v119_v35 = vadd.f32 %v393_v2, %v80_v25  ;;  %v191_v36 = vmul.f32 %v402_v5, %v152_v21  ;;  %v160_v25 = vld [vmem:[%s821_s3 + $0xd8] sm:$0xff] }
  0x20   :  { %321 = vst [vmem:[%s824_s6 + $0x70] sm:$0xff] %v289_v27  ;;  %v291_v39 = vmax.f32 %v259_v28, 0.0  ;;  %v229_v40 = vadd.f32 %v407_v6, %v190_v29  ;;  %v120_v41 = vadd.f32 %v393_v2, %v81_v30  ;;  %v82_v42 = vmul.f32 %v388_v1, %v43_v26  ;;  %v51_v30 = vld [vmem:[%s818_s0 + $0xe0] sm:$0xff] }
  0x21   :  { %322 = vst [vmem:[%s824_s6 + $0x78] sm:$0xff] %v290_v33  ;;  %v260_v43 = vadd.f32 %v228_v34, %v118_v23  ;;  %v230_v44 = vadd.f32 %v407_v6, %v191_v36  ;;  %v192_v45 = vmul.f32 %v402_v5, %v153_v31  ;;  %v83_v46 = vmul.f32 %v388_v1, %v44_v32  ;;  %v52_v36 = vld [vmem:[%s818_s0 + $0xe8] sm:$0xff] }
  0x22   :  { %323 = vst [vmem:[%s824_s6 + $0x80] sm:$0xff] %v291_v39  ;;  %v261_v48 = vadd.f32 %v229_v40, %v119_v35  ;;  %v121_v49 = vadd.f32 %v393_v2, %v82_v42  ;;  %v193_v50 = vmul.f32 %v402_v5, %v154_v37  ;;  %v84_v51 = vmul.f32 %v388_v1, %v45_v38  ;;  %v161_v35 = vld [vmem:[%s821_s3 + $0xe0] sm:$0xff]  ;;  %v53_v42 = vld [vmem:[%s818_s0 + $0xf0] sm:$0xff] }
  0x23   :  { %v292_v54 = vmax.f32 %v260_v43, 0.0  ;;  %v262_v55 = vadd.f32 %v230_v44, %v120_v41  ;;  %v231_v56 = vadd.f32 %v407_v6, %v192_v45  ;;  %v122_v57 = vadd.f32 %v393_v2, %v83_v46  ;;  %v162_v41 = vld [vmem:[%s821_s3 + $0xe8] sm:$0xff] }
  0x24   :  { %v293_v60 = vmax.f32 %v261_v48, 0.0  ;;  %v232_v61 = vadd.f32 %v407_v6, %v193_v50  ;;  %v123_v62 = vadd.f32 %v393_v2, %v84_v51  ;;  %v194_v63 = vmul.f32 %v402_v5, %v155_v47  ;;  %v163_v51 = vld [vmem:[%s821_s3 + $0xf0] sm:$0xff] }
  0x25   :  { %324 = vst [vmem:[%s824_s6 + $0x88] sm:$0xff] %v292_v54  ;;  %v294_v3 = vmax.f32 %v262_v55, 0.0  ;;  %v263_v4 = vadd.f32 %v231_v56, %v121_v49  ;;  %v85_v7 = vmul.f32 %v388_v1, %v46_v52  ;;  %v195_v8 = vmul.f32 %v402_v5, %v156_v53  ;;  %v54_v56 = vld [vmem:[%s818_s0 + $0xf8] sm:$0xff] }
  0x26   :  { %325 = vst [vmem:[%s824_s6 + $0x90] sm:$0xff] %v293_v60  ;;  %v264_v9 = vadd.f32 %v232_v61, %v122_v57  ;;  %v233_v10 = vadd.f32 %v407_v6, %v194_v63  ;;  %v86_v11 = vmul.f32 %v388_v1, %v47_v58  ;;  %v196_v12 = vmul.f32 %v402_v5, %v157_v59  ;;  %v164_v57 = vld [vmem:[%s821_s3 + $0xf8] sm:$0xff] }
  0x27   :  { %326 = vst [vmem:[%s824_s6 + $0x98] sm:$0xff] %v294_v3  ;;  %v295_v15 = vmax.f32 %v263_v4, 0.0  ;;  %v124_v16 = vadd.f32 %v393_v2, %v85_v7  ;;  %v234_v17 = vadd.f32 %v407_v6, %v195_v8  ;;  %v87_v18 = vmul.f32 %v388_v1, %v48_v0 }
  0x28   :  { %v296_v21 = vmax.f32 %v264_v9, 0.0  ;;  %v265_v22 = vadd.f32 %v233_v10, %v123_v62  ;;  %v125_v23 = vadd.f32 %v393_v2, %v86_v11  ;;  %v235_v24 = vadd.f32 %v407_v6, %v196_v12 }
  0x29   :  { %327 = vst [vmem:[%s824_s6 + $0xa0] sm:$0xff] %v295_v15  ;;  %v266_v26 = vadd.f32 %v234_v17, %v124_v16  ;;  %v126_v27 = vadd.f32 %v393_v2, %v87_v18  ;;  %v197_v28 = vmul.f32 %v402_v5, %v158_v13  ;;  %v88_v29 = vmul.f32 %v388_v1, %v49_v14 }
  0x2a   :  { %328 = vst [vmem:[%s824_s6 + $0xa8] sm:$0xff] %v296_v21  ;;  %v297_v31 = vmax.f32 %v265_v22, 0.0  ;;  %v267_v32 = vadd.f32 %v235_v24, %v125_v23  ;;  %v198_v33 = vmul.f32 %v402_v5, %v159_v19  ;;  %v89_v34 = vmul.f32 %v388_v1, %v50_v20 }
  0x2b   :  { %v298_v37 = vmax.f32 %v266_v26, 0.0  ;;  %v236_v38 = vadd.f32 %v407_v6, %v197_v28  ;;  %v127_v39 = vadd.f32 %v393_v2, %v88_v29  ;;  %v199_v40 = vmul.f32 %v402_v5, %v160_v25 }
  0x2c   :  { %329 = vst [vmem:[%s824_s6 + $0xb0] sm:$0xff] %v297_v31  ;;  %v299_v43 = vmax.f32 %v267_v32, 0.0  ;;  %v237_v44 = vadd.f32 %v407_v6, %v198_v33  ;;  %v128_v45 = vadd.f32 %v393_v2, %v89_v34  ;;  %v90_v46 = vmul.f32 %v388_v1, %v51_v30 }
  0x2d   :  { %330 = vst [vmem:[%s824_s6 + $0xb8] sm:$0xff] %v298_v37  ;;  %v268_v47 = vadd.f32 %v236_v38, %v126_v27  ;;  %v238_v48 = vadd.f32 %v407_v6, %v199_v40  ;;  %v200_v49 = vmul.f32 %v402_v5, %v161_v35  ;;  %v91_v50 = vmul.f32 %v388_v1, %v52_v36 }
  0x2e   :  { %331 = vst [vmem:[%s824_s6 + $0xc0] sm:$0xff] %v299_v43  ;;  %v269_v52 = vadd.f32 %v237_v44, %v127_v39  ;;  %v129_v53 = vadd.f32 %v393_v2, %v90_v46  ;;  %v201_v54 = vmul.f32 %v402_v5, %v162_v41  ;;  %v92_v55 = vmul.f32 %v388_v1, %v53_v42 }
  0x2f   :  { %v300_v58 = vmax.f32 %v268_v47, 0.0  ;;  %v270_v59 = vadd.f32 %v238_v48, %v128_v45  ;;  %v239_v60 = vadd.f32 %v407_v6, %v200_v49  ;;  %v130_v61 = vadd.f32 %v393_v2, %v91_v50 }
  0x30   :  { %v301_v62 = vmax.f32 %v269_v52, 0.0  ;;  %v240_v63 = vadd.f32 %v407_v6, %v201_v54  ;;  %v131_v0 = vadd.f32 %v393_v2, %v92_v55  ;;  %v202_v3 = vmul.f32 %v402_v5, %v163_v51 }
  0x31   :  { %332 = vst [vmem:[%s824_s6 + $0xc8] sm:$0xff] %v300_v58  ;;  %v302_v4 = vmax.f32 %v270_v59, 0.0  ;;  %v271_v7 = vadd.f32 %v239_v60, %v129_v53  ;;  %v93_v8 = vmul.f32 %v388_v1, %v54_v56  ;;  %v203_v9 = vmul.f32 %v402_v5, %v164_v57 }
  0x32   :  { %333 = vst [vmem:[%s824_s6 + $0xd0] sm:$0xff] %v301_v62  ;;  %v272_v10 = vadd.f32 %v240_v63, %v130_v61  ;;  %v241_v11 = vadd.f32 %v407_v6, %v202_v3 }
  0x33   :  { %334 = vst [vmem:[%s824_s6 + $0xd8] sm:$0xff] %v302_v4  ;;  %v303_v12 = vmax.f32 %v271_v7, 0.0  ;;  %v132_v13 = vadd.f32 %v393_v2, %v93_v8  ;;  %v242_v14 = vadd.f32 %v407_v6, %v203_v9 }
  0x34   :  { %v304_v15 = vmax.f32 %v272_v10, 0.0  ;;  %v273_v1 = vadd.f32 %v241_v11, %v131_v0 }
  0x35   :  { %335 = vst [vmem:[%s824_s6 + $0xe0] sm:$0xff] %v303_v12  ;;  %v274_v5 = vadd.f32 %v242_v14, %v132_v13 }
  0x36   :  { %336 = vst [vmem:[%s824_s6 + $0xe8] sm:$0xff] %v304_v15  ;;  %v305_v16 = vmax.f32 %v273_v1, 0.0 }
  0x37   :  { %v306_v17 = vmax.f32 %v274_v5, 0.0 }
  0x38   :  { %337 = vst [vmem:[%s824_s6 + $0xf0] sm:$0xff] %v305_v16 }
  0x39   :  { %338 = vst [vmem:[%s824_s6 + $0xf8] sm:$0xff] %v306_v17 }

// kernel: resnet_bottleneck_block.8
= control target key start
LH: loop header
LB: loop body
LE: loop exit
PB: predicated region body
PF: predicated region fallthrough
CT: control target
= control target key end

     0   :  { %s4663_s1 = inlined_call_operand.vmem [shape: bf16[1152,128], index: 1, kind: input, shape index: {}]   ;;  %s4664_s0 = inlined_call_operand.vmem [shape: bf16[256,1152], index: 0, kind: input, shape index: {}]   ;;  %s4665_s2 = inlined_call_operand.vmem [shape: f32[256,128], index: 2, kind: output, shape index: {0}]   ;;  %s4666_s3 = inlined_call_operand.vmem [shape: f32[8,128], index: 3, kind: output, shape index: {1}]  }
   0x1   :  { %v3196_v0 = vld [vmem:[%s4663_s1 + $0x78] sm:$0xff]   ;;  %v3198_v2 = vld [vmem:[%s4663_s1 + $0x70] sm:$0xff]   ;;  %v3200_v4 = vld [vmem:[%s4663_s1 + $0x68] sm:$0xff]  }
   0x2   :  { %v3197_v1 = vld [vmem:[%s4663_s1 + $0x38] sm:$0xff]   ;;  %2660 = vmatprep.subr.bf16.mxu0 %v3196_v0  ;;  %3180 = vmatprep.subr.bf16.mxu1 %v3196_v0  ;;  %v3199_v3 = vld [vmem:[%s4663_s1 + $0x30] sm:$0xff]   ;;  %v3201_v5 = vld [vmem:[%s4663_s1 + $0x28] sm:$0xff]  }
   0x3   :  { %2661 = vmatpush3.bf16.msra.mxu0 %v3197_v1  ;;  %3188 = vmatpush3.bf16.msra.mxu1 %v3197_v1  ;;  %v3202_v6 = vld [vmem:[%s4663_s1 + $0x60] sm:$0xff]   ;;  %v3204_v8 = vld [vmem:[%s4663_s1 + $0x58] sm:$0xff]   ;;  %v3206_v10 = vld [vmem:[%s4663_s1 + $0x50] sm:$0xff]  }
   0x4   :  { %2662 = vmatprep.subr.bf16.mxu0 %v3198_v2  ;;  %3181 = vmatprep.subr.bf16.mxu1 %v3198_v2  ;;  %v3203_v7 = vld [vmem:[%s4663_s1 + $0x20] sm:$0xff]   ;;  %v3205_v9 = vld [vmem:[%s4663_s1 + $0x18] sm:$0xff]   ;;  %v3207_v13 = vld [vmem:[%s4663_s1 + $0x10] sm:$0xff]  }
   0x5   :  { %v3214_v11 = vld [vmem:[%s4664_s0 + $0x4] ss:$36 sps:$4 sm:$0xff]   ;;  %v3218_v18 = vld [vmem:[%s4663_s1 + $0xf8] sm:$0xff]   ;;  %v3222_v24 = vld [vmem:[%s4663_s1 + $0xf0] sm:$0xff]  }
   0x6   :  { %v3217_v12 = vld [vmem:[%s4664_s0 + $0x364] ss:$36 sps:$4 sm:$0xff]   ;;  %1518 = vmatprep.mubr.bf16.mxu0 %v3214_v11  ;;  %v3219_v21 = vld [vmem:[%s4663_s1 + $0x178] sm:$0xff]   ;;  %v3224_v25 = vld [vmem:[%s4664_s0 + $0x4c] ss:$36 sps:$4 sm:$0xff]  }
   0x7   :  { %2663 = vmatpush3.bf16.msra.mxu0 %v3199_v3  ;;  %3189 = vmatpush3.bf16.msra.mxu1 %v3199_v3  ;;  %v3208_v14 = vld [vmem:[%s4663_s1 + $0x48] sm:$0xff]   ;;  %v3210_v16 = vld [vmem:[%s4663_s1 + $0x40] sm:$0xff]   ;;  %v3220_v22 = vld [vmem:[%s4663_s1 + $0xb8] sm:$0xff]  }
   0x8   :  { %2664 = vmatprep.subr.bf16.mxu0 %v3200_v4  ;;  %3182 = vmatprep.subr.bf16.mxu1 %v3200_v4  ;;  %v3209_v15 = vld [vmem:[%s4663_s1 + $0x8] sm:$0xff]   ;;  %v3211_v17 = vld [vmem:[%s4663_s1] sm:$0xff]   ;;  %v3221_v23 = vld [vmem:[%s4663_s1 + $0x138] sm:$0xff]  }
   0x9   :  { %1614 = vmatprep.mubr.bf16.mxu1 %v3217_v12  ;;  %v3212_v19 = vld [vmem:[%s4664_s0] ss:$36 sps:$4 sm:$0xff]   ;;  %v3226_v26 = vld [vmem:[%s4664_s0 + $0x3ac] ss:$36 sps:$4 sm:$0xff]   ;;  %v3236_v35 = vld [vmem:[%s4664_s0 + $0x94] ss:$36 sps:$4 sm:$0xff]  }
   0xa   :  { %v3215_v20 = vld [vmem:[%s4664_s0 + $0x360] ss:$36 sps:$4 sm:$0xff]   ;;  %v3233_v27 = vld [vmem:[%s4663_s1 + $0x170] sm:$0xff]   ;;  %v3228_v30 = vld [vmem:[%s4664_s0 + $0x48] ss:$36 sps:$4 sm:$0xff]  }
   0xb   :  { %2665 = vmatpush3.bf16.msra.mxu0 %v3201_v5  ;;  %3190 = vmatpush3.bf16.msra.mxu1 %v3201_v5  ;;  %v3223_v28 = vld [vmem:[%s4663_s1 + $0xb0] sm:$0xff]   ;;  %v3229_v31 = vld [vmem:[%s4664_s0 + $0x3a8] ss:$36 sps:$4 sm:$0xff]   ;;  %v3232_v34 = vld [vmem:[%s4663_s1 + $0xe0] sm:$0xff]  }
   0xc   :  { %2666 = vmatprep.subr.bf16.mxu0 %v3202_v6  ;;  %3183 = vmatprep.subr.bf16.mxu1 %v3202_v6  ;;  %v3235_v29 = vld [vmem:[%s4663_s1 + $0x130] sm:$0xff]   ;;  %v3230_v32 = vld [vmem:[%s4663_s1 + $0xe8] sm:$0xff]   ;;  %v3234_v37 = vld [vmem:[%s4663_s1 + $0xa0] sm:$0xff]  }
   0xd   :  { %v3231_v33 = vld [vmem:[%s4663_s1 + $0xa8] sm:$0xff]   ;;  %v3238_v36 = vld [vmem:[%s4664_s0 + $0x3f4] ss:$36 sps:$4 sm:$0xff]   ;;  %v3246_v45 = vld [vmem:[%s4664_s0 + $0xdc] ss:$36 sps:$4 sm:$0xff]  }
   0xe   :  { %v3242_v38 = vld [vmem:[%s4663_s1 + $0xd8] sm:$0xff]   ;;  %v3240_v39 = vld [vmem:[%s4664_s0 + $0x90] ss:$36 sps:$4 sm:$0xff]   ;;  %v3253_v41 = vld [vmem:[%s4663_s1 + $0x168] sm:$0xff]  }
   0xf   :  { %2667 = vmatpush3.bf16.msra.mxu0 %v3203_v7  ;;  %3191 = vmatpush3.bf16.msra.mxu1 %v3203_v7  ;;  %v3241_v40 = vld [vmem:[%s4664_s0 + $0x3f0] ss:$36 sps:$4 sm:$0xff]   ;;  %v3243_v42 = vld [vmem:[%s4663_s1 + $0x98] sm:$0xff]   ;;  %v3255_v44 = vld [vmem:[%s4663_s1 + $0x128] sm:$0xff]  }
  0x10   :  { %2668 = vmatprep.subr.bf16.mxu0 %v3204_v8  ;;  %3184 = vmatprep.subr.bf16.mxu1 %v3204_v8  ;;  %v3244_v43 = vld [vmem:[%s4663_s1 + $0xd0] sm:$0xff]   ;;  %v3248_v46 = vld [vmem:[%s4664_s0 + $0x43c] ss:$36 sps:$4 sm:$0xff]   ;;  %v3252_v50 = vld [vmem:[%s4663_s1 + $0xc8] sm:$0xff]  }
  0x11   :  { %v3245_v47 = vld [vmem:[%s4663_s1 + $0x90] sm:$0xff]   ;;  %v3250_v48 = vld [vmem:[%s4664_s0 + $0xd8] ss:$36 sps:$4 sm:$0xff]   ;;  %v3254_v51 = vld [vmem:[%s4663_s1 + $0x88] sm:$0xff]  }
  0x12   :  { %v3251_v49 = vld [vmem:[%s4664_s0 + $0x438] ss:$36 sps:$4 sm:$0xff]   ;;  %v3258_v52 = vld [vmem:[%s4664_s0 + $0x124] ss:$36 sps:$4 sm:$0xff]   ;;  %v3262_v56 = vld [vmem:[%s4664_s0 + $0xc] ss:$36 sps:$4 sm:$0xff]  }
  0x13   :  { %2669 = vmatpush3.bf16.msra.mxu0 %v3205_v9  ;;  %3192 = vmatpush3.bf16.msra.mxu1 %v3205_v9  ;;  %v3256_v53 = vld [vmem:[%s4663_s1 + $0xc0] sm:$0xff]   ;;  %v3260_v58 = vld [vmem:[%s4664_s0 + $0x8] ss:$36 sps:$4 sm:$0xff]   ;;  %v3264_v60 = vld [vmem:[%s4663_s1 + $0x1f8] sm:$0xff]  }
  0x14   :  { %2670 = vmatprep.subr.bf16.mxu0 %v3206_v10  ;;  %3185 = vmatprep.subr.bf16.mxu1 %v3206_v10  ;;  %v3266_v54 = vld [vmem:[%s4663_s1 + $0x160] sm:$0xff]   ;;  %v3265_v61 = vld [vmem:[%s4663_s1 + $0x1b8] sm:$0xff]   ;;  %v3268_v62 = vld [vmem:[%s4664_s0 + $0x16c] ss:$36 sps:$4 sm:$0xff]  }
  0x15   :  { %v3267_v55 = vld [vmem:[%s4663_s1 + $0x120] sm:$0xff]   ;;  %v3280_v63 = vld [vmem:[%s4663_s1 + $0x158] sm:$0xff]   ;;  %v3281_v2 = vld [vmem:[%s4663_s1 + $0x1f0] sm:$0xff]  }
  0x16   :  { %v3257_v57 = vld [vmem:[%s4663_s1 + $0x80] sm:$0xff]   ;;  %v3270_v0 = vld [vmem:[%s4664_s0 + $0x54] ss:$36 sps:$4 sm:$0xff]   ;;  %v3272_v4 = vld [vmem:[%s4664_s0 + $0x168] ss:$36 sps:$4 sm:$0xff]  }
  0x17   :  { %2671 = vmatpush3.bf16.msra.mxu0 %v3207_v13  ;;  %3193 = vmatpush3.bf16.msra.mxu1 %v3207_v13  ;;  %v3263_v59 = vld [vmem:[%s4664_s0 + $0x120] ss:$36 sps:$4 sm:$0xff]   ;;  %v3282_v1 = vld [vmem:[%s4663_s1 + $0x118] sm:$0xff]   ;;  %v3283_v3 = vld [vmem:[%s4663_s1 + $0x1b0] sm:$0xff]  }
  0x18   :  { %2672 = vmatprep.subr.bf16.mxu0 %v3208_v14  ;;  %3186 = vmatprep.subr.bf16.mxu1 %v3208_v14  ;;  %v3290_v5 = vld [vmem:[%s4663_s1 + $0x150] sm:$0xff]   ;;  %v3276_v9 = vld [vmem:[%s4664_s0 + $0x9c] ss:$36 sps:$4 sm:$0xff]   ;;  %v3298_v10 = vld [vmem:[%s4663_s1 + $0x1e8] sm:$0xff]  }
  0x19   :  { %v3291_v6 = vld [vmem:[%s4663_s1 + $0x110] sm:$0xff]   ;;  %v3299_v11 = vld [vmem:[%s4663_s1 + $0x1a8] sm:$0xff]   ;;  %v3279_v13 = vld [vmem:[%s4664_s0 + $0x98] ss:$36 sps:$4 sm:$0xff]  }
  0x1a   :  { %v3273_v7 = vld [vmem:[%s4664_s0 + $0x50] ss:$36 sps:$4 sm:$0xff]   ;;  %v3284_v14 = vld [vmem:[%s4664_s0 + $0x1fc] ss:$36 sps:$4 sm:$0xff]  }
  0x1b   :  { %2673 = vmatpush3.bf16.msra.mxu0 %v3209_v15  ;;  %3194 = vmatpush3.bf16.msra.mxu1 %v3209_v15  ;;  %v3274_v8 = vld [vmem:[%s4664_s0 + $0x1b4] ss:$36 sps:$4 sm:$0xff]   ;;  %v3306_v15 = vld [vmem:[%s4663_s1 + $0x148] sm:$0xff]  }
  0x1c   :  { %2674 = vmatprep.subr.bf16.mxu0 %v3210_v16  ;;  %3187 = vmatprep.subr.bf16.mxu1 %v3210_v16  ;;  %v3278_v12 = vld [vmem:[%s4664_s0 + $0x1b0] ss:$36 sps:$4 sm:$0xff]   ;;  %v3307_v16 = vld [vmem:[%s4663_s1 + $0x108] sm:$0xff]  }
  0x1f   :  { %2675 = vmatpush3.bf16.msra.mxu0 %v3211_v17  ;;  %3195 = vmatpush3.bf16.msra.mxu1 %v3211_v17  ;;  %v3286_v17 = vld [vmem:[%s4664_s0 + $0xe4] ss:$36 sps:$4 sm:$0xff]  }
  0x20   :  { %2772 = vmatprep.subr.bf16.mxu1 %v3218_v18  ;;  %2884 = vmatprep.subr.bf16.mxu0 %v3219_v21  ;;  %v3314_v18 = vld [vmem:[%s4663_s1 + $0x1e0] sm:$0xff]  }
  0x21   :  { %v3316_v21 = vld [vmem:[%s4663_s1 + $0x140] sm:$0xff]  }
  0x22   :  { %1519 = vmatmul.mubr.bf16.vlgmr.msra.gmra.mxu0 %v3212_v19  ;;  %1615 = vmatmul.mubr.bf16.vlgmr.msra.gmra.mxu1 %v3215_v20  ;;  %v3315_v19 = vld [vmem:[%s4663_s1 + $0x1a0] sm:$0xff]   ;;  %v3288_v20 = vld [vmem:[%s4664_s0 + $0x1f8] ss:$36 sps:$4 sm:$0xff]  }
  0x23   :  { %2773 = vmatpush3.bf16.msra.mxu1 %v3220_v22  ;;  %2885 = vmatpush3.bf16.msra.mxu0 %v3221_v23  ;;  %v3317_v22 = vld [vmem:[%s4663_s1 + $0x100] sm:$0xff]  }
  0x24   :  { %2774 = vmatprep.subr.bf16.mxu1 %v3222_v24  ;;  %1526 = vmatprep.mubr.bf16.mxu0 %v3224_v25  ;;  %v3289_v23 = vld [vmem:[%s4664_s0 + $0xe0] ss:$36 sps:$4 sm:$0xff]   ;;  %v3294_v25 = vld [vmem:[%s4664_s0 + $0x12c] ss:$36 sps:$4 sm:$0xff]  }
  0x25   :  { %1622 = vmatprep.mubr.bf16.mxu1 %v3226_v26  ;;  %2886 = vmatprep.subr.bf16.mxu0 %v3233_v27  ;;  %v3292_v24 = vld [vmem:[%s4664_s0 + $0x244] ss:$36 sps:$4 sm:$0xff]   ;;  %v3330_v26 = vld [vmem:[%s4663_s1 + $0x1d8] sm:$0xff]  }
  0x26   :  { %v3296_v27 = vld [vmem:[%s4664_s0 + $0x240] ss:$36 sps:$4 sm:$0xff]  }
  0x27   :  { %2775 = vmatpush3.bf16.msra.mxu1 %v3223_v28  ;;  %2887 = vmatpush3.bf16.msra.mxu0 %v3235_v29  ;;  %v3331_v28 = vld [vmem:[%s4663_s1 + $0x238] sm:$0xff]  }
  0x28   :  { %2776 = vmatprep.subr.bf16.mxu1 %v3230_v32  ;;  %2888 = vmatprep.subr.bf16.mxu0 %v3253_v41  ;;  %v3332_v29 = vld [vmem:[%s4663_s1 + $0x198] sm:$0xff]   ;;  %v3360_v41 = vld [vmem:[%s4663_s1 + $0x1c8] sm:$0xff]  }
  0x29   :  { %v3302_v32 = vld [vmem:[%s4664_s0 + $0x174] ss:$36 sps:$4 sm:$0xff]  }
  0x2a   :  { %1527 = vmatmul.mubr.bf16.gmra.mxu0 %v3228_v30  ;;  %1623 = vmatmul.mubr.bf16.gmra.mxu1 %v3229_v31  ;;  %v3297_v30 = vld [vmem:[%s4664_s0 + $0x128] ss:$36 sps:$4 sm:$0xff]  }
  0x2b   :  { %2777 = vmatpush3.bf16.msra.mxu1 %v3231_v33  ;;  %1534 = vmatprep.mubr.bf16.mxu0 %v3236_v35  ;;  %v3300_v31 = vld [vmem:[%s4664_s0 + $0x28c] ss:$36 sps:$4 sm:$0xff]  }
  0x2c   :  { %2778 = vmatprep.subr.bf16.mxu1 %v3232_v34  ;;  %1630 = vmatprep.mubr.bf16.mxu1 %v3238_v36  ;;  %v3345_v33 = vld [vmem:[%s4663_s1 + $0x1d0] sm:$0xff]   ;;  %v3304_v34 = vld [vmem:[%s4664_s0 + $0x288] ss:$36 sps:$4 sm:$0xff]  }
  0x2d   :  { %2889 = vmatpush3.bf16.msra.mxu0 %v3255_v44  ;;  %v3305_v35 = vld [vmem:[%s4664_s0 + $0x170] ss:$36 sps:$4 sm:$0xff]   ;;  %v3320_v44 = vld [vmem:[%s4664_s0 + $0x204] ss:$36 sps:$4 sm:$0xff]  }
  0x2e   :  { %2890 = vmatprep.subr.bf16.mxu0 %v3266_v54  ;;  %v3347_v36 = vld [vmem:[%s4663_s1 + $0x190] sm:$0xff]   ;;  %v3335_v54 = vld [vmem:[%s4664_s0 + $0x5c] ss:$36 sps:$4 sm:$0xff]  }
  0x2f   :  { %2779 = vmatpush3.bf16.msra.mxu1 %v3234_v37  ;;  %v3308_v37 = vld [vmem:[%s4664_s0 + $0x2d4] ss:$36 sps:$4 sm:$0xff]  }
  0x30   :  { %2780 = vmatprep.subr.bf16.mxu1 %v3242_v38  ;;  %v3310_v38 = vld [vmem:[%s4664_s0 + $0x1bc] ss:$36 sps:$4 sm:$0xff]  }
  0x31   :  { %2891 = vmatpush3.bf16.msra.mxu0 %v3267_v55  ;;  %v3346_v55 = vld [vmem:[%s4663_s1 + $0x230] sm:$0xff]  }
  0x32   :  { %1535 = vmatmul.mubr.bf16.gmra.mxu0 %v3240_v39  ;;  %1631 = vmatmul.mubr.bf16.gmra.mxu1 %v3241_v40  ;;  %v3312_v39 = vld [vmem:[%s4664_s0 + $0x2d0] ss:$36 sps:$4 sm:$0xff]   ;;  %v3313_v40 = vld [vmem:[%s4664_s0 + $0x1b8] ss:$36 sps:$4 sm:$0xff]  }
  0x33   :  { %2781 = vmatpush3.bf16.msra.mxu1 %v3243_v42  ;;  %1542 = vmatprep.mubr.bf16.mxu0 %v3246_v45  ;;  %v3318_v42 = vld [vmem:[%s4664_s0 + $0x31c] ss:$36 sps:$4 sm:$0xff]  }
  0x34   :  { %2782 = vmatprep.subr.bf16.mxu1 %v3244_v43  ;;  %1638 = vmatprep.mubr.bf16.mxu1 %v3248_v46  ;;  %v3362_v43 = vld [vmem:[%s4663_s1 + $0x188] sm:$0xff]   ;;  %v3322_v45 = vld [vmem:[%s4664_s0 + $0x318] ss:$36 sps:$4 sm:$0xff]   ;;  %v3323_v46 = vld [vmem:[%s4664_s0 + $0x200] ss:$36 sps:$4 sm:$0xff]  }
  0x35   :  { %2892 = vmatprep.subr.bf16.mxu0 %v3280_v63  ;;  %v3343_v63 = vld [vmem:[%s4664_s0 + $0x2d8] ss:$36 sps:$4 sm:$0xff]  }
  0x36   :  { %2893 = vmatpush3.bf16.msra.mxu0 %v3282_v1  ;;  %v3348_v1 = vld [vmem:[%s4664_s0 + $0x324] ss:$36 sps:$4 sm:$0xff]  }
  0x37   :  { %2783 = vmatpush3.bf16.msra.mxu1 %v3245_v47  ;;  %2894 = vmatprep.subr.bf16.mxu0 %v3290_v5  ;;  %v3375_v47 = vld [vmem:[%s4663_s1 + $0x1c0] sm:$0xff]   ;;  %v3353_v5 = vld [vmem:[%s4664_s0 + $0xe8] ss:$36 sps:$4 sm:$0xff]  }
  0x38   :  { %2784 = vmatprep.subr.bf16.mxu1 %v3252_v50  ;;  %v3328_v50 = vld [vmem:[%s4664_s0 + $0x14] ss:$36 sps:$4 sm:$0xff]  }
  0x3a   :  { %1543 = vmatmul.mubr.bf16.gmra.mxu0 %v3250_v48  ;;  %1639 = vmatmul.mubr.bf16.gmra.mxu1 %v3251_v49  ;;  %v3324_v48 = vld [vmem:[%s4664_s0 + $0x24c] ss:$36 sps:$4 sm:$0xff]   ;;  %v3377_v49 = vld [vmem:[%s4663_s1 + $0x180] sm:$0xff]  }
  0x3b   :  { %2785 = vmatpush3.bf16.msra.mxu1 %v3254_v51  ;;  %1550 = vmatprep.mubr.bf16.mxu0 %v3258_v52  ;;  %v3326_v51 = vld [vmem:[%s4664_s0 + $0x10] ss:$36 sps:$4 sm:$0xff]   ;;  %v3329_v52 = vld [vmem:[%s4664_s0 + $0x248] ss:$36 sps:$4 sm:$0xff]  }
  0x3c   :  { %2786 = vmatprep.subr.bf16.mxu1 %v3256_v53  ;;  %1679 = vmatprep.mubr.bf16.mxu1 %v3262_v56  ;;  %v3333_v53 = vld [vmem:[%s4664_s0 + $0x294] ss:$36 sps:$4 sm:$0xff]   ;;  %v3361_v56 = vld [vmem:[%s4663_s1 + $0x228] sm:$0xff]  }
  0x3d   :  { %2895 = vmatpush3.bf16.msra.mxu0 %v3291_v6  ;;  %v3416_v6 = vld [vmem:[%s4663_s1 + $0x208] sm:$0xff]  }
  0x3e   :  { %2896 = vmatprep.subr.bf16.mxu0 %v3306_v15  ;;  %v3368_v15 = vld [vmem:[%s4664_s0 + $0x178] ss:$36 sps:$4 sm:$0xff]  }
  0x3f   :  { %2787 = vmatpush3.bf16.msra.mxu1 %v3257_v57  ;;  %v3337_v57 = vld [vmem:[%s4664_s0 + $0x290] ss:$36 sps:$4 sm:$0xff]  }
  0x40   :  { %2996 = vmatprep.subr.bf16.mxu1 %v3264_v60  ;;  %v3341_v60 = vld [vmem:[%s4664_s0 + $0xa4] ss:$36 sps:$4 sm:$0xff]  }
  0x41   :  { %2897 = vmatpush3.bf16.msra.mxu0 %v3307_v16  ;;  %v3369_v16 = vld [vmem:[%s4664_s0 + $0x3fc] ss:$36 sps:$4 sm:$0xff]  }
  0x42   :  { %1551 = vmatmul.mubr.bf16.gmra.mxu0 %v3263_v59  ;;  %1680 = vmatmul.mubr.bf16.vlgmr.msra.gmra.mxu1 %v3260_v58  ;;  %v3338_v58 = vld [vmem:[%s4664_s0 + $0x58] ss:$36 sps:$4 sm:$0xff]  }
  0x43   :  { %2997 = vmatpush3.bf16.msra.mxu1 %v3265_v61  ;;  %1558 = vmatprep.mubr.bf16.mxu0 %v3268_v62  ;;  %v3339_v59 = vld [vmem:[%s4664_s0 + $0x2dc] ss:$36 sps:$4 sm:$0xff]  }
  0x44   :  { %1687 = vmatprep.mubr.bf16.mxu1 %v3270_v0  ;;  %2998 = vmatprep.subr.bf16.mxu1 %v3281_v2  ;;  %v3376_v61 = vld [vmem:[%s4663_s1 + $0x220] sm:$0xff]   ;;  %v3390_v62 = vld [vmem:[%s4663_s1 + $0x218] sm:$0xff]   ;;  %v3350_v2 = vld [vmem:[%s4664_s0 + $0xec] ss:$36 sps:$4 sm:$0xff]  }
  0x45   :  { %2898 = vmatprep.subr.bf16.mxu0 %v3316_v21  ;;  %v3344_v0 = vld [vmem:[%s4664_s0 + $0xa0] ss:$36 sps:$4 sm:$0xff]   ;;  %v3380_v21 = vld [vmem:[%s4664_s0 + $0x20c] ss:$36 sps:$4 sm:$0xff]  }
  0x46   :  { %2899 = vmatpush3.bf16.msra.mxu0 %v3317_v22  ;;  %v3382_v22 = vld [vmem:[%s4664_s0 + $0x440] ss:$36 sps:$4 sm:$0xff]  }
  0x47   :  { %2999 = vmatpush3.bf16.msra.mxu1 %v3283_v3  ;;  %3132 = vmatprep.subr.bf16.mxu0 %v3331_v28  ;;  %v3403_v3 = vld [vmem:[%s4663_s1 + $0x210] sm:$0xff]  }
  0x48   :  { %3000 = vmatprep.subr.bf16.mxu1 %v3298_v10  ;;  %v3358_v10 = vld [vmem:[%s4664_s0 + $0x368] ss:$36 sps:$4 sm:$0xff]  }
  0x4a   :  { %1559 = vmatmul.mubr.bf16.gmra.mxu0 %v3272_v4  ;;  %1688 = vmatmul.mubr.bf16.gmra.mxu1 %v3273_v7  ;;  %v3352_v4 = vld [vmem:[%s4664_s0 + $0x320] ss:$36 sps:$4 sm:$0xff]   ;;  %v3354_v7 = vld [vmem:[%s4664_s0 + $0x36c] ss:$36 sps:$4 sm:$0xff]  }
  0x4b   :  { %1566 = vmatprep.mubr.bf16.mxu0 %v3274_v8  ;;  %1695 = vmatprep.mubr.bf16.mxu1 %v3276_v9  ;;  %v3356_v8 = vld [vmem:[%s4664_s0 + $0x134] ss:$36 sps:$4 sm:$0xff]   ;;  %v3429_v9 = vld [vmem:[%s4663_s1 + $0x200] sm:$0xff]  }
  0x4c   :  { %3001 = vmatpush3.bf16.msra.mxu1 %v3299_v11  ;;  %v3359_v11 = vld [vmem:[%s4664_s0 + $0x130] ss:$36 sps:$4 sm:$0xff]  }
  0x4d   :  { %3002 = vmatprep.subr.bf16.mxu1 %v3314_v18  ;;  %v3373_v18 = vld [vmem:[%s4664_s0 + $0x3f8] ss:$36 sps:$4 sm:$0xff]  }
  0x50   :  { %3003 = vmatpush3.bf16.msra.mxu1 %v3315_v19  ;;  %v3374_v19 = vld [vmem:[%s4664_s0 + $0x1c0] ss:$36 sps:$4 sm:$0xff]  }
  0x51   :  { %3004 = vmatprep.subr.bf16.mxu1 %v3330_v26  ;;  %v3386_v26 = vld [vmem:[%s4664_s0 + $0x18] ss:$36 sps:$4 sm:$0xff]  }
  0x52   :  { %1567 = vmatmul.mubr.bf16.gmra.mxu0 %v3278_v12  ;;  %1696 = vmatmul.mubr.bf16.gmra.mxu1 %v3279_v13  ;;  %v3363_v12 = vld [vmem:[%s4664_s0 + $0x3b4] ss:$36 sps:$4 sm:$0xff]   ;;  %v3365_v13 = vld [vmem:[%s4664_s0 + $0x17c] ss:$36 sps:$4 sm:$0xff]  }
  0x53   :  { %1574 = vmatprep.mubr.bf16.mxu0 %v3284_v14  ;;  %1703 = vmatprep.mubr.bf16.mxu1 %v3286_v17  ;;  %v3367_v14 = vld [vmem:[%s4664_s0 + $0x3b0] ss:$36 sps:$4 sm:$0xff]   ;;  %v3371_v17 = vld [vmem:[%s4664_s0 + $0x1c4] ss:$36 sps:$4 sm:$0xff]  }
  0x54   :  { %3005 = vmatpush3.bf16.msra.mxu1 %v3332_v29  ;;  %v3393_v29 = vld [vmem:[%s4664_s0 + $0x64] ss:$36 sps:$4 sm:$0xff]  }
  0x55   :  { %3006 = vmatprep.subr.bf16.mxu1 %v3345_v33  ;;  %v3399_v33 = vld [vmem:[%s4664_s0 + $0xac] ss:$36 sps:$4 sm:$0xff]  }
  0x58   :  { %3007 = vmatpush3.bf16.msra.mxu1 %v3347_v36  ;;  %v3404_v36 = vld [vmem:[%s4664_s0 + $0x32c] ss:$36 sps:$4 sm:$0xff]  }
  0x59   :  { %3008 = vmatprep.subr.bf16.mxu1 %v3360_v41  ;;  %v3412_v41 = vld [vmem:[%s4664_s0 + $0x13c] ss:$36 sps:$4 sm:$0xff]  }
  0x5a   :  { %1575 = vmatmul.mubr.bf16.gmra.mxu0 %v3288_v20  ;;  %1704 = vmatmul.mubr.bf16.gmra.mxu1 %v3289_v23  ;;  %v3378_v20 = vld [vmem:[%s4664_s0 + $0x444] ss:$36 sps:$4 sm:$0xff]  }
  0x5b   :  { %1582 = vmatprep.mubr.bf16.mxu0 %v3292_v24  ;;  %1711 = vmatprep.mubr.bf16.mxu1 %v3294_v25  ;;  %v3383_v23 = vld [vmem:[%s4664_s0 + $0x208] ss:$36 sps:$4 sm:$0xff]   ;;  %v3384_v24 = vld [vmem:[%s4664_s0 + $0x254] ss:$36 sps:$4 sm:$0xff]   ;;  %v3388_v25 = vld [vmem:[%s4664_s0 + $0x1c] ss:$36 sps:$4 sm:$0xff]  }
  0x5c   :  { %3009 = vmatpush3.bf16.msra.mxu1 %v3362_v43  ;;  %v3415_v43 = vld [vmem:[%s4664_s0 + $0x138] ss:$36 sps:$4 sm:$0xff]  }
  0x5d   :  { %3010 = vmatprep.subr.bf16.mxu1 %v3375_v47 }
  0x60   :  { %3011 = vmatpush3.bf16.msra.mxu1 %v3377_v49 }
  0x62   :  { %1583 = vmatmul.mubr.bf16.gmra.mxu0 %v3296_v27  ;;  %1712 = vmatmul.mubr.bf16.gmra.mxu1 %v3297_v30  ;;  %v3389_v27 = vld [vmem:[%s4664_s0 + $0x250] ss:$36 sps:$4 sm:$0xff]   ;;  %v3395_v30 = vld [vmem:[%s4664_s0 + $0x298] ss:$36 sps:$4 sm:$0xff]  }
  0x63   :  { %1590 = vmatprep.mubr.bf16.mxu0 %v3300_v31  ;;  %1719 = vmatprep.mubr.bf16.mxu1 %v3302_v32  ;;  %v3396_v31 = vld [vmem:[%s4664_s0 + $0x60] ss:$36 sps:$4 sm:$0xff]  }
  0x64   :  { %v3397_v32 = vld [vmem:[%s4664_s0 + $0x2e4] ss:$36 sps:$4 sm:$0xff]  }
  0x6a   :  { %1591 = vmatmul.mubr.bf16.gmra.mxu0 %v3304_v34  ;;  %1720 = vmatmul.mubr.bf16.gmra.mxu1 %v3305_v35  ;;  %v3401_v34 = vld [vmem:[%s4664_s0 + $0x2e0] ss:$36 sps:$4 sm:$0xff]   ;;  %v3402_v35 = vld [vmem:[%s4664_s0 + $0xa8] ss:$36 sps:$4 sm:$0xff]  }
  0x6b   :  { %1598 = vmatprep.mubr.bf16.mxu0 %v3308_v37  ;;  %1727 = vmatprep.mubr.bf16.mxu1 %v3310_v38  ;;  %v3406_v37 = vld [vmem:[%s4664_s0 + $0xf4] ss:$36 sps:$4 sm:$0xff]   ;;  %v3408_v38 = vld [vmem:[%s4664_s0 + $0x328] ss:$36 sps:$4 sm:$0xff]  }
  0x72   :  { %1599 = vmatmul.mubr.bf16.gmra.mxu0 %v3312_v39  ;;  %1728 = vmatmul.mubr.bf16.gmra.mxu1 %v3313_v40  ;;  %v3409_v39 = vld [vmem:[%s4664_s0 + $0xf0] ss:$36 sps:$4 sm:$0xff]  }
  0x73   :  { %1606 = vmatprep.mubr.bf16.mxu0 %v3318_v42  ;;  %1735 = vmatprep.mubr.bf16.mxu1 %v3320_v44  ;;  %v3410_v40 = vld [vmem:[%s4664_s0 + $0x374] ss:$36 sps:$4 sm:$0xff]   ;;  %v3417_v44 = vld [vmem:[%s4664_s0 + $0x3bc] ss:$36 sps:$4 sm:$0xff]  }
  0x74   :  { %v3414_v42 = vld [vmem:[%s4664_s0 + $0x370] ss:$36 sps:$4 sm:$0xff]  }
  0x7a   :  { %1607 = vmatmul.mubr.bf16.gmra.mxu0 %v3322_v45  ;;  %1736 = vmatmul.mubr.bf16.gmra.mxu1 %v3323_v46  ;;  %v3419_v45 = vld [vmem:[%s4664_s0 + $0x184] ss:$36 sps:$4 sm:$0xff]  }
  0x7b   :  { %1743 = vmatprep.mubr.bf16.mxu1 %v3324_v48  ;;  %1840 = vmatprep.mubr.bf16.mxu0 %v3328_v50 }
  0x82   :  { %1744 = vmatmul.mubr.bf16.gmra.mxu1 %v3329_v52  ;;  %1841 = vmatmul.mubr.bf16.vlgmr.msra.gmra.mxu0 %v3326_v51 }
  0x83   :  { %3133 = vmatpush3.bf16.msra.mxu0 %v3331_v28  ;;  %1751 = vmatprep.mubr.bf16.mxu1 %v3333_v53  ;;  %v3391_v28 = vld [vmem:[%s4664_s0 + $0x29c] ss:$36 sps:$4 sm:$0xff]  }
  0x84   :  { %1848 = vmatprep.mubr.bf16.mxu0 %v3335_v54  ;;  %3134 = vmatprep.subr.bf16.mxu0 %v3346_v55  ;;  %v3421_v54 = vld [vmem:[%s4664_s0 + $0x3b8] ss:$36 sps:$4 sm:$0xff]  }
  0x87   :  { %3135 = vmatpush3.bf16.msra.mxu0 %v3346_v55  ;;  %v3422_v55 = vld [vmem:[%s4664_s0 + $0x180] ss:$36 sps:$4 sm:$0xff]  }
  0x88   :  { %3136 = vmatprep.subr.bf16.mxu0 %v3361_v56 }
  0x8a   :  { %1752 = vmatmul.mubr.bf16.gmra.mxu1 %v3337_v57  ;;  %1849 = vmatmul.mubr.bf16.gmra.mxu0 %v3338_v58  ;;  %v3425_v57 = vld [vmem:[%s4664_s0 + $0x1cc] ss:$36 sps:$4 sm:$0xff]  }
  0x8b   :  { %1759 = vmatprep.mubr.bf16.mxu1 %v3339_v59  ;;  %1856 = vmatprep.mubr.bf16.mxu0 %v3341_v60 }
  0x8c   :  { %3137 = vmatpush3.bf16.msra.mxu0 %v3361_v56  ;;  %v3423_v56 = vld [vmem:[%s4664_s0 + $0x404] ss:$36 sps:$4 sm:$0xff]  }
  0x8d   :  { %3138 = vmatprep.subr.bf16.mxu0 %v3376_v61 }
  0x90   :  { %3139 = vmatpush3.bf16.msra.mxu0 %v3376_v61 }
  0x91   :  { %3140 = vmatprep.subr.bf16.mxu0 %v3390_v62 }
  0x92   :  { %1760 = vmatmul.mubr.bf16.gmra.mxu1 %v3343_v63  ;;  %1857 = vmatmul.mubr.bf16.gmra.mxu0 %v3344_v0 }
  0x93   :  { %1767 = vmatprep.mubr.bf16.mxu1 %v3348_v1  ;;  %1864 = vmatprep.mubr.bf16.mxu0 %v3350_v2 }
  0x94   :  { %3141 = vmatpush3.bf16.msra.mxu0 %v3390_v62 }
  0x95   :  { %3142 = vmatprep.subr.bf16.mxu0 %v3403_v3 }
  0x98   :  { %3143 = vmatpush3.bf16.msra.mxu0 %v3403_v3 }
  0x99   :  { %3144 = vmatprep.subr.bf16.mxu0 %v3416_v6 }
  0x9a   :  { %1768 = vmatmul.mubr.bf16.gmra.mxu1 %v3352_v4  ;;  %1865 = vmatmul.mubr.bf16.gmra.mxu0 %v3353_v5 }
  0x9b   :  { %1775 = vmatprep.mubr.bf16.mxu1 %v3354_v7  ;;  %1872 = vmatprep.mubr.bf16.mxu0 %v3356_v8  ;;  %v3428_v7 = vld [vmem:[%s4664_s0 + $0x1c8] ss:$36 sps:$4 sm:$0xff]  }
  0x9c   :  { %3145 = vmatpush3.bf16.msra.mxu0 %v3416_v6  ;;  %v3427_v6 = vld [vmem:[%s4664_s0 + $0x400] ss:$36 sps:$4 sm:$0xff]   ;;  %v3430_v8 = vld [vmem:[%s4664_s0 + $0x44c] ss:$36 sps:$4 sm:$0xff]  }
  0x9d   :  { %3146 = vmatprep.subr.bf16.mxu0 %v3429_v9 }
  0xa0   :  { %3147 = vmatpush3.bf16.msra.mxu0 %v3429_v9  ;;  %v3432_v9 = vld [vmem:[%s4664_s0 + $0x214] ss:$36 sps:$4 sm:$0xff]  }
  0xa2   :  { %1776 = vmatmul.mubr.bf16.gmra.mxu1 %v3358_v10  ;;  %1873 = vmatmul.mubr.bf16.gmra.mxu0 %v3359_v11 }
  0xa3   :  { %1783 = vmatprep.mubr.bf16.mxu1 %v3363_v12  ;;  %1880 = vmatprep.mubr.bf16.mxu0 %v3365_v13 }
  0xaa   :  { %1784 = vmatmul.mubr.bf16.gmra.mxu1 %v3367_v14  ;;  %1881 = vmatmul.mubr.bf16.gmra.mxu0 %v3368_v15 }
  0xab   :  { %1791 = vmatprep.mubr.bf16.mxu1 %v3369_v16  ;;  %1888 = vmatprep.mubr.bf16.mxu0 %v3371_v17 }
  0xb2   :  { %1792 = vmatmul.mubr.bf16.gmra.mxu1 %v3373_v18  ;;  %1889 = vmatmul.mubr.bf16.gmra.mxu0 %v3374_v19 }
  0xb3   :  { %1799 = vmatprep.mubr.bf16.mxu1 %v3378_v20  ;;  %1896 = vmatprep.mubr.bf16.mxu0 %v3380_v21 }
  0xba   :  { %1800 = vmatmul.mubr.bf16.gmra.mxu1 %v3382_v22  ;;  %1897 = vmatmul.mubr.bf16.gmra.mxu0 %v3383_v23  ;;  %v3434_v22 = vld [vmem:[%s4664_s0 + $0x448] ss:$36 sps:$4 sm:$0xff]   ;;  %v3435_v23 = vld [vmem:[%s4664_s0 + $0x210] ss:$36 sps:$4 sm:$0xff]  }
  0xbb   :  { %1904 = vmatprep.mubr.bf16.mxu0 %v3384_v24  ;;  %2001 = vmatprep.mubr.bf16.mxu1 %v3388_v25  ;;  %v3438_v24 = vld [vmem:[%s4664_s0 + $0x25c] ss:$36 sps:$4 sm:$0xff]  }
  0xbc   :  { %v3439_v25 = vld [vmem:[%s4664_s0 + $0x20] ss:$36 sps:$4 sm:$0xff]  }
  0xc2   :  { %1905 = vmatmul.mubr.bf16.gmra.mxu0 %v3389_v27  ;;  %2002 = vmatmul.mubr.bf16.vlgmr.msra.gmra.mxu1 %v3386_v26 }
  0xc3   :  { %1912 = vmatprep.mubr.bf16.mxu0 %v3391_v28  ;;  %2009 = vmatprep.mubr.bf16.mxu1 %v3393_v29 }
  0xca   :  { %1913 = vmatmul.mubr.bf16.gmra.mxu0 %v3395_v30  ;;  %2010 = vmatmul.mubr.bf16.gmra.mxu1 %v3396_v31 }
  0xcb   :  { %1920 = vmatprep.mubr.bf16.mxu0 %v3397_v32  ;;  %2017 = vmatprep.mubr.bf16.mxu1 %v3399_v33 }
  0xd2   :  { %1921 = vmatmul.mubr.bf16.gmra.mxu0 %v3401_v34  ;;  %2018 = vmatmul.mubr.bf16.gmra.mxu1 %v3402_v35 }
  0xd3   :  { %1928 = vmatprep.mubr.bf16.mxu0 %v3404_v36  ;;  %2025 = vmatprep.mubr.bf16.mxu1 %v3406_v37 }
  0xda   :  { %1929 = vmatmul.mubr.bf16.gmra.mxu0 %v3408_v38  ;;  %2026 = vmatmul.mubr.bf16.gmra.mxu1 %v3409_v39  ;;  %v3436_v38 = vld [vmem:[%s4664_s0 + $0x258] ss:$36 sps:$4 sm:$0xff]   ;;  %v3440_v39 = vld [vmem:[%s4664_s0 + $0x68] ss:$36 sps:$4 sm:$0xff]  }
  0xdb   :  { %1936 = vmatprep.mubr.bf16.mxu0 %v3410_v40  ;;  %2033 = vmatprep.mubr.bf16.mxu1 %v3412_v41  ;;  %v3443_v40 = vld [vmem:[%s4664_s0 + $0x2a4] ss:$36 sps:$4 sm:$0xff]   ;;  %v3444_v41 = vld [vmem:[%s4664_s0 + $0xb0] ss:$36 sps:$4 sm:$0xff]  }
  0xe2   :  { %v2676_v46 = vpop.f32.mrf.mxu0  ;;  %v2748_v47 = vpop.f32.mrf.mxu1  ;;  %1937 = vmatmul.mubr.bf16.gmra.mxu0 %v3414_v42  ;;  %2034 = vmatmul.mubr.bf16.gmra.mxu1 %v3415_v43 }
  0xe3   :  { %1944 = vmatprep.mubr.bf16.mxu0 %v3417_v44  ;;  %2041 = vmatprep.mubr.bf16.mxu1 %v3419_v45 }
  0xe4   :  { %v2677_v48 = vpop.f32.mrf.mxu0  ;;  %v2749_v49 = vpop.f32.mrf.mxu1 }
  0xe5   :  { %v4018_v50 = vadd.f32 %v2677_v48, %v2676_v46  ;;  %v4020_v51 = vadd.f32 %v2749_v49, %v2748_v47 }
  0xe6   :  { %v2679_v52 = vpop.f32.mrf.mxu0  ;;  %v2751_v53 = vpop.f32.mrf.mxu1 }
  0xe8   :  { %v2680_v58 = vpop.f32.mrf.mxu0  ;;  %v2752_v59 = vpop.f32.mrf.mxu1 }
  0xe9   :  { %v4034_v60 = vadd.f32 %v2680_v58, %v2679_v52  ;;  %v4036_v61 = vadd.f32 %v2752_v59, %v2751_v53  ;;  %v3448_v59 = vld [vmem:[%s4664_s0 + $0x2ec] ss:$36 sps:$4 sm:$0xff]  }
  0xea   :  { %v2682_v62 = vpop.f32.mrf.mxu0  ;;  %v2754_v63 = vpop.f32.mrf.mxu1  ;;  %1945 = vmatmul.mubr.bf16.gmra.mxu0 %v3421_v54  ;;  %2042 = vmatmul.mubr.bf16.gmra.mxu1 %v3422_v55 }
  0xeb   :  { %1952 = vmatprep.mubr.bf16.mxu0 %v3423_v56  ;;  %2049 = vmatprep.mubr.bf16.mxu1 %v3425_v57  ;;  %v3441_v56 = vld [vmem:[%s4664_s0 + $0x2a0] ss:$36 sps:$4 sm:$0xff]   ;;  %v3445_v57 = vld [vmem:[%s4664_s0 + $0xf8] ss:$36 sps:$4 sm:$0xff]  }
  0xec   :  { %v2683_v0 = vpop.f32.mrf.mxu0  ;;  %v2755_v1 = vpop.f32.mrf.mxu1 }
  0xed   :  { %v4038_v2 = vadd.f32 %v2683_v0, %v2682_v62  ;;  %v4040_v3 = vadd.f32 %v2755_v1, %v2754_v63  ;;  %v3449_v62 = vld [vmem:[%s4664_s0 + $0x140] ss:$36 sps:$4 sm:$0xff]  }
  0xee   :  { %v2685_v4 = vpop.f32.mrf.mxu0  ;;  %v2757_v5 = vpop.f32.mrf.mxu1 }
  0xf0   :  { %v2686_v10 = vpop.f32.mrf.mxu0  ;;  %v2758_v11 = vpop.f32.mrf.mxu1 }
  0xf1   :  { %v4054_v12 = vadd.f32 %v2686_v10, %v2685_v4  ;;  %v4056_v13 = vadd.f32 %v2758_v11, %v2757_v5 }
  0xf2   :  { %v2688_v14 = vpop.f32.mrf.mxu0  ;;  %v2760_v15 = vpop.f32.mrf.mxu1  ;;  %1953 = vmatmul.mubr.bf16.gmra.mxu0 %v3427_v6  ;;  %2050 = vmatmul.mubr.bf16.gmra.mxu1 %v3428_v7 }
  0xf3   :  { %1960 = vmatprep.mubr.bf16.mxu0 %v3430_v8  ;;  %2057 = vmatprep.mubr.bf16.mxu1 %v3432_v9 }
  0xf4   :  { %v2689_v16 = vpop.f32.mrf.mxu0  ;;  %v2761_v17 = vpop.f32.mrf.mxu1 }
  0xf5   :  { %v4058_v18 = vadd.f32 %v2689_v16, %v2688_v14  ;;  %v4060_v19 = vadd.f32 %v2761_v17, %v2760_v15  ;;  %v3446_v15 = vld [vmem:[%s4664_s0 + $0x2e8] ss:$36 sps:$4 sm:$0xff]   ;;  %v3453_v17 = vld [vmem:[%s4664_s0 + $0x334] ss:$36 sps:$4 sm:$0xff]  }
  0xf6   :  { %v2691_v20 = vpop.f32.mrf.mxu0  ;;  %v2763_v21 = vpop.f32.mrf.mxu1  ;;  %v3450_v16 = vld [vmem:[%s4664_s0 + $0x188] ss:$36 sps:$4 sm:$0xff]  }
  0xf8   :  { %v2692_v26 = vpop.f32.mrf.mxu0  ;;  %v2764_v27 = vpop.f32.mrf.mxu1 }
  0xf9   :  { %v4074_v28 = vadd.f32 %v2692_v26, %v2691_v20  ;;  %v4076_v29 = vadd.f32 %v2764_v27, %v2763_v21  ;;  %v3454_v20 = vld [vmem:[%s4664_s0 + $0x1d0] ss:$36 sps:$4 sm:$0xff]  }
  0xfa   :  { %v2694_v30 = vpop.f32.mrf.mxu0  ;;  %v2766_v31 = vpop.f32.mrf.mxu1  ;;  %1961 = vmatmul.mubr.bf16.gmra.mxu0 %v3434_v22  ;;  %2058 = vmatmul.mubr.bf16.gmra.mxu1 %v3435_v23 }
  0xfb   :  { %2065 = vmatprep.mubr.bf16.mxu1 %v3438_v24  ;;  %3148 = vmatprep.mubr.bf16.mxu0 %v3439_v25 }
  0xfc   :  { %v2695_v32 = vpop.f32.mrf.mxu0  ;;  %v2767_v33 = vpop.f32.mrf.mxu1 }
  0xfd   :  { %v4078_v34 = vadd.f32 %v2695_v32, %v2694_v30  ;;  %v4080_v35 = vadd.f32 %v2767_v33, %v2766_v31 }
  0xfe   :  { %v2697_v36 = vpop.f32.mrf.mxu0  ;;  %v2769_v37 = vpop.f32.mrf.mxu1 }
 0x100   :  { %v2698_v42 = vpop.f32.mrf.mxu0  ;;  %v2770_v43 = vpop.f32.mrf.mxu1 }
 0x101   :  { %v4094_v44 = vadd.f32 %v2698_v42, %v2697_v36  ;;  %v4096_v45 = vadd.f32 %v2770_v43, %v2769_v37  ;;  %v3451_v37 = vld [vmem:[%s4664_s0 + $0x330] ss:$36 sps:$4 sm:$0xff]  }
 0x102   :  { %v2700_v46 = vpop.f32.mrf.mxu0  ;;  %v2788_v47 = vpop.f32.mrf.mxu1  ;;  %2066 = vmatmul.mubr.bf16.gmra.mxu1 %v3436_v38  ;;  %3149 = vmatmul.mubr.bf16.vlgmr.msra.gmra.mxu0 %v3440_v39  ;;  %v3455_v38 = vld [vmem:[%s4664_s0 + $0x218] ss:$36 sps:$4 sm:$0xff]  }
 0x103   :  { %2073 = vmatprep.mubr.bf16.mxu1 %v3443_v40  ;;  %3152 = vmatprep.mubr.bf16.mxu0 %v3444_v41  ;;  %v3458_v39 = vld [vmem:[%s4664_s0 + $0x37c] ss:$36 sps:$4 sm:$0xff]  }
 0x104   :  { %v2701_v48 = vpop.f32.mrf.mxu0  ;;  %v2789_v49 = vpop.f32.mrf.mxu1  ;;  %v3459_v40 = vld [vmem:[%s4664_s0 + $0x260] ss:$36 sps:$4 sm:$0xff]  }
 0x105   :  { %v4098_v52 = vadd.f32 %v2701_v48, %v2700_v46  ;;  %v2790_v53 = vadd.f32 %v2789_v49, %v2788_v47 }
 0x106   :  { %v2703_v54 = vpop.f32.mrf.mxu0  ;;  %v2791_v55 = vpop.f32.mrf.mxu1 }
 0x107   :  { %v4107_v58 = vadd.f32 %v2790_v53, %v4018_v50 }
 0x108   :  { %v2704_v63 = vpop.f32.mrf.mxu0  ;;  %v2792_v0 = vpop.f32.mrf.mxu1 }
 0x109   :  { %v4115_v1 = vadd.f32 %v2704_v63, %v2703_v54  ;;  %v2793_v4 = vadd.f32 %v2792_v0, %v2791_v55  ;;  %v3463_v63 = vld [vmem:[%s4664_s0 + $0x3c4] ss:$36 sps:$4 sm:$0xff]   ;;  %v3464_v0 = vld [vmem:[%s4664_s0 + $0x2f0] ss:$36 sps:$4 sm:$0xff]  }
 0x10a   :  { %v2706_v5 = vpop.f32.mrf.mxu0  ;;  %v2794_v6 = vpop.f32.mrf.mxu1  ;;  %2074 = vmatmul.mubr.bf16.gmra.mxu1 %v3441_v56  ;;  %3153 = vmatmul.mubr.bf16.gmra.mxu0 %v3445_v57 }
 0x10b   :  { %v4118_v50 = vadd.f32 %v2793_v4, %v4034_v60  ;;  %2081 = vmatprep.mubr.bf16.mxu1 %v3448_v59  ;;  %3156 = vmatprep.mubr.bf16.mxu0 %v3449_v62  ;;  %v3456_v59 = vld [vmem:[%s4664_s0 + $0x378] ss:$36 sps:$4 sm:$0xff]   ;;  %v3460_v62 = vld [vmem:[%s4664_s0 + $0x2a8] ss:$36 sps:$4 sm:$0xff]  }
 0x10c   :  { %v2707_v7 = vpop.f32.mrf.mxu0  ;;  %v2795_v8 = vpop.f32.mrf.mxu1 }
 0x10d   :  { %v4120_v9 = vadd.f32 %v2707_v7, %v2706_v5  ;;  %v2796_v10 = vadd.f32 %v2795_v8, %v2794_v6 }
 0x10e   :  { %v2709_v11 = vpop.f32.mrf.mxu0  ;;  %v2797_v14 = vpop.f32.mrf.mxu1 }
 0x10f   :  { %v4129_v60 = vadd.f32 %v2796_v10, %v4038_v2 }
 0x110   :  { %v2710_v21 = vpop.f32.mrf.mxu0  ;;  %v2798_v22 = vpop.f32.mrf.mxu1 }
 0x111   :  { %v4137_v23 = vadd.f32 %v2710_v21, %v2709_v11  ;;  %v2799_v24 = vadd.f32 %v2798_v22, %v2797_v14  ;;  %v3461_v21 = vld [vmem:[%s4664_s0 + $0x3c0] ss:$36 sps:$4 sm:$0xff]   ;;  %v3465_v22 = vld [vmem:[%s4664_s0 + $0x338] ss:$36 sps:$4 sm:$0xff]  }
 0x112   :  { %v2712_v25 = vpop.f32.mrf.mxu0  ;;  %v2800_v26 = vpop.f32.mrf.mxu1  ;;  %2082 = vmatmul.mubr.bf16.gmra.mxu1 %v3446_v15  ;;  %3157 = vmatmul.mubr.bf16.gmra.mxu0 %v3450_v16 }
 0x113   :  { %v4140_v2 = vadd.f32 %v2799_v24, %v4054_v12  ;;  %2089 = vmatprep.mubr.bf16.mxu1 %v3453_v17  ;;  %3160 = vmatprep.mubr.bf16.mxu0 %v3454_v20  ;;  %v3468_v24 = vld [vmem:[%s4664_s0 + $0x40c] ss:$36 sps:$4 sm:$0xff]  }
 0x114   :  { %v2713_v27 = vpop.f32.mrf.mxu0  ;;  %v2801_v30 = vpop.f32.mrf.mxu1 }
 0x115   :  { %v4142_v31 = vadd.f32 %v2713_v27, %v2712_v25  ;;  %v2802_v32 = vadd.f32 %v2801_v30, %v2800_v26  ;;  %v3469_v25 = vld [vmem:[%s4664_s0 + $0x380] ss:$36 sps:$4 sm:$0xff]  }
 0x116   :  { %v2715_v33 = vpop.f32.mrf.mxu0  ;;  %v2803_v36 = vpop.f32.mrf.mxu1 }
 0x117   :  { %v4151_v12 = vadd.f32 %v2802_v32, %v4058_v18 }
 0x118   :  { %v2716_v41 = vpop.f32.mrf.mxu0  ;;  %v2804_v42 = vpop.f32.mrf.mxu1 }
 0x119   :  { %v4159_v43 = vadd.f32 %v2716_v41, %v2715_v33  ;;  %v2805_v46 = vadd.f32 %v2804_v42, %v2803_v36 }
 0x11a   :  { %v2718_v47 = vpop.f32.mrf.mxu0  ;;  %v2806_v48 = vpop.f32.mrf.mxu1  ;;  %2090 = vmatmul.mubr.bf16.gmra.mxu1 %v3451_v37  ;;  %3161 = vmatmul.mubr.bf16.gmra.mxu0 %v3455_v38 }
 0x11b   :  { %v4162_v18 = vadd.f32 %v2805_v46, %v4074_v28  ;;  %2097 = vmatprep.mubr.bf16.mxu1 %v3458_v39  ;;  %3164 = vmatprep.mubr.bf16.mxu0 %v3459_v40  ;;  %v3466_v46 = vld [vmem:[%s4664_s0 + $0x408] ss:$36 sps:$4 sm:$0xff]  }
 0x11c   :  { %v2719_v49 = vpop.f32.mrf.mxu0  ;;  %v2807_v53 = vpop.f32.mrf.mxu1 }
 0x11d   :  { %v4164_v54 = vadd.f32 %v2719_v49, %v2718_v47  ;;  %v2808_v55 = vadd.f32 %v2807_v53, %v2806_v48  ;;  %v3470_v47 = vld [vmem:[%s4664_s0 + $0x3c8] ss:$36 sps:$4 sm:$0xff]   ;;  %v3473_v48 = vld [vmem:[%s4664_s0 + $0x454] ss:$36 sps:$4 sm:$0xff]  }
 0x11e   :  { %v2721_v56 = vpop.f32.mrf.mxu0  ;;  %v2809_v57 = vpop.f32.mrf.mxu1  ;;  %v3474_v49 = vld [vmem:[%s4664_s0 + $0x410] ss:$36 sps:$4 sm:$0xff]  }
 0x11f   :  { %v4173_v28 = vadd.f32 %v2808_v55, %v4078_v34 }
 0x120   :  { %v2722_v4 = vpop.f32.mrf.mxu0  ;;  %v2810_v5 = vpop.f32.mrf.mxu1 }
 0x121   :  { %v4181_v6 = vadd.f32 %v2722_v4, %v2721_v56  ;;  %v2811_v7 = vadd.f32 %v2810_v5, %v2809_v57 }
 0x122   :  { %v2724_v8 = vpop.f32.mrf.mxu0  ;;  %v2812_v10 = vpop.f32.mrf.mxu1  ;;  %2098 = vmatmul.mubr.bf16.gmra.mxu1 %v3456_v59  ;;  %3165 = vmatmul.mubr.bf16.gmra.mxu0 %v3460_v62 }
 0x123   :  { %v4184_v34 = vadd.f32 %v2811_v7, %v4094_v44  ;;  %2105 = vmatprep.mubr.bf16.mxu1 %v3463_v63  ;;  %3168 = vmatprep.mubr.bf16.mxu0 %v3464_v0 }
 0x124   :  { %v2725_v11 = vpop.f32.mrf.mxu0  ;;  %v2813_v14 = vpop.f32.mrf.mxu1 }
 0x125   :  { %v4186_v15 = vadd.f32 %v2725_v11, %v2724_v8  ;;  %v2814_v16 = vadd.f32 %v2813_v14, %v2812_v10  ;;  %v3471_v10 = vld [vmem:[%s4664_s0 + $0x450] ss:$36 sps:$4 sm:$0xff]   ;;  %v3475_v11 = vld [vmem:[%s4664_s0 + $0x458] ss:$36 sps:$4 sm:$0xff]  }
 0x126   :  { %v2727_v17 = vpop.f32.mrf.mxu0  ;;  %v2815_v20 = vpop.f32.mrf.mxu1 }
 0x127   :  { %v4195_v44 = vadd.f32 %v2814_v16, %v4098_v52 }
 0x128   :  { %v2728_v26 = vpop.f32.mrf.mxu0  ;;  %v2816_v27 = vpop.f32.mrf.mxu1 }
 0x129   :  { %v4203_v30 = vadd.f32 %v2728_v26, %v2727_v17  ;;  %v2817_v32 = vadd.f32 %v2816_v27, %v2815_v20 }
 0x12a   :  { %v2730_v33 = vpop.f32.mrf.mxu0  ;;  %v2818_v36 = vpop.f32.mrf.mxu1  ;;  %2106 = vmatmul.mubr.bf16.gmra.mxu1 %v3461_v21  ;;  %3169 = vmatmul.mubr.bf16.gmra.mxu0 %v3465_v22 }
 0x12b   :  { %v4206_v52 = vadd.f32 %v2817_v32, %v4115_v1  ;;  %2113 = vmatprep.mubr.bf16.mxu1 %v3468_v24  ;;  %3172 = vmatprep.mubr.bf16.mxu0 %v3469_v25 }
 0x12c   :  { %v2731_v37 = vpop.f32.mrf.mxu0  ;;  %v2819_v38 = vpop.f32.mrf.mxu1 }
 0x12d   :  { %v4208_v39 = vadd.f32 %v2731_v37, %v2730_v33  ;;  %v2820_v40 = vadd.f32 %v2819_v38, %v2818_v36 }
 0x12e   :  { %v2733_v41 = vpop.f32.mrf.mxu0  ;;  %v2821_v42 = vpop.f32.mrf.mxu1 }
 0x12f   :  { %v4217_v1 = vadd.f32 %v2820_v40, %v4120_v9 }
 0x130   :  { %v2734_v53 = vpop.f32.mrf.mxu0  ;;  %v2822_v55 = vpop.f32.mrf.mxu1 }
 0x131   :  { %v4225_v56 = vadd.f32 %v2734_v53, %v2733_v41  ;;  %v2823_v57 = vadd.f32 %v2822_v55, %v2821_v42 }
 0x132   :  { %v2736_v59 = vpop.f32.mrf.mxu0  ;;  %v2824_v62 = vpop.f32.mrf.mxu1  ;;  %2114 = vmatmul.mubr.bf16.gmra.mxu1 %v3466_v46  ;;  %3173 = vmatmul.mubr.bf16.gmra.mxu0 %v3470_v47 }
 0x133   :  { %v4228_v9 = vadd.f32 %v2823_v57, %v4137_v23  ;;  %2121 = vmatprep.mubr.bf16.mxu1 %v3473_v48  ;;  %3176 = vmatprep.mubr.bf16.mxu0 %v3474_v49 }
 0x134   :  { %v2737_v63 = vpop.f32.mrf.mxu0  ;;  %v2825_v0 = vpop.f32.mrf.mxu1 }
 0x135   :  { %v4230_v4 = vadd.f32 %v2737_v63, %v2736_v59  ;;  %v2826_v5 = vadd.f32 %v2825_v0, %v2824_v62 }
 0x136   :  { %v2739_v7 = vpop.f32.mrf.mxu0  ;;  %v2827_v8 = vpop.f32.mrf.mxu1 }
 0x137   :  { %v4239_v23 = vadd.f32 %v2826_v5, %v4142_v31 }
 0x138   :  { %v2740_v14 = vpop.f32.mrf.mxu0  ;;  %v2828_v16 = vpop.f32.mrf.mxu1 }
 0x139   :  { %v4241_v17 = vadd.f32 %v2740_v14, %v2739_v7  ;;  %v2829_v20 = vadd.f32 %v2828_v16, %v2827_v8 }
 0x13a   :  { %v2742_v21 = vpop.f32.mrf.mxu0  ;;  %v2830_v22 = vpop.f32.mrf.mxu1  ;;  %2122 = vmatmul.mubr.bf16.gmra.mxu1 %v3471_v10  ;;  %3177 = vmatmul.mubr.bf16.gmra.mxu0 %v3475_v11 }
 0x13b   :  { %v4244_v24 = vadd.f32 %v2829_v20, %v4159_v43 }
 0x13c   :  { %v2743_v25 = vpop.f32.mrf.mxu0  ;;  %v2831_v26 = vpop.f32.mrf.mxu1 }
 0x13d   :  { %v4246_v27 = vadd.f32 %v2743_v25, %v2742_v21  ;;  %v2832_v32 = vadd.f32 %v2831_v26, %v2830_v22 }
 0x13e   :  { %v2745_v33 = vpop.f32.mrf.mxu0  ;;  %v2833_v31 = vpop.f32.mrf.mxu1 }
 0x13f   :  { %v4249_v36 = vadd.f32 %v2832_v32, %v4164_v54 }
 0x140   :  { %v2746_v37 = vpop.f32.mrf.mxu0  ;;  %v2834_v38 = vpop.f32.mrf.mxu1 }
 0x141   :  { %v4251_v40 = vadd.f32 %v2746_v37, %v2745_v33  ;;  %v2835_v41 = vadd.f32 %v2834_v38, %v2833_v31 }
 0x142   :  { %v2836_v42 = vpop.f32.mrf.mxu1  ;;  %v2900_v46 = vpop.f32.mrf.mxu0 }
 0x143   :  { %v4254_v43 = vadd.f32 %v2835_v41, %v4181_v6 }
 0x144   :  { %v2837_v47 = vpop.f32.mrf.mxu1  ;;  %v2901_v48 = vpop.f32.mrf.mxu0 }
 0x145   :  { %v2838_v49 = vadd.f32 %v2837_v47, %v2836_v42  ;;  %v2902_v53 = vadd.f32 %v2901_v48, %v2900_v46 }
 0x146   :  { %v2839_v55 = vpop.f32.mrf.mxu1  ;;  %v2903_v57 = vpop.f32.mrf.mxu0 }
 0x147   :  { %v4257_v59 = vadd.f32 %v2838_v49, %v4186_v15  ;;  %v4260_v54 = vadd.f32 %v2902_v53, %v4107_v58 }
 0x148   :  { %v2840_v62 = vpop.f32.mrf.mxu1  ;;  %v2904_v63 = vpop.f32.mrf.mxu0 }
 0x149   :  { %v2841_v0 = vadd.f32 %v2840_v62, %v2839_v55  ;;  %v2905_v5 = vadd.f32 %v2904_v63, %v2903_v57 }
 0x14a   :  { %v2842_v7 = vpop.f32.mrf.mxu1  ;;  %v2906_v8 = vpop.f32.mrf.mxu0 }
 0x14b   :  { %v4263_v6 = vadd.f32 %v2841_v0, %v4203_v30  ;;  %v4266_v10 = vadd.f32 %v2905_v5, %v4118_v50 }
 0x14c   :  { %v2843_v11 = vpop.f32.mrf.mxu1  ;;  %v2907_v14 = vpop.f32.mrf.mxu0 }
 0x14d   :  { %v2844_v16 = vadd.f32 %v2843_v11, %v2842_v7  ;;  %v2908_v15 = vadd.f32 %v2907_v14, %v2906_v8 }
 0x14e   :  { %v2845_v20 = vpop.f32.mrf.mxu1  ;;  %v2909_v21 = vpop.f32.mrf.mxu0 }
 0x14f   :  { %v4269_v58 = vadd.f32 %v2844_v16, %v4208_v39  ;;  %v4272_v22 = vadd.f32 %v2908_v15, %v4129_v60 }
 0x150   :  { %v2846_v25 = vpop.f32.mrf.mxu1  ;;  %v2910_v26 = vpop.f32.mrf.mxu0 }
 0x151   :  { %v2847_v32 = vadd.f32 %v2846_v25, %v2845_v20  ;;  %v2911_v30 = vadd.f32 %v2910_v26, %v2909_v21 }
 0x152   :  { %v2848_v33 = vpop.f32.mrf.mxu1  ;;  %v2912_v31 = vpop.f32.mrf.mxu0 }
 0x153   :  { %v4275_v50 = vadd.f32 %v2847_v32, %v4225_v56  ;;  %v4278_v37 = vadd.f32 %v2911_v30, %v4140_v2 }
 0x154   :  { %v2849_v38 = vpop.f32.mrf.mxu1  ;;  %v2913_v41 = vpop.f32.mrf.mxu0 }
 0x155   :  { %v2850_v42 = vadd.f32 %v2849_v38, %v2848_v33  ;;  %v2914_v39 = vadd.f32 %v2913_v41, %v2912_v31 }
 0x156   :  { %v2851_v46 = vpop.f32.mrf.mxu1  ;;  %v2915_v47 = vpop.f32.mrf.mxu0 }
 0x157   :  { %v4281_v60 = vadd.f32 %v2850_v42, %v4230_v4  ;;  %v4284_v48 = vadd.f32 %v2914_v39, %v4151_v12 }
 0x158   :  { %v2852_v49 = vpop.f32.mrf.mxu1  ;;  %v2916_v53 = vpop.f32.mrf.mxu0 }
 0x159   :  { %v2853_v55 = vadd.f32 %v2852_v49, %v2851_v46  ;;  %v2917_v56 = vadd.f32 %v2916_v53, %v2915_v47 }
 0x15a   :  { %v2854_v57 = vpop.f32.mrf.mxu1  ;;  %v2918_v62 = vpop.f32.mrf.mxu0 }
 0x15b   :  { %v4287_v2 = vadd.f32 %v2853_v55, %v4241_v17  ;;  %v4290_v63 = vadd.f32 %v2917_v56, %v4162_v18 }
 0x15c   :  { %v2855_v0 = vpop.f32.mrf.mxu1  ;;  %v2919_v5 = vpop.f32.mrf.mxu0 }
 0x15d   :  { %v2856_v7 = vadd.f32 %v2855_v0, %v2854_v57  ;;  %v2920_v4 = vadd.f32 %v2919_v5, %v2918_v62 }
 0x15e   :  { %v2857_v8 = vpop.f32.mrf.mxu1  ;;  %v2921_v11 = vpop.f32.mrf.mxu0 }
 0x15f   :  { %v4293_v12 = vadd.f32 %v2856_v7, %v4246_v27  ;;  %v4296_v14 = vadd.f32 %v2920_v4, %v4173_v28 }
 0x160   :  { %v2858_v16 = vpop.f32.mrf.mxu1  ;;  %v2922_v15 = vpop.f32.mrf.mxu0 }
 0x161   :  { %v2859_v20 = vadd.f32 %v2858_v16, %v2857_v8  ;;  %v2923_v17 = vadd.f32 %v2922_v15, %v2921_v11 }
 0x162   :  { %v2860_v21 = vpop.f32.mrf.mxu1  ;;  %v2924_v25 = vpop.f32.mrf.mxu0 }
 0x163   :  { %v4299_v18 = vadd.f32 %v2859_v20, %v4251_v40  ;;  %v4302_v26 = vadd.f32 %v2923_v17, %v4184_v34 }
 0x164   :  { %v2861_v32 = vpop.f32.mrf.mxu1  ;;  %v2925_v30 = vpop.f32.mrf.mxu0 }
 0x165   :  { %v2862_v33 = vadd.f32 %v2861_v32, %v2860_v21  ;;  %v2926_v27 = vadd.f32 %v2925_v30, %v2924_v25 }
 0x166   :  { %v2863_v31 = vpop.f32.mrf.mxu1  ;;  %v2927_v38 = vpop.f32.mrf.mxu0 }
 0x167   :  { %v4305_v28 = vadd.f32 %v2862_v33, %v4020_v51  ;;  %v4308_v41 = vadd.f32 %v2926_v27, %v4195_v44 }
 0x168   :  { %v2864_v42 = vpop.f32.mrf.mxu1  ;;  %v2928_v39 = vpop.f32.mrf.mxu0 }
 0x169   :  { %v2865_v46 = vadd.f32 %v2864_v42, %v2863_v31  ;;  %v2929_v40 = vadd.f32 %v2928_v39, %v2927_v38 }
 0x16a   :  { %v2866_v47 = vpop.f32.mrf.mxu1  ;;  %v2930_v49 = vpop.f32.mrf.mxu0 }
 0x16b   :  { %v4311_v34 = vadd.f32 %v2865_v46, %v4036_v61  ;;  %v4314_v53 = vadd.f32 %v2929_v40, %v4206_v52 }
 0x16c   :  { %v2867_v55 = vpop.f32.mrf.mxu1  ;;  %v2931_v56 = vpop.f32.mrf.mxu0 }
 0x16d   :  { %v2868_v57 = vadd.f32 %v2867_v55, %v2866_v47  ;;  %v2932_v51 = vadd.f32 %v2931_v56, %v2930_v49 }
 0x16e   :  { %v2869_v62 = vpop.f32.mrf.mxu1  ;;  %v2933_v0 = vpop.f32.mrf.mxu0 }
 0x16f   :  { %v4317_v44 = vadd.f32 %v2868_v57, %v4040_v3  ;;  %v4320_v5 = vadd.f32 %v2932_v51, %v4217_v1 }
 0x170   :  { %v2870_v7 = vpop.f32.mrf.mxu1  ;;  %v2934_v4 = vpop.f32.mrf.mxu0 }
 0x171   :  { %v2871_v8 = vadd.f32 %v2870_v7, %v2869_v62  ;;  %v2935_v61 = vadd.f32 %v2934_v4, %v2933_v0 }
 0x172   :  { %v2872_v11 = vpop.f32.mrf.mxu1  ;;  %v2936_v16 = vpop.f32.mrf.mxu0 }
 0x173   :  { %v4323_v52 = vadd.f32 %v2871_v8, %v4056_v13  ;;  %v4326_v15 = vadd.f32 %v2935_v61, %v4228_v9 }
 0x174   :  { %v2873_v20 = vpop.f32.mrf.mxu1  ;;  %v2937_v17 = vpop.f32.mrf.mxu0 }
 0x175   :  { %v2874_v21 = vadd.f32 %v2873_v20, %v2872_v11  ;;  %v2938_v3 = vadd.f32 %v2937_v17, %v2936_v16 }
 0x176   :  { %v2875_v25 = vpop.f32.mrf.mxu1  ;;  %v2939_v32 = vpop.f32.mrf.mxu0 }
 0x177   :  { %v4329_v1 = vadd.f32 %v2874_v21, %v4060_v19  ;;  %v4332_v30 = vadd.f32 %v2938_v3, %v4239_v23 }
 0x178   :  { %v2876_v33 = vpop.f32.mrf.mxu1  ;;  %v2940_v27 = vpop.f32.mrf.mxu0 }
 0x179   :  { %v2877_v31 = vadd.f32 %v2876_v33, %v2875_v25  ;;  %v2941_v13 = vadd.f32 %v2940_v27, %v2939_v32 }
 0x17a   :  { %v2878_v38 = vpop.f32.mrf.mxu1  ;;  %v2942_v42 = vpop.f32.mrf.mxu0 }
 0x17b   :  { %v4335_v9 = vadd.f32 %v2877_v31, %v4076_v29  ;;  %v4338_v39 = vadd.f32 %v2941_v13, %v4244_v24 }
 0x17c   :  { %v2879_v46 = vpop.f32.mrf.mxu1  ;;  %v2943_v40 = vpop.f32.mrf.mxu0 }
 0x17d   :  { %v2880_v47 = vadd.f32 %v2879_v46, %v2878_v38  ;;  %v2944_v19 = vadd.f32 %v2943_v40, %v2942_v42 }
 0x17e   :  { %v2881_v49 = vpop.f32.mrf.mxu1  ;;  %v2945_v55 = vpop.f32.mrf.mxu0 }
 0x17f   :  { %v4341_v23 = vadd.f32 %v2880_v47, %v4080_v35  ;;  %v4344_v56 = vadd.f32 %v2944_v19, %v4249_v36 }
 0x180   :  { %v2882_v57 = vpop.f32.mrf.mxu1  ;;  %v2946_v51 = vpop.f32.mrf.mxu0 }
 0x181   :  { %v2883_v62 = vadd.f32 %v2882_v57, %v2881_v49  ;;  %v2947_v29 = vadd.f32 %v2946_v51, %v2945_v55 }
 0x182   :  { %v2948_v0 = vpop.f32.mrf.mxu0  ;;  %v4346_v7 = vpop.f32.mrf.mxu1 }
 0x183   :  { %v4349_v24 = vadd.f32 %v2883_v62, %v4096_v45  ;;  %v4352_v4 = vadd.f32 %v2947_v29, %v4254_v43 }
 0x184   :  { %v2949_v8 = vpop.f32.mrf.mxu0  ;;  %v4354_v61 = vpop.f32.mrf.mxu1 }
 0x185   :  { %v2950_v35 = vadd.f32 %v2949_v8, %v2948_v0 }
 0x186   :  { %v2951_v11 = vpop.f32.mrf.mxu0  ;;  %v4356_v36 = vpop.f32.mrf.mxu1 }
 0x187   :  { %v4359_v16 = vadd.f32 %v2950_v35, %v4257_v59 }
 0x188   :  { %v2952_v20 = vpop.f32.mrf.mxu0  ;;  %v4361_v17 = vpop.f32.mrf.mxu1 }
 0x189   :  { %v2953_v21 = vadd.f32 %v2952_v20, %v2951_v11 }
 0x18a   :  { %v2954_v3 = vpop.f32.mrf.mxu0  ;;  %v4363_v45 = vpop.f32.mrf.mxu1 }
 0x18b   :  { %v4366_v43 = vadd.f32 %v2953_v21, %v4263_v6 }
 0x18c   :  { %v2955_v25 = vpop.f32.mrf.mxu0  ;;  %v4368_v32 = vpop.f32.mrf.mxu1 }
 0x18d   :  { %4667 = vst [vmem:[#allocation2_spill] sm:$0xff] %v4366_v43  ;;  %v2956_v33 = vadd.f32 %v2955_v25, %v2954_v3 }
 0x18e   :  { %v2957_v27 = vpop.f32.mrf.mxu0  ;;  %v4370_v31 = vpop.f32.mrf.mxu1 }
 0x18f   :  { %v4373_v59 = vadd.f32 %v2956_v33, %v4269_v58 }
 0x190   :  { %v2958_v13 = vpop.f32.mrf.mxu0  ;;  %v4375_v38 = vpop.f32.mrf.mxu1 }
 0x191   :  { %v2959_v42 = vadd.f32 %v2958_v13, %v2957_v27 }
 0x192   :  { %v2960_v46 = vpop.f32.mrf.mxu0  ;;  %v4377_v40 = vpop.f32.mrf.mxu1 }
 0x193   :  { %v4380_v6 = vadd.f32 %v2959_v42, %v4275_v50 }
 0x194   :  { %v2961_v47 = vpop.f32.mrf.mxu0  ;;  %v4382_v19 = vpop.f32.mrf.mxu1 }
 0x195   :  { %v2962_v49 = vadd.f32 %v2961_v47, %v2960_v46 }
 0x196   :  { %v2963_v55 = vpop.f32.mrf.mxu0  ;;  %v4384_v57 = vpop.f32.mrf.mxu1 }
 0x197   :  { %v4387_v58 = vadd.f32 %v2962_v49, %v4281_v60 }
 0x198   :  { %v2964_v51 = vpop.f32.mrf.mxu0  ;;  %v4389_v62 = vpop.f32.mrf.mxu1 }
 0x199   :  { %4668 = vst [vmem:[#allocation3_spill] sm:$0xff] %v4387_v58  ;;  %v2965_v29 = vadd.f32 %v2964_v51, %v2963_v55 }
 0x19a   :  { %v2966_v0 = vpop.f32.mrf.mxu0  ;;  %v4391_v8 = vpop.f32.mrf.mxu1 }
 0x19b   :  { %v4394_v50 = vadd.f32 %v2965_v29, %v4287_v2 }
 0x19c   :  { %v2967_v35 = vpop.f32.mrf.mxu0  ;;  %v4396_v11 = vpop.f32.mrf.mxu1 }
 0x19d   :  { %4669 = vst [vmem:[#allocation4_spill] sm:$0xff] %v4394_v50  ;;  %v2968_v20 = vadd.f32 %v2967_v35, %v2966_v0 }
 0x19e   :  { %v2969_v21 = vpop.f32.mrf.mxu0  ;;  %v4398_v3 = vpop.f32.mrf.mxu1 }
 0x19f   :  { %v4401_v60 = vadd.f32 %v2968_v20, %v4293_v12 }
 0x1a0   :  { %v2970_v25 = vpop.f32.mrf.mxu0  ;;  %v4403_v33 = vpop.f32.mrf.mxu1 }
 0x1a1   :  { %4670 = vst [vmem:[#allocation5_spill] sm:$0xff] %v4401_v60  ;;  %v2971_v27 = vadd.f32 %v2970_v25, %v2969_v21 }
 0x1a2   :  { %v2972_v13 = vpop.f32.mrf.mxu0  ;;  %v4405_v42 = vpop.f32.mrf.mxu1 }
 0x1a3   :  { %v4408_v2 = vadd.f32 %v2971_v27, %v4299_v18 }
 0x1a4   :  { %v2973_v46 = vpop.f32.mrf.mxu0  ;;  %v4410_v47 = vpop.f32.mrf.mxu1 }
 0x1a5   :  { %4671 = vst [vmem:[#allocation6_spill] sm:$0xff] %v4408_v2  ;;  %v2974_v49 = vadd.f32 %v2973_v46, %v2972_v13 }
 0x1a6   :  { %v2975_v55 = vpop.f32.mrf.mxu0  ;;  %v4412_v51 = vpop.f32.mrf.mxu1 }
 0x1a7   :  { %v4415_v12 = vadd.f32 %v2974_v49, %v4305_v28 }
 0x1a8   :  { %v2976_v29 = vpop.f32.mrf.mxu0  ;;  %v4417_v0 = vpop.f32.mrf.mxu1 }
 0x1a9   :  { %4672 = vst [vmem:[#allocation7_spill] sm:$0xff] %v4415_v12  ;;  %v2977_v35 = vadd.f32 %v2976_v29, %v2975_v55 }
 0x1aa   :  { %v2978_v20 = vpop.f32.mrf.mxu0  ;;  %v4419_v21 = vpop.f32.mrf.mxu1 }
 0x1ab   :  { %v4422_v18 = vadd.f32 %v2977_v35, %v4311_v34 }
 0x1ac   :  { %v2979_v25 = vpop.f32.mrf.mxu0  ;;  %v4424_v27 = vpop.f32.mrf.mxu1 }
 0x1ad   :  { %4673 = vst [vmem:[#allocation8_spill] sm:$0xff] %v4422_v18  ;;  %v2980_v13 = vadd.f32 %v2979_v25, %v2978_v20 }
 0x1ae   :  { %v2981_v46 = vpop.f32.mrf.mxu0  ;;  %v4426_v50 = vpop.f32.mrf.mxu1 }
 0x1af   :  { %v4429_v28 = vadd.f32 %v2980_v13, %v4317_v44 }
 0x1b0   :  { %v2982_v49 = vpop.f32.mrf.mxu0  ;;  %v4431_v12 = vpop.f32.mrf.mxu1 }
 0x1b1   :  { %4674 = vst [vmem:[#allocation9_spill] sm:$0xff] %v4429_v28  ;;  %v2983_v55 = vadd.f32 %v2982_v49, %v2981_v46 }
 0x1b2   :  { %v2984_v29 = vpop.f32.mrf.mxu0  ;;  %v4433_v2 = vpop.f32.mrf.mxu1 }
 0x1b3   :  { %v4436_v34 = vadd.f32 %v2983_v55, %v4323_v52 }
 0x1b4   :  { %v2985_v35 = vpop.f32.mrf.mxu0  ;;  %v4438_v18 = vpop.f32.mrf.mxu1 }
 0x1b5   :  { %4675 = vst [vmem:[#allocation10_spill] sm:$0xff] %v4436_v34  ;;  %v2986_v20 = vadd.f32 %v2985_v35, %v2984_v29  ;;  %v3020_v29 = vadd.f32 %v4368_v32, %v4363_v45 }
 0x1b6   :  { %v2987_v25 = vpop.f32.mrf.mxu0  ;;  %v4440_v58 = vpop.f32.mrf.mxu1 }
 0x1b7   :  { %v4443_v44 = vadd.f32 %v2986_v20, %v4329_v1  ;;  %v3014_v20 = vadd.f32 %v4354_v61, %v4346_v7 }
 0x1b8   :  { %v2988_v13 = vpop.f32.mrf.mxu0  ;;  %v4445_v28 = vpop.f32.mrf.mxu1 }
 0x1b9   :  { %4676 = vst [vmem:[#allocation11_spill] sm:$0xff] %v4443_v44  ;;  %v2989_v46 = vadd.f32 %v2988_v13, %v2987_v25  ;;  %v2004_v61 = vadd.f32 %v3014_v20, %v4260_v54 }
 0x1ba   :  { %v2990_v49 = vpop.f32.mrf.mxu0  ;;  %v4447_v60 = vpop.f32.mrf.mxu1 }
 0x1bb   :  { %v4450_v52 = vadd.f32 %v2989_v46, %v4335_v9  ;;  %v3023_v9 = vadd.f32 %v4375_v38, %v4370_v31  ;;  %v3026_v38 = vadd.f32 %v4382_v19, %v4377_v40 }
 0x1bc   :  { %v2991_v55 = vpop.f32.mrf.mxu0  ;;  %v4452_v34 = vpop.f32.mrf.mxu1 }
 0x1bd   :  { %4677 = vst [vmem:[#allocation12_spill] sm:$0xff] %v4450_v52  ;;  %v2992_v35 = vadd.f32 %v2991_v55, %v2990_v49  ;;  %v2012_v52 = vadd.f32 %v3020_v29, %v4272_v22  ;;  %v3017_v49 = vadd.f32 %v4361_v17, %v4356_v36  ;;  %v2015_v31 = vadd.f32 %v3023_v9, %v4278_v37 }
 0x1be   :  { %v2993_v43 = vpop.f32.mrf.mxu0  ;;  %v4456_v1 = vpop.f32.mrf.mxu1 }
 0x1bf   :  { %v4461_v25 = vadd.f32 %v2992_v35, %v4341_v23  ;;  %v2007_v17 = vadd.f32 %v3017_v49, %v4266_v10 }
 0x1c0   :  { %v2994_v13 = vpop.f32.mrf.mxu0  ;;  %v4463_v44 = vpop.f32.mrf.mxu1 }
 0x1c1   :  { %v2995_v46 = vadd.f32 %v2994_v13, %v2993_v43  ;;  %v3032_v43 = vadd.f32 %v4396_v11, %v4391_v8 }
 0x1c2   :  { %v4468_v45 = vpop.f32.mrf.mxu1  ;;  %v3150_v32 = vpop.f32.mrf.mxu0 }
 0x1c3   :  { %v4473_v7 = vadd.f32 %v2995_v46, %v4349_v24  ;;  %v2173_v23 = vadd.f32 %v3150_v32, %v2012_v52  ;;  %v3035_v52 = vadd.f32 %v4403_v33, %v4398_v3  ;;  %v2028_v29 = vadd.f32 %v3032_v43, %v4296_v14 }
 0x1c4   :  { %v4476_v55 = vpop.f32.mrf.mxu1  ;;  %v2164_v35 = vpop.f32.mrf.mxu0  ;;  %v3029_v3 = vadd.f32 %v4389_v62, %v4384_v57  ;;  %v3044_v33 = vadd.f32 %v4424_v27, %v4419_v21  ;;  %v2020_v14 = vadd.f32 %v3026_v38, %v4284_v48  ;;  %v3038_v57 = vadd.f32 %v4410_v47, %v4405_v42 }
 0x1c5   :  { %2293 = vst [vmem:[%s4665_s2 + $0x10] sm:$0xff] %v2173_v23  ;;  %v2165_v22 = vadd.f32 %v2164_v35, %v2004_v61  ;;  %v2362_v49 = vmul.f32 %v2173_v23, %v2173_v23  ;;  %v2031_v43 = vadd.f32 %v3035_v52, %v4302_v26  ;;  %v3047_v42 = vadd.f32 %v4431_v12, %v4426_v50 }
 0x1c6   :  { %v4484_v36 = vpop.f32.mrf.mxu1  ;;  %v3151_v24 = vpop.f32.mrf.mxu0  ;;  %v2044_v38 = vadd.f32 %v3044_v33, %v4320_v5  ;;  %v2036_v5 = vadd.f32 %v3038_v57, %v4308_v41 }
 0x1c7   :  { %2291 = vst [vmem:[%s4665_s2] sm:$0xff] %v2165_v22  ;;  %v2176_v54 = vadd.f32 %v3151_v24, %v2015_v31  ;;  %v2360_v10 = vmul.f32 %v2165_v22, %v2165_v22 }
 0x1c8   :  { %v4492_v8 = vpop.f32.mrf.mxu1  ;;  %v2167_v11 = vpop.f32.mrf.mxu0 }
 0x1c9   :  { %2294 = vst [vmem:[%s4665_s2 + $0x18] sm:$0xff] %v2176_v54  ;;  %v2168_v37 = vadd.f32 %v2167_v11, %v2007_v17  ;;  %v2363_v27 = vmul.f32 %v2176_v54, %v2176_v54  ;;  %v2023_v17 = vadd.f32 %v3029_v3, %v4290_v63  ;;  %v3041_v63 = vadd.f32 %v4417_v0, %v4412_v51 }
 0x1ca   :  { %v4500_v20 = vpop.f32.mrf.mxu1  ;;  %v3154_v13 = vpop.f32.mrf.mxu0  ;;  %v3056_v3 = vadd.f32 %v4452_v34, %v4447_v60  ;;  %v2047_v0 = vadd.f32 %v3047_v42, %v4326_v15 }
 0x1cb   :  { %2292 = vst [vmem:[%s4665_s2 + $0x8] sm:$0xff] %v2168_v37  ;;  %v2323_v40 = vadd.f32 %v2168_v37, %v2165_v22  ;;  %v2361_v19 = vmul.f32 %v2168_v37, %v2168_v37  ;;  %v2189_v9 = vadd.f32 %v3154_v13, %v2028_v29  ;;  %v2039_v34 = vadd.f32 %v3041_v63, %v4314_v53 }
 0x1cc   :  { %v4509_v46 = vpop.f32.mrf.mxu1  ;;  %v2180_v32 = vpop.f32.mrf.mxu0 }
 0x1cd   :  { %v2324_v61 = vadd.f32 %v2323_v40, %v2173_v23  ;;  %v2392_v35 = vadd.f32 %v2361_v19, %v2360_v10  ;;  %2297 = vst [vmem:[%s4665_s2 + $0x30] sm:$0xff] %v2189_v9  ;;  %v2181_v62 = vadd.f32 %v2180_v32, %v2020_v14  ;;  %v2366_v41 = vmul.f32 %v2189_v9, %v2189_v9 }
 0x1ce   :  { %v4518_v22 = vpop.f32.mrf.mxu1  ;;  %v3155_v21 = vpop.f32.mrf.mxu0 }
 0x1cf   :  { %v2393_v31 = vadd.f32 %v2392_v35, %v2362_v49  ;;  %v2325_v48 = vadd.f32 %v2324_v61, %v2176_v54  ;;  %v2192_v24 = vadd.f32 %v3155_v21, %v2031_v43  ;;  %2295 = vst [vmem:[%s4665_s2 + $0x20] sm:$0xff] %v2181_v62  ;;  %v2364_v11 = vmul.f32 %v2181_v62, %v2181_v62 }
 0x1d0   :  { %v4523_v23 = vpop.f32.mrf.mxu1  ;;  %v2183_v26 = vpop.f32.mrf.mxu0  ;;  %v3050_v61 = vadd.f32 %v4438_v18, %v4433_v2  ;;  %v2060_v18 = vadd.f32 %v3056_v3, %v4344_v56 }
 0x1d1   :  { %v2326_v47 = vadd.f32 %v2325_v48, %v2181_v62  ;;  %v2394_v52 = vadd.f32 %v2393_v31, %v2363_v27  ;;  %2298 = vst [vmem:[%s4665_s2 + $0x38] sm:$0xff] %v2192_v24  ;;  %v2184_v54 = vadd.f32 %v2183_v26, %v2023_v17  ;;  %v2367_v35 = vmul.f32 %v2192_v24, %v2192_v24 }
 0x1d2   :  { %v4532_v37 = vpop.f32.mrf.mxu1  ;;  %v3158_v29 = vpop.f32.mrf.mxu0  ;;  %v3059_v62 = vadd.f32 %v4463_v44, %v4456_v1  ;;  %v2052_v17 = vadd.f32 %v3050_v61, %v4332_v30  ;;  %v3062_v30 = vadd.f32 %v4476_v55, %v4468_v45 }
 0x1d3   :  { %v2395_v13 = vadd.f32 %v2394_v52, %v2364_v11  ;;  %v2205_v10 = vadd.f32 %v3158_v29, %v2044_v38  ;;  %2296 = vst [vmem:[%s4665_s2 + $0x28] sm:$0xff] %v2184_v54  ;;  %v2327_v50 = vadd.f32 %v2326_v47, %v2184_v54  ;;  %v2365_v12 = vmul.f32 %v2184_v54, %v2184_v54 }
 0x1d4   :  { %v4540_v40 = vpop.f32.mrf.mxu1  ;;  %v2196_v19 = vpop.f32.mrf.mxu0  ;;  %v3068_v47 = vadd.f32 %v4509_v46, %v4500_v20 }
 0x1d5   :  { %2301 = vst [vmem:[%s4665_s2 + $0x50] sm:$0xff] %v2205_v10  ;;  %v2197_v51 = vadd.f32 %v2196_v19, %v2036_v5  ;;  %v2328_v33 = vadd.f32 %v2327_v50, %v2189_v9  ;;  %v2396_v14 = vadd.f32 %v2395_v13, %v2365_v12  ;;  %v2370_v11 = vmul.f32 %v2205_v10, %v2205_v10 }
 0x1d6   :  { %v4548_v32 = vpop.f32.mrf.mxu1  ;;  %v3159_v49 = vpop.f32.mrf.mxu0  ;;  %v2076_v55 = vadd.f32 %v3068_v47, %v4373_v59 }
 0x1d7   :  { %2299 = vst [vmem:[%s4665_s2 + $0x40] sm:$0xff] %v2197_v51  ;;  %v2208_v60 = vadd.f32 %v3159_v49, %v2047_v0  ;;  %v2397_v43 = vadd.f32 %v2396_v14, %v2366_v41  ;;  %v2329_v57 = vadd.f32 %v2328_v33, %v2192_v24  ;;  %v2368_v27 = vmul.f32 %v2197_v51, %v2197_v51 }
 0x1d8   :  { %v4556_v15 = vpop.f32.mrf.mxu1  ;;  %v2199_v9 = vpop.f32.mrf.mxu0  ;;  %v3053_v24 = vadd.f32 %v4445_v28, %v4440_v58  ;;  %v2063_v28 = vadd.f32 %v3059_v62, %v4352_v4  ;;  %v3065_v41 = vadd.f32 %v4492_v8, %v4484_v36  ;;  %v2068_v33 = vadd.f32 %v3062_v30, %v4359_v16 }
 0x1d9   :  { %2302 = vst [vmem:[%s4665_s2 + $0x58] sm:$0xff] %v2208_v60  ;;  %v2200_v2 = vadd.f32 %v2199_v9, %v2039_v34  ;;  %v2330_v21 = vadd.f32 %v2329_v57, %v2197_v51  ;;  %v2398_v31 = vadd.f32 %v2397_v43, %v2367_v35  ;;  %v2371_v13 = vmul.f32 %v2208_v60, %v2208_v60 }
 0x1da   :  { %v3078_v53 = vpop.f32.mrf.mxu1  ;;  %v3162_v48 = vpop.f32.mrf.mxu0  ;;  %v2055_v46 = vadd.f32 %v3053_v24, %v4338_v39  ;;  %v3074_v16 = vadd.f32 %v4540_v40, %v4532_v37 }
 0x1db   :  { %2300 = vst [vmem:[%s4665_s2 + $0x48] sm:$0xff] %v2200_v2  ;;  %v2369_v44 = vmul.f32 %v2200_v2, %v2200_v2  ;;  %v2221_v1 = vadd.f32 %v3162_v48, %v2060_v18  ;;  %v2399_v26 = vadd.f32 %v2398_v31, %v2368_v27  ;;  %v2331_v38 = vadd.f32 %v2330_v21, %v2200_v2  ;;  %v4678_v2 = vld [vmem:[#allocation2_spill] sm:$0xff] }
 0x1dc   :  { %v3079_v42 = vpop.f32.mrf.mxu1  ;;  %v2212_v56 = vpop.f32.mrf.mxu0  ;;  %v2071_v18 = vadd.f32 %v3065_v41, %v4678_v2 }
 0x1dd   :  { %2305 = vst [vmem:[%s4665_s2 + $0x70] sm:$0xff] %v2221_v1  ;;  %v2213_v58 = vadd.f32 %v2212_v56, %v2052_v17  ;;  %v2332_v52 = vadd.f32 %v2331_v38, %v2205_v10  ;;  %v2400_v54 = vadd.f32 %v2399_v26, %v2369_v44  ;;  %v3071_v10 = vadd.f32 %v4523_v23, %v4518_v22  ;;  %v4679_v44 = vld [vmem:[#allocation5_spill] sm:$0xff] }
 0x1de   :  { %v3081_v29 = vpop.f32.mrf.mxu1  ;;  %v3163_v63 = vpop.f32.mrf.mxu0  ;;  %v2374_v8 = vmul.f32 %v2221_v1, %v2221_v1 }
 0x1df   :  { %2303 = vst [vmem:[%s4665_s2 + $0x60] sm:$0xff] %v2213_v58  ;;  %v2224_v20 = vadd.f32 %v3163_v63, %v2063_v28  ;;  %v2401_v5 = vadd.f32 %v2400_v54, %v2370_v11  ;;  %v2333_v50 = vadd.f32 %v2332_v52, %v2208_v60  ;;  %v2372_v3 = vmul.f32 %v2213_v58, %v2213_v58 }
 0x1e0   :  { %v3082_v12 = vpop.f32.mrf.mxu1  ;;  %v2215_v4 = vpop.f32.mrf.mxu0  ;;  %v3080_v60 = vadd.f32 %v3079_v42, %v3078_v53  ;;  %v2079_v36 = vadd.f32 %v3071_v10, %v4380_v6  ;;  %v3077_v42 = vadd.f32 %v4556_v15, %v4548_v32  ;;  %v4682_v10 = vld [vmem:[#allocation4_spill] sm:$0xff] }
 0x1e1   :  { %2306 = vst [vmem:[%s4665_s2 + $0x78] sm:$0xff] %v2224_v20  ;;  %v2216_v45 = vadd.f32 %v2215_v4, %v2055_v46  ;;  %v2334_v19 = vadd.f32 %v2333_v50, %v2213_v58  ;;  %v2402_v51 = vadd.f32 %v2401_v5, %v2371_v13  ;;  %v2375_v21 = vmul.f32 %v2224_v20, %v2224_v20  ;;  %v4680_v58 = vld [vmem:[#allocation3_spill] sm:$0xff] }
 0x1e2   :  { %v3084_v0 = vpop.f32.mrf.mxu1  ;;  %v3166_v39 = vpop.f32.mrf.mxu0  ;;  %v3083_v48 = vadd.f32 %v3082_v12, %v3081_v29  ;;  %v2092_v37 = vadd.f32 %v3080_v60, %v4679_v44  ;;  %v2084_v28 = vadd.f32 %v3074_v16, %v4680_v58  ;;  %v4686_v44 = vld [vmem:[#allocation8_spill] sm:$0xff] }
 0x1e3   :  { %2304 = vst [vmem:[%s4665_s2 + $0x68] sm:$0xff] %v2216_v45  ;;  %v2373_v22 = vmul.f32 %v2216_v45, %v2216_v45  ;;  %v2237_v23 = vadd.f32 %v3166_v39, %v2076_v55  ;;  %v2403_v14 = vadd.f32 %v2402_v51, %v2372_v3  ;;  %v2335_v49 = vadd.f32 %v2334_v19, %v2216_v45 }
 0x1e4   :  { %v3085_v61 = vpop.f32.mrf.mxu1  ;;  %v2228_v59 = vpop.f32.mrf.mxu0  ;;  %v2087_v45 = vadd.f32 %v3077_v42, %v4682_v10 }
 0x1e5   :  { %2309 = vst [vmem:[%s4665_s2 + $0x90] sm:$0xff] %v2237_v23  ;;  %v2229_v34 = vadd.f32 %v2228_v59, %v2068_v33  ;;  %v2336_v35 = vadd.f32 %v2335_v49, %v2221_v1  ;;  %v2404_v43 = vadd.f32 %v2403_v14, %v2373_v22  ;;  %v2378_v15 = vmul.f32 %v2237_v23, %v2237_v23 }
 0x1e6   :  { %v3087_v57 = vpop.f32.mrf.mxu1  ;;  %v3167_v9 = vpop.f32.mrf.mxu0  ;;  %v3086_v12 = vadd.f32 %v3085_v61, %v3084_v0 }
 0x1e7   :  { %2307 = vst [vmem:[%s4665_s2 + $0x80] sm:$0xff] %v2229_v34  ;;  %v2240_v62 = vadd.f32 %v3167_v9, %v2079_v36  ;;  %v2405_v27 = vadd.f32 %v2404_v43, %v2374_v8  ;;  %v2337_v31 = vadd.f32 %v2336_v35, %v2224_v20  ;;  %v2376_v1 = vmul.f32 %v2229_v34, %v2229_v34  ;;  %v4681_v20 = vld [vmem:[#allocation6_spill] sm:$0xff]  ;;  %v4684_v8 = vld [vmem:[#allocation7_spill] sm:$0xff] }
 0x1e8   :  { %v3088_v53 = vpop.f32.mrf.mxu1  ;;  %v2231_v6 = vpop.f32.mrf.mxu0  ;;  %v2095_v32 = vadd.f32 %v3083_v48, %v4681_v20  ;;  %v2100_v35 = vadd.f32 %v3086_v12, %v4684_v8 }
 0x1e9   :  { %2310 = vst [vmem:[%s4665_s2 + $0x98] sm:$0xff] %v2240_v62  ;;  %v2232_v24 = vadd.f32 %v2231_v6, %v2071_v18  ;;  %v2338_v40 = vadd.f32 %v2337_v31, %v2229_v34  ;;  %v2406_v17 = vadd.f32 %v2405_v27, %v2375_v21  ;;  %v2379_v55 = vmul.f32 %v2240_v62, %v2240_v62  ;;  %v4685_v18 = vld [vmem:[#allocation10_spill] sm:$0xff] }
 0x1ea   :  { %v3090_v26 = vpop.f32.mrf.mxu1  ;;  %v3170_v38 = vpop.f32.mrf.mxu0  ;;  %v3089_v60 = vadd.f32 %v3088_v53, %v3087_v57 }
 0x1eb   :  { %2308 = vst [vmem:[%s4665_s2 + $0x88] sm:$0xff] %v2232_v24  ;;  %v2377_v56 = vmul.f32 %v2232_v24, %v2232_v24  ;;  %v2253_v47 = vadd.f32 %v3170_v38, %v2092_v37  ;;  %v2407_v11 = vadd.f32 %v2406_v17, %v2376_v1  ;;  %v2339_v52 = vadd.f32 %v2338_v40, %v2232_v24 }
 0x1ec   :  { %v3091_v54 = vpop.f32.mrf.mxu1  ;;  %v2244_v29 = vpop.f32.mrf.mxu0  ;;  %v2103_v37 = vadd.f32 %v3089_v60, %v4686_v44 }
 0x1ed   :  { %2313 = vst [vmem:[%s4665_s2 + $0xb0] sm:$0xff] %v2253_v47  ;;  %v3092_v63 = vadd.f32 %v3091_v54, %v3090_v26  ;;  %v2245_v30 = vadd.f32 %v2244_v29, %v2084_v28  ;;  %v2340_v46 = vadd.f32 %v2339_v52, %v2237_v23  ;;  %v2408_v13 = vadd.f32 %v2407_v11, %v2377_v56  ;;  %v4683_v23 = vld [vmem:[#allocation9_spill] sm:$0xff]  ;;  %v4687_v29 = vld [vmem:[#allocation11_spill] sm:$0xff] }
 0x1ee   :  { %v3093_v5 = vpop.f32.mrf.mxu1  ;;  %v3171_v50 = vpop.f32.mrf.mxu0  ;;  %v2382_v57 = vmul.f32 %v2253_v47, %v2253_v47 }
 0x1ef   :  { %2311 = vst [vmem:[%s4665_s2 + $0xa0] sm:$0xff] %v2245_v30  ;;  %v2256_v4 = vadd.f32 %v3171_v50, %v2095_v32  ;;  %v2409_v19 = vadd.f32 %v2408_v13, %v2378_v15  ;;  %v2341_v3 = vadd.f32 %v2340_v46, %v2240_v62  ;;  %v2108_v0 = vadd.f32 %v3092_v63, %v4683_v23 }
 0x1f0   :  { %v3094_v51 = vpop.f32.mrf.mxu1  ;;  %v2247_v39 = vpop.f32.mrf.mxu0  ;;  %v2380_v14 = vmul.f32 %v2245_v30, %v2245_v30 }
 0x1f1   :  { %2314 = vst [vmem:[%s4665_s2 + $0xb8] sm:$0xff] %v2256_v4  ;;  %v3095_v41 = vadd.f32 %v3094_v51, %v3093_v5  ;;  %v2248_v22 = vadd.f32 %v2247_v39, %v2087_v45  ;;  %v2342_v33 = vadd.f32 %v2341_v3, %v2245_v30  ;;  %v2410_v49 = vadd.f32 %v2409_v19, %v2379_v55  ;;  %v4688_v55 = vld [vmem:[#allocation12_spill] sm:$0xff] }
 0x1f2   :  { %v3096_v61 = vpop.f32.mrf.mxu1  ;;  %v3174_v59 = vpop.f32.mrf.mxu0  ;;  %v2383_v40 = vmul.f32 %v2256_v4, %v2256_v4 }
 0x1f3   :  { %2312 = vst [vmem:[%s4665_s2 + $0xa8] sm:$0xff] %v2248_v22  ;;  %v2381_v34 = vmul.f32 %v2248_v22, %v2248_v22  ;;  %v2269_v36 = vadd.f32 %v3174_v59, %v2108_v0  ;;  %v2411_v43 = vadd.f32 %v2410_v49, %v2380_v14  ;;  %v2343_v9 = vadd.f32 %v2342_v33, %v2248_v22 }
 0x1f4   :  { %v3097_v16 = vpop.f32.mrf.mxu1  ;;  %v2260_v62 = vpop.f32.mrf.mxu0  ;;  %v2111_v21 = vadd.f32 %v3095_v41, %v4685_v18 }
 0x1f5   :  { %2317 = vst [vmem:[%s4665_s2 + $0xd0] sm:$0xff] %v2269_v36  ;;  %v2261_v2 = vadd.f32 %v2260_v62, %v2100_v35  ;;  %v2344_v27 = vadd.f32 %v2343_v9, %v2253_v47  ;;  %v2412_v31 = vadd.f32 %v2411_v43, %v2381_v34  ;;  %v3098_v48 = vadd.f32 %v3097_v16, %v3096_v61 }
 0x1f6   :  { %v3099_v53 = vpop.f32.mrf.mxu1  ;;  %v3175_v6 = vpop.f32.mrf.mxu0  ;;  %v2386_v5 = vmul.f32 %v2269_v36, %v2269_v36 }
 0x1f7   :  { %2315 = vst [vmem:[%s4665_s2 + $0xc0] sm:$0xff] %v2261_v2  ;;  %v2272_v24 = vadd.f32 %v3175_v6, %v2111_v21  ;;  %v2413_v1 = vadd.f32 %v2412_v31, %v2382_v57  ;;  %v2345_v17 = vadd.f32 %v2344_v27, %v2256_v4  ;;  %v2384_v47 = vmul.f32 %v2261_v2, %v2261_v2 }
 0x1f8   :  { %v3100_v26 = vpop.f32.mrf.mxu1  ;;  %v2263_v38 = vpop.f32.mrf.mxu0  ;;  %v2116_v63 = vadd.f32 %v3098_v48, %v4687_v29  ;;  %v2429_v57 = vlaneseq }
 0x1f9   :  { %2318 = vst [vmem:[%s4665_s2 + $0xd8] sm:$0xff] %v2272_v24  ;;  %v2264_v42 = vadd.f32 %v2263_v38, %v2103_v37  ;;  %v2346_v56 = vadd.f32 %v2345_v17, %v2261_v2  ;;  %v2414_v58 = vadd.f32 %v2413_v1, %v2383_v40  ;;  %v3101_v52 = vadd.f32 %v3100_v26, %v3099_v53 }
 0x1fa   :  { %v3102_v28 = vpop.f32.mrf.mxu1  ;;  %v3178_v11 = vpop.f32.mrf.mxu0  ;;  %v2387_v3 = vmul.f32 %v2272_v24, %v2272_v24  ;;  %v2430_v48 = vshrl.u32 %v2429_v57, 7 }
 0x1fb   :  { %2316 = vst [vmem:[%s4665_s2 + $0xc8] sm:$0xff] %v2264_v42  ;;  %v2385_v54 = vmul.f32 %v2264_v42, %v2264_v42  ;;  %v2415_v30 = vadd.f32 %v2414_v58, %v2384_v47  ;;  %v2347_v20 = vadd.f32 %v2346_v56, %v2264_v42  ;;  %v2119_v19 = vadd.f32 %v3101_v52, %v4688_v55 }
 0x1fc   :  { %v3103_v32 = vpop.f32.mrf.mxu1  ;;  %v2276_v15 = vpop.f32.mrf.mxu0  ;;  %vm2432_vm0 = vcmp.eq.s32.totalorder %v2430_v48, 1  ;;  %vm2431_vm1 = vcmp.eq.s32.totalorder %v2430_v48, 0 }
 0x1fd   :  { %v3104_v46 = vadd.f32 %v3103_v32, %v3102_v28  ;;  %v2277_v13 = vadd.f32 %v2276_v15, %v2116_v63  ;;  %v2348_v50 = vadd.f32 %v2347_v20, %v2269_v36  ;;  %v2416_v12 = vadd.f32 %v2415_v30, %v2385_v54 }
 0x1fe   :  { %v3105_v4 = vpop.f32.mrf.mxu1  ;;  %v3179_v10 = vpop.f32.mrf.mxu0 }
 0x1ff   :  { %v2124_v45 = vadd.f32 %v3104_v46, %v4461_v25  ;;  %2319 = vst [vmem:[%s4665_s2 + $0xe0] sm:$0xff] %v2277_v13  ;;  %v2417_v51 = vadd.f32 %v2416_v12, %v2386_v5  ;;  %v2349_v39 = vadd.f32 %v2348_v50, %v2272_v24  ;;  %v2388_v49 = vmul.f32 %v2277_v13, %v2277_v13 }
 0x200   :  { %v3106_v41 = vpop.f32.mrf.mxu1  ;;  %v2279_v22 = vpop.f32.mrf.mxu0 }
 0x201   :  { %v2285_v23 = vadd.f32 %v3178_v11, %v2124_v45  ;;  %v3107_v0 = vadd.f32 %v3106_v41, %v3105_v4  ;;  %v2280_v33 = vadd.f32 %v2279_v22, %v2119_v19  ;;  %v2350_v14 = vadd.f32 %v2349_v39, %v2277_v13 }
 0x202   :  { %v2418_v61 = vadd.f32 %v2417_v51, %v2387_v3 }
 0x203   :  { %2321 = vst [vmem:[%s4665_s2 + $0xf0] sm:$0xff] %v2285_v23  ;;  %v2127_v25 = vadd.f32 %v3107_v0, %v4473_v7  ;;  %2320 = vst [vmem:[%s4665_s2 + $0xe8] sm:$0xff] %v2280_v33  ;;  %v2389_v59 = vmul.f32 %v2280_v33, %v2280_v33  ;;  %v2351_v34 = vadd.f32 %v2350_v14, %v2280_v33 }
 0x204   :  { %v2419_v60 = vadd.f32 %v2418_v61, %v2388_v49  ;;  %v2390_v8 = vmul.f32 %v2285_v23, %v2285_v23 }
 0x205   :  { %v2288_v36 = vadd.f32 %v3179_v10, %v2127_v25  ;;  %v2352_v35 = vadd.f32 %v2351_v34, %v2285_v23 }
 0x206   :  { %v2420_v43 = vadd.f32 %v2419_v60, %v2389_v59 }
 0x207   :  { %2322 = vst [vmem:[%s4665_s2 + $0xf8] sm:$0xff] %v2288_v36  ;;  %v2391_v9 = vmul.f32 %v2288_v36, %v2288_v36  ;;  %v2353_v16 = vadd.f32 %v2352_v35, %v2288_v36 }
 0x208   :  { %v2421_v62 = vadd.f32 %v2420_v43, %v2390_v8 }
 0x209   :  { %v2354_v2 = vrot.slane %v2353_v16, 4 }
 0x20a   :  { %v2422_v7 = vadd.f32 %v2421_v62, %v2391_v9 }
 0x20b   :  { %v2355_v18 = vadd.f32 %v2354_v2, %v2353_v16 }
 0x20c   :  { %v2423_v21 = vrot.slane %v2422_v7, 4 }
 0x20d   :  { %v2356_v27 = vrot.slane %v2355_v18, 2 }
 0x20e   :  { %v2424_v31 = vadd.f32 %v2423_v21, %v2422_v7 }
 0x20f   :  { %v2357_v53 = vadd.f32 %v2356_v27, %v2355_v18 }
 0x210   :  { %v2425_v6 = vrot.slane %v2424_v31, 2 }
 0x211   :  { %v2358_v44 = vrot.slane %v2357_v53, 1 }
 0x212   :  { %v2426_v24 = vadd.f32 %v2425_v6, %v2424_v31 }
 0x213   :  { %v2359_v1 = vadd.f32 %v2358_v44, %v2357_v53 }
 0x214   :  { %v2427_v37 = vrot.slane %v2426_v24, 1 }
 0x216   :  { %v2428_v40 = vadd.f32 %v2427_v37, %v2426_v24 }
 0x218   :  { %v2433_v17 = vsel %vm2432_vm0, %v2428_v40, 0.0 }
 0x219   :  { %v2434_v26 = vsel %vm2431_vm1, %v2359_v1, %v2433_v17 }
 0x21a   :  { %2435 = vst [vmem:[%s4666_s3] sm:$0xff] %v2434_v26 }

</bundles_post_ra>
